<compile_context>
chip_gen: v6e
topology: v6e:2x2x1
jax: 0.10.0
libtpu: 0.0.40
codegen_flags: <defaults>
</compile_context>

<pallas_src>
import jax
import jax.numpy as jnp
from jax.experimental import pallas as pl
from jax.experimental.pallas import tpu as pltpu

NEG_SLOPE = 0.2
BN_EPS = 1e-5
C_IN = 6
C_PAD = 8          # channels padded 6 -> 8: channel 6 = constant 1.0 (bias lane), 7 = 0


def _leaky(v):
    return jnp.where(v > 0, v, NEG_SLOPE * v)


# --------------------------------------------------------------------------- #
# Fused kernel: conv1 -> conv2 -> max over K -> conv3 -> running max over N
#               -> (last tile) head 512->64->32->9 + identity bias.
# Grid = (B, N // tN); b axis "parallel", N-tile axis "arbitrary" (sequential).
# The (512, acc_w) scratch is the running partial max; the (1,16,1) output block
# is resident per b and written only in the last-tile epilogue.
# --------------------------------------------------------------------------- #
def _transform_net_kernel(x_ref,            # (1, K, 8, tn)  bf16, N in lanes
                          w1_ref,           # (32, 8)   bf16 (col 6 = bn1 shift)
                          w2_ref, b2_ref,   # (64, 32)  bf16, (64, 1)  f32
                          w3_ref, b3_ref,   # (512, 64) bf16, (512, 1) f32
                          w4_ref, b4_ref,   # (64, 512) f32,  (64, 1)  f32
                          w5_ref, b5_ref,   # (32, 64)  f32,  (32, 1)  f32
                          w6_ref, b6_ref,   # (16, 32)  f32,  (16, 1)  f32
                          out_ref,          # (1, 16, 1) f32 (rows 0..8 used)
                          h1_ref,           # (32, K*tn) bf16 scratch
                          acc_ref):         # (512, acc_w) f32 scratch (running max)
    num_k = x_ref.shape[1]
    tn = x_ref.shape[3]
    n_idx = pl.program_id(1)
    n_last = pl.num_programs(1) - 1

    # conv1 (+ folded bn1 shift via the ones channel) per neighbour.  Each result is
    # stored immediately, so the static unroll carries no live ranges across k.
    for k in range(num_k):
        h = jnp.dot(w1_ref[...], x_ref[0, k], preferred_element_type=jnp.float32)
        h1_ref[:, k * tn:(k + 1) * tn] = _leaky(h).astype(jnp.bfloat16)

    # conv2 as ONE wide MXU matmul over all K*tn lanes.
    h2 = jnp.dot(w2_ref[...], h1_ref[...], preferred_element_type=jnp.float32)

    # max over K = elementwise maxima of the K lane slices (VALU).  bn2 shift +
    # LeakyReLU are strictly monotone per channel -> applied once after the max.
    m = h2[:, 0:tn]
    for k in range(1, num_k):
        m = jnp.maximum(m, h2[:, k * tn:(k + 1) * tn])
    m = _leaky(m + b2_ref[...]).astype(jnp.bfloat16)                # (64, tn)

    # conv3: keep the RAW output -- bn3 shift + LeakyReLU also commute with the
    # global max over N, so they move to the once-per-batch epilogue.
    h3 = jnp.dot(w3_ref[...], m, preferred_element_type=jnp.float32)  # (512, tn)

    # Fold tn lanes down to acc_w lanes with elementwise maxima (VALU only;
    # no cross-lane XLU reduce and no (512,1) masked stores in the hot loop).
    if tn > 128:
        pmax = h3[:, 0:128]
        for grp in range(1, tn // 128):
            pmax = jnp.maximum(pmax, h3[:, grp * 128:(grp + 1) * 128])
    else:
        pmax = h3

    @pl.when(n_idx == 0)
    def _():
        acc_ref[...] = pmax

    @pl.when(n_idx != 0)
    def _():
        acc_ref[...] = jnp.maximum(acc_ref[...], pmax)

    # Epilogue (last N tile): one cross-lane reduce, bn3 shift + leaky, fused head.
    @pl.when(n_idx == n_last)
    def _():
        gmax = jnp.max(acc_ref[...], axis=1, keepdims=True)         # (512, 1)
        g = _leaky(gmax + b3_ref[...])
        h4 = _leaky(jnp.dot(w4_ref[...], g,
                            preferred_element_type=jnp.float32) + b4_ref[...])
        h5 = _leaky(jnp.dot(w5_ref[...], h4,
                            preferred_element_type=jnp.float32) + b5_ref[...])
        out_ref[0] = (jnp.dot(w6_ref[...], h5,
                              preferred_element_type=jnp.float32) + b6_ref[...])


def _choose_tile(n, k):
    """Pick (padded_N, tile_N): lane-dim tile, multiple of 128 for big N, capped so the
    wide conv2 slab (64, K*tN) f32 + (32, K*tN) bf16 + (512, tN) f32 stays well under
    the v7x scoped-VMEM default."""
    if n <= 128:
        return n, n                      # single tile, full-dim block (no 128 constraint)
    padded = ((n + 127) // 128) * 128
    budget_lanes = 16384                 # cap on K * tN
    cap = min(1024, padded, max(128, (budget_lanes // max(k, 1)) // 128 * 128))
    tn = cap
    while padded % tn != 0:
        tn -= 128
    return padded, tn


def transform_net_tiny(x, params):
    """x: (B, 6, N, K) float32 (same layout the PyTorch module receives).
    Returns (B, 3, 3) float32 (eval-mode BatchNorm folded into the weights)."""
    B, C, N, K = x.shape
    assert C == C_IN
    (w1p, w2f, b2, w3f, b3, w4f, b4, w5f, b5, w6p, b6p) = params

    # N -> lanes, channels -> sublanes.  Channel 6 is a constant 1.0 "bias lane"
    # (bn1 shift lives in w1p column 6); channel 7 is zero padding.
    x_r = jnp.transpose(x, (0, 3, 1, 2)).astype(jnp.bfloat16)        # (B, K, 6, N)
    pad_one = jnp.ones((B, K, 1, N), jnp.bfloat16)
    pad_zero = jnp.zeros((B, K, 1, N), jnp.bfloat16)
    x_r = jnp.concatenate([x_r, pad_one, pad_zero], axis=2)          # (B, K, 8, N)

    padded_n, tn = _choose_tile(N, K)
    if padded_n != N:
        # Edge-replicate: duplicated columns never change the global max over N.
        x_r = jnp.pad(x_r, ((0, 0), (0, 0), (0, 0), (0, padded_n - N)), mode="edge")
    n_tiles = padded_n // tn
    acc_w = min(tn, 128)

    def const_spec(arr):                 # small resident operand, loaded once
        nd = arr.ndim
        return pl.BlockSpec(arr.shape, lambda b, n, _nd=nd: (0,) * _nd)

    consts = (w1p, w2f, b2, w3f, b3, w4f, b4, w5f, b5, w6p, b6p)

    out = pl.pallas_call(
        _transform_net_kernel,
        out_shape=jax.ShapeDtypeStruct((B, 16, 1), jnp.float32),
        grid_spec=pltpu.PrefetchScalarGridSpec(
            num_scalar_prefetch=0,
            grid=(B, n_tiles),
            in_specs=[pl.BlockSpec((1, K, C_PAD, tn), lambda b, n: (b, 0, 0, n))]
                     + [const_spec(a) for a in consts],
            out_specs=pl.BlockSpec((1, 16, 1), lambda b, n: (b, 0, 0)),
            scratch_shapes=[pltpu.VMEM((32, K * tn), jnp.bfloat16),
                            pltpu.VMEM((512, acc_w), jnp.float32)],
        ),
        compiler_params=pltpu.CompilerParams(
            dimension_semantics=("parallel", "arbitrary")),
    )(x_r, *consts)

    return out[:, :9, 0].reshape(B, 3, 3)


# --------------------------------------------------------------------------- #
# Pure-JAX reference (mimics the kernel's bf16 storage points) for a sanity check.
# --------------------------------------------------------------------------- #
def transform_net_tiny_reference(x, params):
    (w1p, w2f, b2, w3f, b3, w4f, b4, w5f, b5, w6p, b6p) = params
    B = x.shape[0]
    hp = dict(precision="highest")
    xb = x.astype(jnp.bfloat16).astype(jnp.float32)                  # (B,6,N,K)
    w1 = w1p.astype(jnp.float32)
    h1 = jnp.einsum("oc,bcnk->bonk", w1[:, :C_IN], xb, **hp) \
        + w1[:, C_IN].reshape(1, 32, 1, 1)
    h1 = _leaky(h1).astype(jnp.bfloat16).astype(jnp.float32)
    h2 = jnp.einsum("oc,bcnk->bonk", w2f.astype(jnp.float32), h1, **hp)
    h2 = h2.max(axis=-1)                                             # max over K
    h2 = _leaky(h2 + b2.reshape(1, 64, 1)).astype(jnp.bfloat16).astype(jnp.float32)
    h3 = jnp.einsum("oc,bcn->bon", w3f.astype(jnp.float32), h2, **hp)
    g = h3.max(axis=-1, keepdims=True)                               # max over N
    g = _leaky(g + b3.reshape(1, 512, 1))
    h4 = _leaky(jnp.einsum("oc,bcx->box", w4f, g, **hp) + b4.reshape(1, 64, 1))
    h5 = _leaky(jnp.einsum("oc,bcx->box", w5f, h4, **hp) + b5.reshape(1, 32, 1))
    o = jnp.einsum("oc,bcx->box", w6p, h5, **hp) + b6p.reshape(1, 16, 1)
    return o[:, :9, 0].reshape(B, 3, 3)


# --------------------------------------------------------------------------- #
# Deterministic parameter construction (stand-ins for trained PyTorch params),
# with eval-mode BN folded into the preceding weights.
# --------------------------------------------------------------------------- #
def _bn_scale_shift(key, c):
    k1, k2, k3, k4 = jax.random.split(key, 4)
    gamma = jax.random.uniform(k1, (c,), minval=0.5, maxval=1.5)
    beta = 0.1 * jax.random.normal(k2, (c,))
    mean = 0.1 * jax.random.normal(k3, (c,))
    var = jax.random.uniform(k4, (c,), minval=0.5, maxval=1.5)
    scale = gamma / jnp.sqrt(var + BN_EPS)
    shift = beta - mean * scale
    return scale.astype(jnp.float32), shift.astype(jnp.float32)


def make_params(key):
    ks = jax.random.split(key, 11)

    def w(k, co, ci):  # PyTorch (out, in) convention
        return (jax.random.normal(k, (co, ci)) / jnp.sqrt(ci)).astype(jnp.float32)

    w1 = w(ks[0], 32, 6)      # conv1: Conv2d(6, 32, 1, bias=False)
    w2 = w(ks[1], 64, 32)     # conv2: Conv2d(32, 64, 1, bias=False)
    w3 = w(ks[2], 512, 64)    # conv3: Conv1d(64, 512, 1, bias=False)
    w4 = w(ks[3], 64, 512)    # linear1 (no bias)
    w5 = w(ks[4], 32, 64)     # linear2 (no bias)
    # transform: init is weight=0, bias=I(3x3).  A small non-zero weight stands in
    # for trained values so the end-to-end check exercises the full pipeline.
    w6 = 0.05 * jax.random.normal(ks[10], (9, 32)).astype(jnp.float32)
    b6 = jnp.eye(3, dtype=jnp.float32).reshape(9)

    s1, t1 = _bn_scale_shift(ks[5], 32)    # bn1 (BatchNorm2d(32))
    s2, t2 = _bn_scale_shift(ks[6], 64)    # bn2 (BatchNorm2d(64))
    s3, t3 = _bn_scale_shift(ks[7], 512)   # ORIGINAL bn3 (BatchNorm1d(512)) in conv3
    s4, t4 = _bn_scale_shift(ks[8], 64)    # rebound bn3 (BatchNorm1d(64)) after linear1
    s5, t5 = _bn_scale_shift(ks[9], 32)    # bn4 after linear2

    # Fold BN scales into the preceding weights; bn1 shift goes into w1p column 6
    # (multiplied by the constant 1.0 pad channel of x); other shifts stay additive.
    w1p = jnp.zeros((32, C_PAD), jnp.float32)
    w1p = w1p.at[:, :C_IN].set(s1[:, None] * w1)
    w1p = w1p.at[:, C_IN].set(t1)
    w1p = w1p.astype(jnp.bfloat16)

    w2f = (s2[:, None] * w2).astype(jnp.bfloat16)          # (64, 32)
    b2 = t2.reshape(64, 1)
    w3f = (s3[:, None] * w3).astype(jnp.bfloat16)          # (512, 64)
    b3 = t3.reshape(512, 1)

    w4f = (s4[:, None] * w4).astype(jnp.float32)           # (64, 512)
    b4 = t4.reshape(64, 1)
    w5f = (s5[:, None] * w5).astype(jnp.float32)           # (32, 64)
    b5 = t5.reshape(32, 1)

    w6p = jnp.zeros((16, 32), jnp.float32).at[:9].set(w6)  # padded to 16 rows
    b6p = jnp.zeros((16, 1), jnp.float32).at[:9, 0].set(b6)

    return (w1p, w2f, b2, w3f, b3, w4f, b4, w5f, b5, w6p, b6p)


if __name__ == "__main__":
    key = jax.random.PRNGKey(0)
    k_x, k_p = jax.random.split(key)

    B, C, N, K = 2, 6, 16, 8   # small toy shapes; the kernel tiles N for real sizes
    x = jax.random.normal(k_x, (B, C, N, K), dtype=jnp.float32)
    params = make_params(k_p)

    out = transform_net_tiny(x, params)
    out = jax.block_until_ready(out)
    assert out.shape == (B, 3, 3), out.shape

    ref = transform_net_tiny_reference(x, params)
    err = float(jnp.max(jnp.abs(out - ref)))
    assert err < 5e-2, f"max abs err vs reference: {err}"
    print("KERNEL_OK")
</pallas_src>

<mosaic_0001>
module attributes {stable_mosaic.version = 11 : i64} {
  func.func @_transform_net_kernel(%arg0: i32, %arg1: i32, %arg2: memref<1x8x8x16xbf16, #tpu.memory_space<vmem>>, %arg3: memref<32x8xbf16, #tpu.memory_space<vmem>>, %arg4: memref<64x32xbf16, #tpu.memory_space<vmem>>, %arg5: memref<64x1xf32, #tpu.memory_space<vmem>>, %arg6: memref<512x64xbf16, #tpu.memory_space<vmem>>, %arg7: memref<512x1xf32, #tpu.memory_space<vmem>>, %arg8: memref<64x512xf32, #tpu.memory_space<vmem>>, %arg9: memref<64x1xf32, #tpu.memory_space<vmem>>, %arg10: memref<32x64xf32, #tpu.memory_space<vmem>>, %arg11: memref<32x1xf32, #tpu.memory_space<vmem>>, %arg12: memref<16x32xf32, #tpu.memory_space<vmem>>, %arg13: memref<16x1xf32, #tpu.memory_space<vmem>>, %arg14: memref<1x16x1xf32, #tpu.memory_space<vmem>>, %arg15: memref<32x128xbf16, #tpu.memory_space<vmem>>, %arg16: memref<512x16xf32, #tpu.memory_space<vmem>>) attributes {dimension_semantics = [#tpu.dimension_semantics<parallel>, #tpu.dimension_semantics<arbitrary>], iteration_bounds = array<i64: 2, 1>, scalar_prefetch = 0 : i64, scratch_operands = 2 : i64, tpu.core_type = #tpu.core_type<tc>, window_params = [{transform_indices = @transform_0, window_bounds = array<i64: 1, 8, 8, 16>}, {pipeline_mode = #tpu.pipeline_mode<synchronous>, transform_indices = @transform_1, window_bounds = array<i64: 32, 8>}, {pipeline_mode = #tpu.pipeline_mode<synchronous>, transform_indices = @transform_2, window_bounds = array<i64: 64, 32>}, {pipeline_mode = #tpu.pipeline_mode<synchronous>, transform_indices = @transform_3, window_bounds = array<i64: 64, 1>}, {pipeline_mode = #tpu.pipeline_mode<synchronous>, transform_indices = @transform_4, window_bounds = array<i64: 512, 64>}, {pipeline_mode = #tpu.pipeline_mode<synchronous>, transform_indices = @transform_5, window_bounds = array<i64: 512, 1>}, {pipeline_mode = #tpu.pipeline_mode<synchronous>, transform_indices = @transform_6, window_bounds = array<i64: 64, 512>}, {pipeline_mode = #tpu.pipeline_mode<synchronous>, transform_indices = @transform_7, window_bounds = array<i64: 64, 1>}, {pipeline_mode = #tpu.pipeline_mode<synchronous>, transform_indices = @transform_8, window_bounds = array<i64: 32, 64>}, {pipeline_mode = #tpu.pipeline_mode<synchronous>, transform_indices = @transform_9, window_bounds = array<i64: 32, 1>}, {pipeline_mode = #tpu.pipeline_mode<synchronous>, transform_indices = @transform_10, window_bounds = array<i64: 16, 32>}, {pipeline_mode = #tpu.pipeline_mode<synchronous>, transform_indices = @transform_11, window_bounds = array<i64: 16, 1>}, {transform_indices = @transform_12, window_bounds = array<i64: 1, 16, 1>}]} {
    %c0 = arith.constant 0 : index
    %c0_0 = arith.constant 0 : index
    %0 = vector.load %arg3[%c0, %c0_0] : memref<32x8xbf16, #tpu.memory_space<vmem>>, vector<32x8xbf16>
    %c0_1 = arith.constant 0 : index
    %c0_2 = arith.constant 0 : index
    %c0_3 = arith.constant 0 : index
    %c0_4 = arith.constant 0 : index
    %1 = vector.load %arg2[%c0_1, %c0_2, %c0_3, %c0_4] : memref<1x8x8x16xbf16, #tpu.memory_space<vmem>>, vector<1x1x8x16xbf16>
    %2 = vector.shape_cast %1 : vector<1x1x8x16xbf16> to vector<8x16xbf16>
    %cst = arith.constant dense<0.000000e+00> : vector<32x16xf32>
    %3 = tpu.matmul %0, %2, %cst {dimension_numbers = #tpu.dot_dimension_numbers<[1], [0], [0], [1], [0, 0, 1, 1], [], []>} : vector<32x8xbf16>, vector<8x16xbf16>, vector<32x16xf32> -> vector<32x16xf32>
    %cst_5 = arith.constant 0.000000e+00 : f32
    %4 = vector.broadcast %cst_5 : f32 to vector<32x16xf32>
    %5 = arith.cmpf ogt, %3, %4 : vector<32x16xf32>
    %cst_6 = arith.constant 2.000000e-01 : f32
    %6 = vector.broadcast %cst_6 : f32 to vector<32x16xf32>
    %7 = arith.mulf %6, %3 : vector<32x16xf32>
    %8 = arith.select %5, %3, %7 : vector<32x16xi1>, vector<32x16xf32>
    %9 = arith.truncf %8 : vector<32x16xf32> to vector<32x16xbf16>
    %c0_7 = arith.constant 0 : index
    %c0_8 = arith.constant 0 : index
    %10 = vector.load %arg15[%c0_7, %c0_8] : memref<32x128xbf16, #tpu.memory_space<vmem>>, vector<32x16xbf16>
    tpu.vector_store %arg15[%c0_7, %c0_8], %9 {strides = array<i32>} : memref<32x128xbf16, #tpu.memory_space<vmem>>, vector<32x16xbf16>,
    %c0_9 = arith.constant 0 : index
    %c0_10 = arith.constant 0 : index
    %11 = vector.load %arg3[%c0_9, %c0_10] : memref<32x8xbf16, #tpu.memory_space<vmem>>, vector<32x8xbf16>
    %c0_11 = arith.constant 0 : index
    %c1 = arith.constant 1 : index
    %c0_12 = arith.constant 0 : index
    %c0_13 = arith.constant 0 : index
    %12 = vector.load %arg2[%c0_11, %c1, %c0_12, %c0_13] : memref<1x8x8x16xbf16, #tpu.memory_space<vmem>>, vector<1x1x8x16xbf16>
    %13 = vector.shape_cast %12 : vector<1x1x8x16xbf16> to vector<8x16xbf16>
    %cst_14 = arith.constant dense<0.000000e+00> : vector<32x16xf32>
    %14 = tpu.matmul %11, %13, %cst_14 {dimension_numbers = #tpu.dot_dimension_numbers<[1], [0], [0], [1], [0, 0, 1, 1], [], []>} : vector<32x8xbf16>, vector<8x16xbf16>, vector<32x16xf32> -> vector<32x16xf32>
    %cst_15 = arith.constant 0.000000e+00 : f32
    %15 = vector.broadcast %cst_15 : f32 to vector<32x16xf32>
    %16 = arith.cmpf ogt, %14, %15 : vector<32x16xf32>
    %cst_16 = arith.constant 2.000000e-01 : f32
    %17 = vector.broadcast %cst_16 : f32 to vector<32x16xf32>
    %18 = arith.mulf %17, %14 : vector<32x16xf32>
    %19 = arith.select %16, %14, %18 : vector<32x16xi1>, vector<32x16xf32>
    %20 = arith.truncf %19 : vector<32x16xf32> to vector<32x16xbf16>
    %c0_17 = arith.constant 0 : index
    %c16 = arith.constant 16 : index
    %21 = vector.load %arg15[%c0_17, %c16] : memref<32x128xbf16, #tpu.memory_space<vmem>>, vector<32x16xbf16>
    tpu.vector_store %arg15[%c0_17, %c16], %20 {strides = array<i32>} : memref<32x128xbf16, #tpu.memory_space<vmem>>, vector<32x16xbf16>,
    %c0_18 = arith.constant 0 : index
    %c0_19 = arith.constant 0 : index
    %22 = vector.load %arg3[%c0_18, %c0_19] : memref<32x8xbf16, #tpu.memory_space<vmem>>, vector<32x8xbf16>
    %c0_20 = arith.constant 0 : index
    %c2 = arith.constant 2 : index
    %c0_21 = arith.constant 0 : index
    %c0_22 = arith.constant 0 : index
    %23 = vector.load %arg2[%c0_20, %c2, %c0_21, %c0_22] : memref<1x8x8x16xbf16, #tpu.memory_space<vmem>>, vector<1x1x8x16xbf16>
    %24 = vector.shape_cast %23 : vector<1x1x8x16xbf16> to vector<8x16xbf16>
    %cst_23 = arith.constant dense<0.000000e+00> : vector<32x16xf32>
    %25 = tpu.matmul %22, %24, %cst_23 {dimension_numbers = #tpu.dot_dimension_numbers<[1], [0], [0], [1], [0, 0, 1, 1], [], []>} : vector<32x8xbf16>, vector<8x16xbf16>, vector<32x16xf32> -> vector<32x16xf32>
    %cst_24 = arith.constant 0.000000e+00 : f32
    %26 = vector.broadcast %cst_24 : f32 to vector<32x16xf32>
    %27 = arith.cmpf ogt, %25, %26 : vector<32x16xf32>
    %cst_25 = arith.constant 2.000000e-01 : f32
    %28 = vector.broadcast %cst_25 : f32 to vector<32x16xf32>
    %29 = arith.mulf %28, %25 : vector<32x16xf32>
    %30 = arith.select %27, %25, %29 : vector<32x16xi1>, vector<32x16xf32>
    %31 = arith.truncf %30 : vector<32x16xf32> to vector<32x16xbf16>
    %c0_26 = arith.constant 0 : index
    %c32 = arith.constant 32 : index
    %32 = vector.load %arg15[%c0_26, %c32] : memref<32x128xbf16, #tpu.memory_space<vmem>>, vector<32x16xbf16>
    tpu.vector_store %arg15[%c0_26, %c32], %31 {strides = array<i32>} : memref<32x128xbf16, #tpu.memory_space<vmem>>, vector<32x16xbf16>,
    %c0_27 = arith.constant 0 : index
    %c0_28 = arith.constant 0 : index
    %33 = vector.load %arg3[%c0_27, %c0_28] : memref<32x8xbf16, #tpu.memory_space<vmem>>, vector<32x8xbf16>
    %c0_29 = arith.constant 0 : index
    %c3 = arith.constant 3 : index
    %c0_30 = arith.constant 0 : index
    %c0_31 = arith.constant 0 : index
    %34 = vector.load %arg2[%c0_29, %c3, %c0_30, %c0_31] : memref<1x8x8x16xbf16, #tpu.memory_space<vmem>>, vector<1x1x8x16xbf16>
    %35 = vector.shape_cast %34 : vector<1x1x8x16xbf16> to vector<8x16xbf16>
    %cst_32 = arith.constant dense<0.000000e+00> : vector<32x16xf32>
    %36 = tpu.matmul %33, %35, %cst_32 {dimension_numbers = #tpu.dot_dimension_numbers<[1], [0], [0], [1], [0, 0, 1, 1], [], []>} : vector<32x8xbf16>, vector<8x16xbf16>, vector<32x16xf32> -> vector<32x16xf32>
    %cst_33 = arith.constant 0.000000e+00 : f32
    %37 = vector.broadcast %cst_33 : f32 to vector<32x16xf32>
    %38 = arith.cmpf ogt, %36, %37 : vector<32x16xf32>
    %cst_34 = arith.constant 2.000000e-01 : f32
    %39 = vector.broadcast %cst_34 : f32 to vector<32x16xf32>
    %40 = arith.mulf %39, %36 : vector<32x16xf32>
    %41 = arith.select %38, %36, %40 : vector<32x16xi1>, vector<32x16xf32>
    %42 = arith.truncf %41 : vector<32x16xf32> to vector<32x16xbf16>
    %c0_35 = arith.constant 0 : index
    %c48 = arith.constant 48 : index
    %43 = vector.load %arg15[%c0_35, %c48] : memref<32x128xbf16, #tpu.memory_space<vmem>>, vector<32x16xbf16>
    tpu.vector_store %arg15[%c0_35, %c48], %42 {strides = array<i32>} : memref<32x128xbf16, #tpu.memory_space<vmem>>, vector<32x16xbf16>,
    %c0_36 = arith.constant 0 : index
    %c0_37 = arith.constant 0 : index
    %44 = vector.load %arg3[%c0_36, %c0_37] : memref<32x8xbf16, #tpu.memory_space<vmem>>, vector<32x8xbf16>
    %c0_38 = arith.constant 0 : index
    %c4 = arith.constant 4 : index
    %c0_39 = arith.constant 0 : index
    %c0_40 = arith.constant 0 : index
    %45 = vector.load %arg2[%c0_38, %c4, %c0_39, %c0_40] : memref<1x8x8x16xbf16, #tpu.memory_space<vmem>>, vector<1x1x8x16xbf16>
    %46 = vector.shape_cast %45 : vector<1x1x8x16xbf16> to vector<8x16xbf16>
    %cst_41 = arith.constant dense<0.000000e+00> : vector<32x16xf32>
    %47 = tpu.matmul %44, %46, %cst_41 {dimension_numbers = #tpu.dot_dimension_numbers<[1], [0], [0], [1], [0, 0, 1, 1], [], []>} : vector<32x8xbf16>, vector<8x16xbf16>, vector<32x16xf32> -> vector<32x16xf32>
    %cst_42 = arith.constant 0.000000e+00 : f32
    %48 = vector.broadcast %cst_42 : f32 to vector<32x16xf32>
    %49 = arith.cmpf ogt, %47, %48 : vector<32x16xf32>
    %cst_43 = arith.constant 2.000000e-01 : f32
    %50 = vector.broadcast %cst_43 : f32 to vector<32x16xf32>
    %51 = arith.mulf %50, %47 : vector<32x16xf32>
    %52 = arith.select %49, %47, %51 : vector<32x16xi1>, vector<32x16xf32>
    %53 = arith.truncf %52 : vector<32x16xf32> to vector<32x16xbf16>
    %c0_44 = arith.constant 0 : index
    %c64 = arith.constant 64 : index
    %54 = vector.load %arg15[%c0_44, %c64] : memref<32x128xbf16, #tpu.memory_space<vmem>>, vector<32x16xbf16>
    tpu.vector_store %arg15[%c0_44, %c64], %53 {strides = array<i32>} : memref<32x128xbf16, #tpu.memory_space<vmem>>, vector<32x16xbf16>,
    %c0_45 = arith.constant 0 : index
    %c0_46 = arith.constant 0 : index
    %55 = vector.load %arg3[%c0_45, %c0_46] : memref<32x8xbf16, #tpu.memory_space<vmem>>, vector<32x8xbf16>
    %c0_47 = arith.constant 0 : index
    %c5 = arith.constant 5 : index
    %c0_48 = arith.constant 0 : index
    %c0_49 = arith.constant 0 : index
    %56 = vector.load %arg2[%c0_47, %c5, %c0_48, %c0_49] : memref<1x8x8x16xbf16, #tpu.memory_space<vmem>>, vector<1x1x8x16xbf16>
    %57 = vector.shape_cast %56 : vector<1x1x8x16xbf16> to vector<8x16xbf16>
    %cst_50 = arith.constant dense<0.000000e+00> : vector<32x16xf32>
    %58 = tpu.matmul %55, %57, %cst_50 {dimension_numbers = #tpu.dot_dimension_numbers<[1], [0], [0], [1], [0, 0, 1, 1], [], []>} : vector<32x8xbf16>, vector<8x16xbf16>, vector<32x16xf32> -> vector<32x16xf32>
    %cst_51 = arith.constant 0.000000e+00 : f32
    %59 = vector.broadcast %cst_51 : f32 to vector<32x16xf32>
    %60 = arith.cmpf ogt, %58, %59 : vector<32x16xf32>
    %cst_52 = arith.constant 2.000000e-01 : f32
    %61 = vector.broadcast %cst_52 : f32 to vector<32x16xf32>
    %62 = arith.mulf %61, %58 : vector<32x16xf32>
    %63 = arith.select %60, %58, %62 : vector<32x16xi1>, vector<32x16xf32>
    %64 = arith.truncf %63 : vector<32x16xf32> to vector<32x16xbf16>
    %c0_53 = arith.constant 0 : index
    %c80 = arith.constant 80 : index
    %65 = vector.load %arg15[%c0_53, %c80] : memref<32x128xbf16, #tpu.memory_space<vmem>>, vector<32x16xbf16>
    tpu.vector_store %arg15[%c0_53, %c80], %64 {strides = array<i32>} : memref<32x128xbf16, #tpu.memory_space<vmem>>, vector<32x16xbf16>,
    %c0_54 = arith.constant 0 : index
    %c0_55 = arith.constant 0 : index
    %66 = vector.load %arg3[%c0_54, %c0_55] : memref<32x8xbf16, #tpu.memory_space<vmem>>, vector<32x8xbf16>
    %c0_56 = arith.constant 0 : index
    %c6 = arith.constant 6 : index
    %c0_57 = arith.constant 0 : index
    %c0_58 = arith.constant 0 : index
    %67 = vector.load %arg2[%c0_56, %c6, %c0_57, %c0_58] : memref<1x8x8x16xbf16, #tpu.memory_space<vmem>>, vector<1x1x8x16xbf16>
    %68 = vector.shape_cast %67 : vector<1x1x8x16xbf16> to vector<8x16xbf16>
    %cst_59 = arith.constant dense<0.000000e+00> : vector<32x16xf32>
    %69 = tpu.matmul %66, %68, %cst_59 {dimension_numbers = #tpu.dot_dimension_numbers<[1], [0], [0], [1], [0, 0, 1, 1], [], []>} : vector<32x8xbf16>, vector<8x16xbf16>, vector<32x16xf32> -> vector<32x16xf32>
    %cst_60 = arith.constant 0.000000e+00 : f32
    %70 = vector.broadcast %cst_60 : f32 to vector<32x16xf32>
    %71 = arith.cmpf ogt, %69, %70 : vector<32x16xf32>
    %cst_61 = arith.constant 2.000000e-01 : f32
    %72 = vector.broadcast %cst_61 : f32 to vector<32x16xf32>
    %73 = arith.mulf %72, %69 : vector<32x16xf32>
    %74 = arith.select %71, %69, %73 : vector<32x16xi1>, vector<32x16xf32>
    %75 = arith.truncf %74 : vector<32x16xf32> to vector<32x16xbf16>
    %c0_62 = arith.constant 0 : index
    %c96 = arith.constant 96 : index
    %76 = vector.load %arg15[%c0_62, %c96] : memref<32x128xbf16, #tpu.memory_space<vmem>>, vector<32x16xbf16>
    tpu.vector_store %arg15[%c0_62, %c96], %75 {strides = array<i32>} : memref<32x128xbf16, #tpu.memory_space<vmem>>, vector<32x16xbf16>,
    %c0_63 = arith.constant 0 : index
    %c0_64 = arith.constant 0 : index
    %77 = vector.load %arg3[%c0_63, %c0_64] : memref<32x8xbf16, #tpu.memory_space<vmem>>, vector<32x8xbf16>
    %c0_65 = arith.constant 0 : index
    %c7 = arith.constant 7 : index
    %c0_66 = arith.constant 0 : index
    %c0_67 = arith.constant 0 : index
    %78 = vector.load %arg2[%c0_65, %c7, %c0_66, %c0_67] : memref<1x8x8x16xbf16, #tpu.memory_space<vmem>>, vector<1x1x8x16xbf16>
    %79 = vector.shape_cast %78 : vector<1x1x8x16xbf16> to vector<8x16xbf16>
    %cst_68 = arith.constant dense<0.000000e+00> : vector<32x16xf32>
    %80 = tpu.matmul %77, %79, %cst_68 {dimension_numbers = #tpu.dot_dimension_numbers<[1], [0], [0], [1], [0, 0, 1, 1], [], []>} : vector<32x8xbf16>, vector<8x16xbf16>, vector<32x16xf32> -> vector<32x16xf32>
    %cst_69 = arith.constant 0.000000e+00 : f32
    %81 = vector.broadcast %cst_69 : f32 to vector<32x16xf32>
    %82 = arith.cmpf ogt, %80, %81 : vector<32x16xf32>
    %cst_70 = arith.constant 2.000000e-01 : f32
    %83 = vector.broadcast %cst_70 : f32 to vector<32x16xf32>
    %84 = arith.mulf %83, %80 : vector<32x16xf32>
    %85 = arith.select %82, %80, %84 : vector<32x16xi1>, vector<32x16xf32>
    %86 = arith.truncf %85 : vector<32x16xf32> to vector<32x16xbf16>
    %c0_71 = arith.constant 0 : index
    %c112 = arith.constant 112 : index
    %87 = vector.load %arg15[%c0_71, %c112] : memref<32x128xbf16, #tpu.memory_space<vmem>>, vector<32x16xbf16>
    tpu.vector_store %arg15[%c0_71, %c112], %86 {strides = array<i32>} : memref<32x128xbf16, #tpu.memory_space<vmem>>, vector<32x16xbf16>,
    %c0_72 = arith.constant 0 : index
    %c0_73 = arith.constant 0 : index
    %88 = vector.load %arg4[%c0_72, %c0_73] : memref<64x32xbf16, #tpu.memory_space<vmem>>, vector<64x32xbf16>
    %c0_74 = arith.constant 0 : index
    %c0_75 = arith.constant 0 : index
    %89 = vector.load %arg15[%c0_74, %c0_75] : memref<32x128xbf16, #tpu.memory_space<vmem>>, vector<32x128xbf16>
    %cst_76 = arith.constant dense<0.000000e+00> : vector<64x128xf32>
    %90 = tpu.matmul %88, %89, %cst_76 {dimension_numbers = #tpu.dot_dimension_numbers<[1], [0], [0], [1], [0, 0, 1, 1], [], []>} : vector<64x32xbf16>, vector<32x128xbf16>, vector<64x128xf32> -> vector<64x128xf32>
    %91 = vector.extract_strided_slice %90 {offsets = [0, 0], sizes = [64, 16], strides = [1, 1]} : vector<64x128xf32> to vector<64x16xf32>
    %92 = vector.extract_strided_slice %90 {offsets = [0, 16], sizes = [64, 16], strides = [1, 1]} : vector<64x128xf32> to vector<64x16xf32>
    %93 = arith.maximumf %91, %92 : vector<64x16xf32>
    %94 = vector.extract_strided_slice %90 {offsets = [0, 32], sizes = [64, 16], strides = [1, 1]} : vector<64x128xf32> to vector<64x16xf32>
    %95 = arith.maximumf %93, %94 : vector<64x16xf32>
    %96 = vector.extract_strided_slice %90 {offsets = [0, 48], sizes = [64, 16], strides = [1, 1]} : vector<64x128xf32> to vector<64x16xf32>
    %97 = arith.maximumf %95, %96 : vector<64x16xf32>
    %98 = vector.extract_strided_slice %90 {offsets = [0, 64], sizes = [64, 16], strides = [1, 1]} : vector<64x128xf32> to vector<64x16xf32>
    %99 = arith.maximumf %97, %98 : vector<64x16xf32>
    %100 = vector.extract_strided_slice %90 {offsets = [0, 80], sizes = [64, 16], strides = [1, 1]} : vector<64x128xf32> to vector<64x16xf32>
    %101 = arith.maximumf %99, %100 : vector<64x16xf32>
    %102 = vector.extract_strided_slice %90 {offsets = [0, 96], sizes = [64, 16], strides = [1, 1]} : vector<64x128xf32> to vector<64x16xf32>
    %103 = arith.maximumf %101, %102 : vector<64x16xf32>
    %104 = vector.extract_strided_slice %90 {offsets = [0, 112], sizes = [64, 16], strides = [1, 1]} : vector<64x128xf32> to vector<64x16xf32>
    %105 = arith.maximumf %103, %104 : vector<64x16xf32>
    %c0_77 = arith.constant 0 : index
    %c0_78 = arith.constant 0 : index
    %106 = vector.load %arg5[%c0_77, %c0_78] : memref<64x1xf32, #tpu.memory_space<vmem>>, vector<64x1xf32>
    %107 = vector.broadcast %106 : vector<64x1xf32> to vector<64x16xf32>
    %108 = arith.addf %105, %107 : vector<64x16xf32>
    %cst_79 = arith.constant 0.000000e+00 : f32
    %109 = vector.broadcast %cst_79 : f32 to vector<64x16xf32>
    %110 = arith.cmpf ogt, %108, %109 : vector<64x16xf32>
    %cst_80 = arith.constant 2.000000e-01 : f32
    %111 = vector.broadcast %cst_80 : f32 to vector<64x16xf32>
    %112 = arith.mulf %111, %108 : vector<64x16xf32>
    %113 = arith.select %110, %108, %112 : vector<64x16xi1>, vector<64x16xf32>
    %114 = arith.truncf %113 : vector<64x16xf32> to vector<64x16xbf16>
    %c0_81 = arith.constant 0 : index
    %c0_82 = arith.constant 0 : index
    %115 = vector.load %arg6[%c0_81, %c0_82] : memref<512x64xbf16, #tpu.memory_space<vmem>>, vector<512x64xbf16>
    %cst_83 = arith.constant dense<0.000000e+00> : vector<512x16xf32>
    %116 = tpu.matmul %115, %114, %cst_83 {dimension_numbers = #tpu.dot_dimension_numbers<[1], [0], [0], [1], [0, 0, 1, 1], [], []>} : vector<512x64xbf16>, vector<64x16xbf16>, vector<512x16xf32> -> vector<512x16xf32>
    %c0_i32 = arith.constant 0 : i32
    %117 = arith.cmpi eq, %arg1, %c0_i32 : i32
    %118 = arith.extui %117 : i1 to i32
    %c0_i32_84 = arith.constant 0 : i32
    %119 = arith.cmpi ne, %118, %c0_i32_84 : i32
    scf.if %119 {
      %c0_89 = arith.constant 0 : index
      %c0_90 = arith.constant 0 : index
      %126 = vector.load %arg16[%c0_89, %c0_90] : memref<512x16xf32, #tpu.memory_space<vmem>>, vector<512x16xf32>
      tpu.vector_store %arg16[%c0_89, %c0_90], %116 {strides = array<i32>} : memref<512x16xf32, #tpu.memory_space<vmem>>, vector<512x16xf32>,
    } else {
    }
    %c0_i32_85 = arith.constant 0 : i32
    %120 = arith.cmpi ne, %arg1, %c0_i32_85 : i32
    %121 = arith.extui %120 : i1 to i32
    %c0_i32_86 = arith.constant 0 : i32
    %122 = arith.cmpi ne, %121, %c0_i32_86 : i32
    scf.if %122 {
      %c0_89 = arith.constant 0 : index
      %c0_90 = arith.constant 0 : index
      %126 = vector.load %arg16[%c0_89, %c0_90] : memref<512x16xf32, #tpu.memory_space<vmem>>, vector<512x16xf32>
      %127 = arith.maximumf %126, %116 : vector<512x16xf32>
      %c0_91 = arith.constant 0 : index
      %c0_92 = arith.constant 0 : index
      %128 = vector.load %arg16[%c0_91, %c0_92] : memref<512x16xf32, #tpu.memory_space<vmem>>, vector<512x16xf32>
      tpu.vector_store %arg16[%c0_91, %c0_92], %127 {strides = array<i32>} : memref<512x16xf32, #tpu.memory_space<vmem>>, vector<512x16xf32>,
    } else {
    }
    %c0_i32_87 = arith.constant 0 : i32
    %123 = arith.cmpi eq, %arg1, %c0_i32_87 : i32
    %124 = arith.extui %123 : i1 to i32
    %c0_i32_88 = arith.constant 0 : i32
    %125 = arith.cmpi ne, %124, %c0_i32_88 : i32
    scf.if %125 {
      %c0_89 = arith.constant 0 : index
      %c0_90 = arith.constant 0 : index
      %126 = vector.load %arg16[%c0_89, %c0_90] : memref<512x16xf32, #tpu.memory_space<vmem>>, vector<512x16xf32>
      %cst_91 = arith.constant dense<0xFF800000> : vector<512xf32>
      %127 = vector.multi_reduction <maximumf>, %126, %cst_91 [1] : vector<512x16xf32> to vector<512xf32>
      %128 = vector.shape_cast %127 : vector<512xf32> to vector<512x1xf32>
      %c0_92 = arith.constant 0 : index
      %c0_93 = arith.constant 0 : index
      %129 = vector.load %arg7[%c0_92, %c0_93] : memref<512x1xf32, #tpu.memory_space<vmem>>, vector<512x1xf32>
      %130 = arith.addf %128, %129 : vector<512x1xf32>
      %cst_94 = arith.constant 0.000000e+00 : f32
      %131 = vector.broadcast %cst_94 : f32 to vector<512x1xf32>
      %132 = arith.cmpf ogt, %130, %131 : vector<512x1xf32>
      %cst_95 = arith.constant 2.000000e-01 : f32
      %133 = vector.broadcast %cst_95 : f32 to vector<512x1xf32>
      %134 = arith.mulf %133, %130 : vector<512x1xf32>
      %135 = arith.select %132, %130, %134 : vector<512x1xi1>, vector<512x1xf32>
      %c0_96 = arith.constant 0 : index
      %c0_97 = arith.constant 0 : index
      %136 = vector.load %arg8[%c0_96, %c0_97] : memref<64x512xf32, #tpu.memory_space<vmem>>, vector<64x512xf32>
      %cst_98 = arith.constant dense<0.000000e+00> : vector<64x1xf32>
      %137 = tpu.matmul %136, %135, %cst_98 {dimension_numbers = #tpu.dot_dimension_numbers<[1], [0], [0], [1], [0, 0, 1, 1], [], []>} : vector<64x512xf32>, vector<512x1xf32>, vector<64x1xf32> -> vector<64x1xf32>
      %c0_99 = arith.constant 0 : index
      %c0_100 = arith.constant 0 : index
      %138 = vector.load %arg9[%c0_99, %c0_100] : memref<64x1xf32, #tpu.memory_space<vmem>>, vector<64x1xf32>
      %139 = arith.addf %137, %138 : vector<64x1xf32>
      %cst_101 = arith.constant 0.000000e+00 : f32
      %140 = vector.broadcast %cst_101 : f32 to vector<64x1xf32>
      %141 = arith.cmpf ogt, %139, %140 : vector<64x1xf32>
      %cst_102 = arith.constant 2.000000e-01 : f32
      %142 = vector.broadcast %cst_102 : f32 to vector<64x1xf32>
      %143 = arith.mulf %142, %139 : vector<64x1xf32>
      %144 = arith.select %141, %139, %143 : vector<64x1xi1>, vector<64x1xf32>
      %c0_103 = arith.constant 0 : index
      %c0_104 = arith.constant 0 : index
      %145 = vector.load %arg10[%c0_103, %c0_104] : memref<32x64xf32, #tpu.memory_space<vmem>>, vector<32x64xf32>
      %cst_105 = arith.constant dense<0.000000e+00> : vector<32x1xf32>
      %146 = tpu.matmul %145, %144, %cst_105 {dimension_numbers = #tpu.dot_dimension_numbers<[1], [0], [0], [1], [0, 0, 1, 1], [], []>} : vector<32x64xf32>, vector<64x1xf32>, vector<32x1xf32> -> vector<32x1xf32>
      %c0_106 = arith.constant 0 : index
      %c0_107 = arith.constant 0 : index
      %147 = vector.load %arg11[%c0_106, %c0_107] : memref<32x1xf32, #tpu.memory_space<vmem>>, vector<32x1xf32>
      %148 = arith.addf %146, %147 : vector<32x1xf32>
      %cst_108 = arith.constant 0.000000e+00 : f32
      %149 = vector.broadcast %cst_108 : f32 to vector<32x1xf32>
      %150 = arith.cmpf ogt, %148, %149 : vector<32x1xf32>
      %cst_109 = arith.constant 2.000000e-01 : f32
      %151 = vector.broadcast %cst_109 : f32 to vector<32x1xf32>
      %152 = arith.mulf %151, %148 : vector<32x1xf32>
      %153 = arith.select %150, %148, %152 : vector<32x1xi1>, vector<32x1xf32>
      %c0_110 = arith.constant 0 : index
      %c0_111 = arith.constant 0 : index
      %154 = vector.load %arg12[%c0_110, %c0_111] : memref<16x32xf32, #tpu.memory_space<vmem>>, vector<16x32xf32>
      %cst_112 = arith.constant dense<0.000000e+00> : vector<16x1xf32>
      %155 = tpu.matmul %154, %153, %cst_112 {dimension_numbers = #tpu.dot_dimension_numbers<[1], [0], [0], [1], [0, 0, 1, 1], [], []>} : vector<16x32xf32>, vector<32x1xf32>, vector<16x1xf32> -> vector<16x1xf32>
      %c0_113 = arith.constant 0 : index
      %c0_114 = arith.constant 0 : index
      %156 = vector.load %arg13[%c0_113, %c0_114] : memref<16x1xf32, #tpu.memory_space<vmem>>, vector<16x1xf32>
      %157 = arith.addf %155, %156 : vector<16x1xf32>
      %c0_115 = arith.constant 0 : index
      %c0_116 = arith.constant 0 : index
      %c0_117 = arith.constant 0 : index
      %158 = vector.load %arg14[%c0_115, %c0_116, %c0_117] : memref<1x16x1xf32, #tpu.memory_space<vmem>>, vector<1x16x1xf32>
      %159 = vector.shape_cast %158 : vector<1x16x1xf32> to vector<16x1xf32>
      %160 = vector.shape_cast %157 : vector<16x1xf32> to vector<1x16x1xf32>
      tpu.vector_store %arg14[%c0_115, %c0_116, %c0_117], %160 {strides = array<i32>} : memref<1x16x1xf32, #tpu.memory_space<vmem>>, vector<1x16x1xf32>,
    } else {
    }
    return
  }
  func.func @transform_0(%arg0: i32, %arg1: i32) -> (i32, i32, i32, i32) {
    %c0_i32 = arith.constant 0 : i32
    %c0_i32_0 = arith.constant 0 : i32
    %c0_i32_1 = arith.constant 0 : i32
    return %arg0, %c0_i32, %c0_i32_0, %arg1 : i32, i32, i32, i32
  }
  func.func @transform_1(%arg0: i32, %arg1: i32) -> (i32, i32) {
    %c0_i32 = arith.constant 0 : i32
    %c0_i32_0 = arith.constant 0 : i32
    %c0_i32_1 = arith.constant 0 : i32
    return %c0_i32, %c0_i32_0 : i32, i32
  }
  func.func @transform_2(%arg0: i32, %arg1: i32) -> (i32, i32) {
    %c0_i32 = arith.constant 0 : i32
    %c0_i32_0 = arith.constant 0 : i32
    %c0_i32_1 = arith.constant 0 : i32
    return %c0_i32, %c0_i32_0 : i32, i32
  }
  func.func @transform_3(%arg0: i32, %arg1: i32) -> (i32, i32) {
    %c0_i32 = arith.constant 0 : i32
    %c0_i32_0 = arith.constant 0 : i32
    %c0_i32_1 = arith.constant 0 : i32
    return %c0_i32, %c0_i32_0 : i32, i32
  }
  func.func @transform_4(%arg0: i32, %arg1: i32) -> (i32, i32) {
    %c0_i32 = arith.constant 0 : i32
    %c0_i32_0 = arith.constant 0 : i32
    %c0_i32_1 = arith.constant 0 : i32
    return %c0_i32, %c0_i32_0 : i32, i32
  }
  func.func @transform_5(%arg0: i32, %arg1: i32) -> (i32, i32) {
    %c0_i32 = arith.constant 0 : i32
    %c0_i32_0 = arith.constant 0 : i32
    %c0_i32_1 = arith.constant 0 : i32
    return %c0_i32, %c0_i32_0 : i32, i32
  }
  func.func @transform_6(%arg0: i32, %arg1: i32) -> (i32, i32) {
    %c0_i32 = arith.constant 0 : i32
    %c0_i32_0 = arith.constant 0 : i32
    %c0_i32_1 = arith.constant 0 : i32
    return %c0_i32, %c0_i32_0 : i32, i32
  }
  func.func @transform_7(%arg0: i32, %arg1: i32) -> (i32, i32) {
    %c0_i32 = arith.constant 0 : i32
    %c0_i32_0 = arith.constant 0 : i32
    %c0_i32_1 = arith.constant 0 : i32
    return %c0_i32, %c0_i32_0 : i32, i32
  }
  func.func @transform_8(%arg0: i32, %arg1: i32) -> (i32, i32) {
    %c0_i32 = arith.constant 0 : i32
    %c0_i32_0 = arith.constant 0 : i32
    %c0_i32_1 = arith.constant 0 : i32
    return %c0_i32, %c0_i32_0 : i32, i32
  }
  func.func @transform_9(%arg0: i32, %arg1: i32) -> (i32, i32) {
    %c0_i32 = arith.constant 0 : i32
    %c0_i32_0 = arith.constant 0 : i32
    %c0_i32_1 = arith.constant 0 : i32
    return %c0_i32, %c0_i32_0 : i32, i32
  }
  func.func @transform_10(%arg0: i32, %arg1: i32) -> (i32, i32) {
    %c0_i32 = arith.constant 0 : i32
    %c0_i32_0 = arith.constant 0 : i32
    %c0_i32_1 = arith.constant 0 : i32
    return %c0_i32, %c0_i32_0 : i32, i32
  }
  func.func @transform_11(%arg0: i32, %arg1: i32) -> (i32, i32) {
    %c0_i32 = arith.constant 0 : i32
    %c0_i32_0 = arith.constant 0 : i32
    %c0_i32_1 = arith.constant 0 : i32
    return %c0_i32, %c0_i32_0 : i32, i32
  }
  func.func @transform_12(%arg0: i32, %arg1: i32) -> (i32, i32, i32) {
    %c0_i32 = arith.constant 0 : i32
    %c0_i32_0 = arith.constant 0 : i32
    %c0_i32_1 = arith.constant 0 : i32
    return %arg0, %c0_i32, %c0_i32_0 : i32, i32, i32
  }
}

</mosaic_0001>

<bundles_post_ra>
// kernel: tpu_custom_call.1
= control target key start
LH: loop header
LB: loop body
LE: loop exit
PB: predicated region body
PF: predicated region fallthrough
CT: control target
= control target key end

     0   :  { %s4543_s21 = smov 0   ;;  %s4545_s22 = smov 0   ;;  %s5769_s0 = inlined_call_operand.vmem [shape: bf16[2,8,8,16], index: 0, kind: input, shape index: {}]   ;;  %s5770_s1 = inlined_call_operand.vmem [shape: bf16[32,8], index: 1, kind: input, shape index: {}]   ;;  %s5771_s2 = inlined_call_operand.vmem [shape: bf16[64,32], index: 2, kind: input, shape index: {}]   ;;  %s5772_s3 = inlined_call_operand.vmem [shape: f32[64,1], index: 3, kind: input, shape index: {}]   ;;  %s5773_s4 = inlined_call_operand.vmem [shape: bf16[512,64], index: 4, kind: input, shape index: {}]   ;;  %s5774_s5 = inlined_call_operand.vmem [shape: f32[512,1], index: 5, kind: input, shape index: {}]   ;;  %s5775_s6 = inlined_call_operand.vmem [shape: f32[64,512], index: 6, kind: input, shape index: {}]   ;;  %s5776_s7 = inlined_call_operand.vmem [shape: f32[64,1], index: 7, kind: input, shape index: {}]   ;;  %s5777_s8 = inlined_call_operand.vmem [shape: f32[32,64], index: 8, kind: input, shape index: {}]   ;;  %s5778_s9 = inlined_call_operand.vmem [shape: f32[32,1], index: 9, kind: input, shape index: {}]   ;;  %s5779_s10 = inlined_call_operand.vmem [shape: f32[16,32], index: 10, kind: input, shape index: {}]   ;;  %s5780_s11 = inlined_call_operand.vmem [shape: f32[16,1], index: 11, kind: input, shape index: {}]   ;;  %s5781_s12 = inlined_call_operand.vmem [shape: f32[2,16,1], index: 12, kind: output, shape index: {}]  }
   0x1   :  { %s4547_s23 = smov 0  }
   0x2 LB: > { %s34_s24 = sadd.s32 1, %s4464_s22  ;;  %p3797_p0 = scmp.ge.s32.totalorder %s4468_s23, 1  ;;  %s4468_s23 = sphi %s4547_s23, %s22_s23   ;;  %s4464_s22 = sphi %s4545_s22, %s5792_s22   ;;  %s4460_s21 = sphi %s4543_s21, %s5791_s21  }
   0x3   : > { %p36_p1 = scmp.ge.s32.totalorder %s34_s24, 2  ;;  %p379_p2 = scmp.lt.s32.totalorder %s4468_s23, 3 }
   0x5   : > { %s5794_s24 = smov (%p36_p1, %s34_s24), 0  ;;  %p380_p3 = pnand %p3797_p0, %p379_p2 }
   0x7   : > { %383 = sbr.rel (%p380_p3) target bundleno = 2015 (0x7df), region = 68 }
   0xc   : > { %p424_p4 = scmp.lt.s32.totalorder %s4460_s21, 1  ;;  %v4392_v0 = vld [vmem:[%s5770_s1] sm:$0xff]   ;;  %vm453_vm0 = vcmask 64512   ;;  %vm460_vm1 = vcmask 1043456   ;;  %v4394_v7 = vld [vmem:[%s5770_s1 + $0x8] sm:$0xff]   ;;  %vm541_vm5 = vcmask 125952  }
   0xd   : > { %v4393_v1 = vld [vmem:[%s5770_s1] sm:$0xff]   ;;  %4187 = vmatprep.mubr.msk.bf16.mxu0 %vm453_vm0, %v4392_v0  ;;  %v4395_v8 = vld [vmem:[%s5770_s1 + $0x8] sm:$0xff]   ;;  %s4470_s16 = smov 80   ;;  %s5782_s17 = smov 16  }
   0xe   : > { %s5796_s21 = smov (!%p424_p4, %s4460_s21), 1  ;;  %4217 = vmatprep.mubr.msk.bf16.mxu1 %vm453_vm0, %v4393_v1  ;;  %v4396_v11 = vld [vmem:[%s5770_s1] sm:$0xff]   ;;  %v4398_v15 = vld [vmem:[%s5770_s1 + $0x8] sm:$0xff]   ;;  %s4473_s18 = smov 32  }
   0xf   : > { %s3955_s29 = sshll.u32 %s5796_s21, 5  ;;  %v4397_v13 = vld [vmem:[%s5770_s1] sm:$0xff]   ;;  %v4399_v16 = vld [vmem:[%s5770_s1 + $0x8] sm:$0xff]   ;;  %s4474_s19 = smov 48  }
  0x10   : > { %s4575_s14 = scalar_lea.vmem %s5769_s0, %s3955_s29  ;;  %v4400_v18 = vld [vmem:[%s5770_s1] sm:$0xff]   ;;  %v4401_v25 = vld [vmem:[%s5770_s1 + $0x8] sm:$0xff]   ;;  %s4475_s20 = smov 64  }
  0x11   : > { %v442_v2 = vld [vmem:[%s4575_s14] sm:$0xf]  ;;  %v3846_v3 = vld [vmem:[%s4575_s14 + $0x14] sm:$0xf]  ;;  %v3810_v4 = vld [vmem:[%s4575_s14 + $0x4] sm:$0xf] }
  0x12   : > { %4350 = vmatprep.subr.msk.bf16.mxu0 %vm460_vm1, %v442_v2  ;;  %4355 = vmatprep.subr.msk.bf16.mxu1 %vm460_vm1, %v3846_v3  ;;  %v462_v5 = vsel %vm460_vm1, %v442_v2, 0  ;;  %v1029_v6 = vsel %vm460_vm1, %v3846_v3, 0  ;;  %v3864_v9 = vld [vmem:[%s4575_s14 + $0x1c] sm:$0xf]  ;;  %v569_v10 = vsel %vm460_vm1, %v3810_v4, 0  ;;  %v4402_v26 = vld [vmem:[%s5770_s1] sm:$0xff]  }
  0x13   : > { %4186 = vmatpush3.bf16.msra.mxu0 %v462_v5  ;;  %4216 = vmatpush3.bf16.msra.mxu1 %v1029_v6  ;;  %v1259_v12 = vsel %vm460_vm1, %v3864_v9, 0  ;;  %v3819_v14 = vld [vmem:[%s4575_s14 + $0x8] sm:$0xf]  ;;  %v3828_v19 = vld [vmem:[%s4575_s14 + $0xc] sm:$0xf]  ;;  %v4404_v28 = vld [vmem:[%s5770_s1] sm:$0xff]  }
  0x14   : > { %4351 = vmatprep.subr.msk.bf16.mxu0 %vm460_vm1, %v3810_v4  ;;  %4357 = vmatprep.subr.msk.bf16.mxu1 %vm460_vm1, %v3864_v9  ;;  %v684_v17 = vsel %vm460_vm1, %v3819_v14, 0  ;;  %v3837_v20 = vld [vmem:[%s4575_s14 + $0x10] sm:$0xf]  ;;  %v3855_v21 = vld [vmem:[%s4575_s14 + $0x18] sm:$0xf]  ;;  %v799_v22 = vsel %vm460_vm1, %v3828_v19, 0 }
  0x15   : > { %v914_v23 = vsel %vm460_vm1, %v3837_v20, 0  ;;  %v1144_v24 = vsel %vm460_vm1, %v3855_v21, 0  ;;  %v4403_v27 = vld [vmem:[%s5770_s1 + $0x8] sm:$0xff]   ;;  %v4406_v30 = vld [vmem:[%s5770_s1] sm:$0xff]   ;;  %s4472_s14 = smov 112   ;;  %s4476_s25 = smov 96  }
  0x16   : > { %4188 = vmatmul.mubr.msk.bf16.vlgmr.msra.gmra.mxu0 %vm453_vm0, %v4394_v7  ;;  %4218 = vmatmul.mubr.msk.bf16.vlgmr.msra.gmra.mxu1 %vm453_vm0, %v4395_v8  ;;  %v4405_v29 = vld [vmem:[%s5770_s1 + $0x8] sm:$0xff]   ;;  %s5784_s30 = smov 16  }
  0x17   : > { %4192 = vmatpush3.bf16.msra.mxu0 %v569_v10  ;;  %4228 = vmatpush3.bf16.msra.mxu1 %v1259_v12  ;;  %v4407_v31 = vld [vmem:[%s5770_s1 + $0x8] sm:$0xff]  }
  0x18   : > { %4193 = vmatprep.mubr.msk.bf16.mxu0 %vm453_vm0, %v4396_v11  ;;  %4229 = vmatprep.mubr.msk.bf16.mxu1 %vm453_vm0, %v4397_v13 }
  0x19   : > { %4352 = vmatprep.subr.msk.bf16.mxu0 %vm460_vm1, %v3819_v14 }
  0x1e   : > { %4194 = vmatmul.mubr.msk.bf16.vlgmr.msra.gmra.mxu0 %vm453_vm0, %v4398_v15  ;;  %4230 = vmatmul.mubr.msk.bf16.vlgmr.msra.gmra.mxu1 %vm453_vm0, %v4399_v16 }
  0x1f   : > { %4198 = vmatpush3.bf16.msra.mxu0 %v684_v17  ;;  %4199 = vmatprep.mubr.msk.bf16.mxu0 %vm453_vm0, %v4400_v18 }
  0x20   : > { %4353 = vmatprep.subr.msk.bf16.mxu0 %vm460_vm1, %v3828_v19 }
  0x26   : > { %4200 = vmatmul.mubr.msk.bf16.vlgmr.msra.gmra.mxu0 %vm453_vm0, %v4401_v25 }
  0x27   : > { %4204 = vmatpush3.bf16.msra.mxu0 %v799_v22  ;;  %4205 = vmatprep.mubr.msk.bf16.mxu0 %vm453_vm0, %v4402_v26 }
  0x28   : > { %4354 = vmatprep.subr.msk.bf16.mxu0 %vm460_vm1, %v3837_v20 }
  0x2e   : > { %4206 = vmatmul.mubr.msk.bf16.vlgmr.msra.gmra.mxu0 %vm453_vm0, %v4403_v27 }
  0x2f   : > { %4210 = vmatpush3.bf16.msra.mxu0 %v914_v23  ;;  %4211 = vmatprep.mubr.msk.bf16.mxu0 %vm453_vm0, %v4404_v28 }
  0x30   : > { %4356 = vmatprep.subr.msk.bf16.mxu0 %vm460_vm1, %v3855_v21 }
  0x36   : > { %4212 = vmatmul.mubr.msk.bf16.vlgmr.msra.gmra.mxu0 %vm453_vm0, %v4405_v29 }
  0x37   : > { %4222 = vmatpush3.bf16.msra.mxu0 %v1144_v24  ;;  %4223 = vmatprep.mubr.msk.bf16.mxu0 %vm453_vm0, %v4406_v30 }
  0x3e   : > { %4224 = vmatmul.mubr.msk.bf16.vlgmr.msra.gmra.mxu0 %vm453_vm0, %v4407_v31 }
  0xd6   : > { %v4189_v32 = vpop.f32.mrf.mxu0  ;;  %v4219_v33 = vpop.f32.mrf.mxu1 }
  0xd7   : > { %vm515_vm2 = vcmp.gt.f32.partialorder %v4189_v32, 0.0  ;;  %v519_v34 = vmul.f32 0.2, %v4189_v32  ;;  %vm1082_vm3 = vcmp.gt.f32.partialorder %v4219_v33, 0.0  ;;  %v1086_v35 = vmul.f32 0.2, %v4219_v33 }
  0xd8   : > { %v498_v36 = vpop.f32.mrf.mxu0  ;;  %v1065_v37 = vpop.f32.mrf.mxu1 }
  0xd9   : > { %v523_v38 = vsel %vm515_vm2, %v4189_v32, %v519_v34  ;;  %vm513_vm4 = vcmp.gt.f32.partialorder %v498_v36, 0.0  ;;  %v517_v39 = vmul.f32 0.2, %v498_v36  ;;  %vm1080_vm6 = vcmp.gt.f32.partialorder %v1065_v37, 0.0 }
  0xda   : > { %v3959_v40 = vpack.c.bf16 %v523_v38, %v523_v38  ;;  %v1084_v41 = vmul.f32 0.2, %v1065_v37  ;;  %v4190_v42 = vpop.f32.mrf.mxu0  ;;  %v4220_v43 = vpop.f32.mrf.mxu1  ;;  %v1090_v44 = vsel %vm1082_vm3, %v4219_v33, %v1086_v35 }
  0xdb   : > { %v521_v45 = vsel %vm513_vm4, %v498_v36, %v517_v39  ;;  %vm516_vm7 = vcmp.gt.f32.partialorder %v4190_v42, 0.0  ;;  %v520_v46 = vmul.f32 0.2, %v4190_v42  ;;  %vm1083_vm8 = vcmp.gt.f32.partialorder %v4220_v43, 0.0 }
  0xdc   : > { %v3957_v47 = vpack.c.bf16 %v521_v45, %v521_v45  ;;  %v1087_v48 = vmul.f32 0.2, %v4220_v43  ;;  %v3979_v49 = vpack.c.bf16 %v1090_v44, %v1090_v44  ;;  %v501_v50 = vpop.f32.mrf.mxu0  ;;  %v1068_v51 = vpop.f32.mrf.mxu1  ;;  %544 = vst.msk [vmem:[#allocation2 + $0x8] sm:$0xf] %vm541_vm5, %v3959_v40  ;;  %v1088_v52 = vsel %vm1080_vm6, %v1065_v37, %v1084_v41 }
  0xdd   : > { %v524_v53 = vsel %vm516_vm7, %v4190_v42, %v520_v46  ;;  %vm514_vm9 = vcmp.gt.f32.partialorder %v501_v50, 0.0  ;;  %v518_v54 = vmul.f32 0.2, %v501_v50  ;;  %vm1081_vm10 = vcmp.gt.f32.partialorder %v1068_v51, 0.0 }
  0xde   : > { %v3960_v55 = vpack.c.bf16 %v524_v53, %v524_v53  ;;  %1108 = vrot.lane.b32.xlu0 %v3979_v49, %s4470_s16  ;;  %v1085_v56 = vmul.f32 0.2, %v1068_v51  ;;  %v4195_v57 = vpop.f32.mrf.mxu0  ;;  %v4231_v58 = vpop.f32.mrf.mxu1  ;;  %v1091_v59 = vsel %vm1083_vm8, %v4220_v43, %v1087_v48  ;;  %542 = vst.msk [vmem:[#allocation2] sm:$0xf] %vm541_vm5, %v3957_v47  ;;  %v3977_v62 = vpack.c.bf16 %v1088_v52, %v1088_v52 }
  0xdf   : > { %v522_v60 = vsel %vm514_vm9, %v501_v50, %v518_v54  ;;  %vm622_vm11 = vcmp.gt.f32.partialorder %v4195_v57, 0.0  ;;  %v626_v61 = vmul.f32 0.2, %v4195_v57  ;;  %v3980_v0 = vpack.c.bf16 %v1091_v59, %v1091_v59 }
  0xe0   : > { %v3958_v63 = vpack.c.bf16 %v522_v60, %v522_v60  ;;  %v605_v1 = vpop.f32.mrf.mxu0  ;;  %v4661_v2 = vpop.f32.mrf.mxu1  ;;  %545 = vst.msk [vmem:[#allocation2 + $0xc] sm:$0xf] %vm541_vm5, %v3960_v55  ;;  %v1089_v3 = vsel %vm1081_vm10, %v1068_v51, %v1085_v56  ;;  %v1316_v5 = vmul.f32 0.2, %v4231_v58  ;;  %vm1312_vm12 = vcmp.gt.f32.partialorder %v4231_v58, 0.0 }
  0xe1   : > { %v630_v4 = vsel %vm622_vm11, %v4195_v57, %v626_v61  ;;  %1110 = vrot.lane.b32.xlu1 %v3980_v0, %s4470_s16  ;;  %v3978_v9 = vpack.c.bf16 %v1089_v3, %v1089_v3  ;;  %v624_v13 = vmul.f32 0.2, %v605_v1  ;;  %vm620_vm14 = vcmp.gt.f32.partialorder %v605_v1, 0.0 }
  0xe2   : > { %v3963_v6 = vpack.c.bf16 %v630_v4, %v630_v4  ;;  %1104 = vrot.lane.b32.xlu0 %v3977_v62, %s4470_s16  ;;  %v4196_v7 = vpop.f32.mrf.mxu0  ;;  %v4232_v8 = vpop.f32.mrf.mxu1  ;;  %543 = vst.msk [vmem:[#allocation2 + $0x4] sm:$0xf] %vm541_vm5, %v3958_v63  ;;  %v1320_v12 = vsel %vm1312_vm12, %v4231_v58, %v1316_v5 }
  0xe3   : > { %vm1313_vm13 = vcmp.gt.f32.partialorder %v4232_v8, 0.0  ;;  %v1317_v10 = vmul.f32 0.2, %v4232_v8  ;;  %v3987_v18 = vpack.c.bf16 %v1320_v12, %v1320_v12  ;;  %v628_v20 = vsel %vm620_vm14, %v605_v1, %v624_v13 }
  0xe4   : > { %v608_v11 = vpop.f32.mrf.mxu0  ;;  %v627_v21 = vmul.f32 0.2, %v4196_v7  ;;  %vm623_vm0 = vcmp.gt.f32.partialorder %v4196_v7, 0.0  ;;  %v3961_v25 = vpack.c.bf16 %v628_v20, %v628_v20 }
  0xe5   : > { %v1321_v14 = vsel %vm1313_vm13, %v4232_v8, %v1317_v10  ;;  %1106 = vrot.lane.b32.xlu1 %v3978_v9, %s4470_s16  ;;  %vm621_vm15 = vcmp.gt.f32.partialorder %v608_v11, 0.0  ;;  %v625_v15 = vmul.f32 0.2, %v608_v11 }
  0xe6   : > { %648 = vrot.lane.b32.xlu0 %v3963_v6, %s5782_s17  ;;  %v4201_v16 = vpop.f32.mrf.mxu0  ;;  %v3988_v17 = vpack.c.bf16 %v1321_v14, %v1321_v14  ;;  %v631_v28 = vsel %vm623_vm0, %v4196_v7, %v627_v21  ;;  %vm1310_vm0 = vcmp.gt.f32.partialorder %v4661_v2, 0.0 }
  0xe7   : > { %v629_v22 = vsel %vm621_vm15, %v608_v11, %v625_v15  ;;  %v741_v23 = vmul.f32 0.2, %v4201_v16  ;;  %vm737_vm1 = vcmp.gt.f32.partialorder %v4201_v16, 0.0  ;;  %v3964_v33 = vpack.c.bf16 %v631_v28, %v631_v28 }
  0xe8   : > { %v720_v19 = vpop.f32.mrf.mxu0  ;;  %v3962_v26 = vpack.c.bf16 %v629_v22, %v629_v22 }
  0xe9   : > { %1340 = vrot.lane.b32.xlu1 %v3988_v17, %s4472_s14  ;;  %v745_v29 = vsel %vm737_vm1, %v4201_v16, %v741_v23  ;;  %v739_v30 = vmul.f32 0.2, %v720_v19  ;;  %vm735_vm2 = vcmp.gt.f32.partialorder %v720_v19, 0.0  ;;  %v1298_v23 = vpop.f32.mrf.mxu1 }
  0xea   : > { %1338 = vrot.lane.b32.xlu0 %v3987_v18, %s4472_s14  ;;  %v4202_v24 = vpop.f32.mrf.mxu0  ;;  %v3967_v34 = vpack.c.bf16 %v745_v29, %v745_v29 }
  0xeb   : > { %v742_v31 = vmul.f32 0.2, %v4202_v24  ;;  %vm738_vm3 = vcmp.gt.f32.partialorder %v4202_v24, 0.0  ;;  %v743_v36 = vsel %vm735_vm2, %v720_v19, %v739_v30  ;;  %v1314_v19 = vmul.f32 0.2, %v4661_v2 }
  0xec   : > { %v723_v27 = vpop.f32.mrf.mxu0  ;;  %v3965_v41 = vpack.c.bf16 %v743_v36, %v743_v36  ;;  %vm1311_vm2 = vcmp.gt.f32.partialorder %v1298_v23, 0.0  ;;  %v1710_v36 = vld [vmem:[%s5772_s3 + $0x28] sm:$0xff] }
  0xed   : > { %646 = vrot.lane.b32.xlu1 %v3962_v26, %s5782_s17  ;;  %v746_v37 = vsel %vm738_vm3, %v4202_v24, %v742_v31  ;;  %v740_v38 = vmul.f32 0.2, %v723_v27  ;;  %vm736_vm4 = vcmp.gt.f32.partialorder %v723_v27, 0.0  ;;  %v1318_v26 = vsel %vm1310_vm0, %v4661_v2, %v1314_v19 }
  0xee   : > { %644 = vrot.lane.b32.xlu0 %v3961_v25, %s5782_s17  ;;  %v4207_v32 = vpop.f32.mrf.mxu0  ;;  %v3968_v42 = vpack.c.bf16 %v746_v37, %v746_v37  ;;  %v3985_v29 = vpack.c.bf16 %v1318_v26, %v1318_v26  ;;  %vm1395_vm3 = vcmask 261120   ;;  %v1709_v37 = vld [vmem:[%s5772_s3 + $0x20] sm:$0xff] }
  0xef   : > { %v856_v39 = vmul.f32 0.2, %v4207_v32  ;;  %vm852_vm5 = vcmp.gt.f32.partialorder %v4207_v32, 0.0  ;;  %v744_v44 = vsel %vm736_vm4, %v723_v27, %v740_v38  ;;  %v1315_v27 = vmul.f32 0.2, %v1298_v23  ;;  %v1708_v38 = vld [vmem:[%s5772_s3 + $0x18] sm:$0xff] }
  0xf0   : > { %v835_v35 = vpop.f32.mrf.mxu0  ;;  %v3966_v49 = vpack.c.bf16 %v744_v44, %v744_v44  ;;  %vm656_vm4 = vcmask 257152  }
  0xf1   : > { %763 = vrot.lane.b32.xlu1 %v3967_v34, %s4473_s18  ;;  %v860_v45 = vsel %vm852_vm5, %v4207_v32, %v856_v39  ;;  %v854_v46 = vmul.f32 0.2, %v835_v35  ;;  %vm850_vm6 = vcmp.gt.f32.partialorder %v835_v35, 0.0  ;;  %v1319_v31 = vsel %vm1311_vm2, %v1298_v23, %v1315_v27  ;;  %v4410_v32 = vld [vmem:[%s5771_s2] sm:$0xff]   ;;  %v1712_v34 = vld [vmem:[%s5772_s3 + $0x38] sm:$0xff]  ;;  %v1707_v39 = vld [vmem:[%s5772_s3 + $0x10] sm:$0xff] }
  0xf2   : > { %650 = vrot.lane.b32.xlu0 %v3964_v33, %s5782_s17  ;;  %v4208_v40 = vpop.f32.mrf.mxu0  ;;  %v3971_v50 = vpack.c.bf16 %v860_v45, %v860_v45  ;;  %v3986_v2 = vpack.c.bf16 %v1319_v31, %v1319_v31  ;;  %4237 = vmatprep.mubr.msk.bf16.mxu0 %vm1395_vm3, %v4410_v32  ;;  %v1711_v33 = vld [vmem:[%s5772_s3 + $0x30] sm:$0xff]  ;;  %vm771_vm5 = vcmask 388352  }
  0xf3   : > { %v857_v47 = vmul.f32 0.2, %v4208_v40  ;;  %vm853_vm7 = vcmp.gt.f32.partialorder %v4208_v40, 0.0  ;;  %v858_v52 = vsel %vm850_vm6, %v835_v35, %v854_v46  ;;  %v4477_v35 = vmov 0  }
  0xf4   : > { %v838_v43 = vpop.f32.mrf.mxu0  ;;  %v3969_v57 = vpack.c.bf16 %v858_v52, %v858_v52  ;;  %4391 = vset.pattern.permute.xlu1 %v4477_v35  ;;  %4390 = vset.pattern.permute.xlu0 %v4477_v35  ;;  %vm886_vm6 = vcmask 519552  }
  0xf5   : > { %765 = vrot.lane.b32.xlu1 %v3968_v42, %s4473_s18  ;;  %v861_v53 = vsel %vm853_vm7, %v4208_v40, %v857_v47  ;;  %v855_v54 = vmul.f32 0.2, %v838_v43  ;;  %vm851_vm8 = vcmp.gt.f32.partialorder %v838_v43, 0.0  ;;  %vm1001_vm7 = vcmask 650752  }
  0xf6   : > { %759 = vrot.lane.b32.xlu0 %v3965_v41, %s4473_s18  ;;  %v4213_v48 = vpop.f32.mrf.mxu0  ;;  %v3972_v58 = vpack.c.bf16 %v861_v53, %v861_v53 }
  0xf7   : > { %v971_v55 = vmul.f32 0.2, %v4213_v48  ;;  %vm967_vm9 = vcmp.gt.f32.partialorder %v4213_v48, 0.0  ;;  %v859_v60 = vsel %vm851_vm8, %v838_v43, %v855_v54  ;;  %vm1116_vm8 = vcmask 781952  }
  0xf8   : > { %v950_v51 = vpop.f32.mrf.mxu0  ;;  %v3970_v1 = vpack.c.bf16 %v859_v60, %v859_v60 }
  0xf9   : > { %761 = vrot.lane.b32.xlu1 %v3966_v49, %s4473_s18  ;;  %v975_v61 = vsel %vm967_vm9, %v4213_v48, %v971_v55  ;;  %v969_v62 = vmul.f32 0.2, %v950_v51  ;;  %vm965_vm10 = vcmp.gt.f32.partialorder %v950_v51, 0.0  ;;  %vm1231_vm9 = vcmask 913152  }
  0xfa   : > { %878 = vrot.lane.b32.xlu0 %v3971_v50, %s4474_s19  ;;  %v4214_v56 = vpop.f32.mrf.mxu0  ;;  %v3975_v3 = vpack.c.bf16 %v975_v61, %v975_v61 }
  0xfb   : > { %v972_v63 = vmul.f32 0.2, %v4214_v56  ;;  %vm968_vm11 = vcmp.gt.f32.partialorder %v4214_v56, 0.0  ;;  %v973_v5 = vsel %vm965_vm10, %v950_v51, %v969_v62  ;;  %vm1346_vm10 = vcmask 1044352  }
  0xfc   : > { %v953_v59 = vpop.f32.mrf.mxu0  ;;  %v3973_v10 = vpack.c.bf16 %v973_v5, %v973_v5 }
  0xfd   : > { %880 = vrot.lane.b32.xlu1 %v3972_v58, %s4474_s19  ;;  %v976_v6 = vsel %vm968_vm11, %v4214_v56, %v972_v63  ;;  %v970_v7 = vmul.f32 0.2, %v953_v59  ;;  %vm966_vm12 = vcmp.gt.f32.partialorder %v953_v59, 0.0  ;;  %vm2013_vm11 = vcmask 523264  }
  0xfe   : > { %874 = vrot.lane.b32.xlu0 %v3969_v57, %s4474_s19  ;;  %v4225_v0 = vpop.f32.mrf.mxu0  ;;  %v3976_v11 = vpack.c.bf16 %v976_v6, %v976_v6 }
  0xff   : > { %v1201_v8 = vmul.f32 0.2, %v4225_v0  ;;  %vm1197_vm13 = vcmp.gt.f32.partialorder %v4225_v0, 0.0  ;;  %v974_v12 = vsel %vm966_vm12, %v953_v59, %v970_v7  ;;  %v4411_v7 = vld [vmem:[%s5771_s2 + $0x8] sm:$0xff]  }
 0x100   : > { %v1180_v4 = vpop.f32.mrf.mxu0  ;;  %v3974_v17 = vpack.c.bf16 %v974_v12, %v974_v12 }
 0x101   : > { %876 = vrot.lane.b32.xlu1 %v3970_v1, %s4474_s19  ;;  %v1205_v13 = vsel %vm1197_vm13, %v4225_v0, %v1201_v8  ;;  %v1199_v14 = vmul.f32 0.2, %v1180_v4  ;;  %vm1195_vm14 = vcmp.gt.f32.partialorder %v1180_v4, 0.0  ;;  %v4412_v8 = vld [vmem:[%s5771_s2 + $0x10] sm:$0xff]  }
 0x102   : > { %993 = vrot.lane.b32.xlu0 %v3975_v3, %s4475_s20  ;;  %v4226_v9 = vpop.f32.mrf.mxu0  ;;  %v3983_v18 = vpack.c.bf16 %v1205_v13, %v1205_v13 }
 0x103   : > { %v1202_v15 = vmul.f32 0.2, %v4226_v9  ;;  %vm1198_vm15 = vcmp.gt.f32.partialorder %v4226_v9, 0.0  ;;  %v1203_v20 = vsel %vm1195_vm14, %v1180_v4, %v1199_v14 }
 0x104   : > { %v1183_v16 = vpop.f32.mrf.mxu0  ;;  %v3981_v24 = vpack.c.bf16 %v1203_v20, %v1203_v20 }
 0x105   : > { %995 = vrot.lane.b32.xlu1 %v3976_v11, %s4475_s20  ;;  %v1206_v21 = vsel %vm1198_vm15, %v4226_v9, %v1202_v15  ;;  %v1200_v22 = vmul.f32 0.2, %v1183_v16  ;;  %vm1196_vm1 = vcmp.gt.f32.partialorder %v1183_v16, 0.0  ;;  %v4413_v9 = vld [vmem:[%s5771_s2 + $0x18] sm:$0xff]  }
 0x106   : > { %989 = vrot.lane.b32.xlu0 %v3973_v10, %s4475_s20  ;;  %v3984_v25 = vpack.c.bf16 %v1206_v21, %v1206_v21  ;;  %v1705_v21 = vld [vmem:[%s5772_s3] sm:$0xff] }
 0x107   : > { %v1204_v28 = vsel %vm1196_vm1, %v1183_v16, %v1200_v22 }
 0x108   : > { %v3982_v30 = vpack.c.bf16 %v1204_v28, %v1204_v28 }
 0x109   : > { %991 = vrot.lane.b32.xlu1 %v3974_v17, %s4475_s20  ;;  %v1706_v17 = vld [vmem:[%s5772_s3 + $0x8] sm:$0xff] }
 0x10a   : > { %1223 = vrot.lane.b32.xlu0 %v3983_v18, %s4476_s25 }
 0x10d   : > { %1225 = vrot.lane.b32.xlu1 %v3984_v25, %s4476_s25 }
 0x10e   : > { %1219 = vrot.lane.b32.xlu0 %v3981_v24, %s4476_s25 }
 0x111   : > { %1221 = vrot.lane.b32.xlu1 %v3982_v30, %s4476_s25  ;;  %v4414_v30 = vld [vmem:[%s5773_s4] sm:$0xff]  }
 0x112   : > { %1334 = vrot.lane.b32.xlu0 %v3985_v29, %s4472_s14  ;;  %4253 = vmatprep.mubr.msk.bf16.mxu1 %vm2013_vm11, %v4414_v30 }
 0x115   : > { %1336 = vrot.lane.b32.xlu1 %v3986_v2, %s4472_s14 }
 0x116   : > { %1745 = vperm.xlu0 %4390, %v1711_v33  }
 0x119   : > { %1750 = vperm.xlu1 %4391, %v1712_v34  }
 0x11a   : > { %1740 = vperm.xlu0 %4390, %v1710_v36  }
 0x11d   : > { %1735 = vperm.xlu1 %4391, %v1709_v37  }
 0x11e   : > { %1730 = vperm.xlu0 %4390, %v1708_v38  }
 0x121   : > { %1725 = vperm.xlu1 %4391, %v1707_v39  }
 0x150   : > { %v1109_v40 = vpop.permute.xlu0 %1108 }
 0x153   : > { %v1111_v42 = vpop.permute.xlu1 %1110 }
 0x154   : > { %v1105_v41 = vpop.permute.xlu0 %1104 }
 0x157   : > { %v1107_v43 = vpop.permute.xlu1 %1106 }
 0x158   : > { %v649_v44 = vpop.permute.xlu0 %648 }
 0x159   : > { %659 = vst.msk [vmem:[#allocation2 + $0x8] sm:$0xf] %vm656_vm4, %v649_v44 }
 0x15b   : > { %v1341_v45 = vpop.permute.xlu1 %1340 }
 0x15c   : > { %v1339_v46 = vpop.permute.xlu0 %1338 }
 0x15f   : > { %v647_v48 = vpop.permute.xlu1 %646 }
 0x160   : > { %v645_v47 = vpop.permute.xlu0 %644  ;;  %658 = vst.msk [vmem:[#allocation2 + $0x4] sm:$0xf] %vm656_vm4, %v647_v48 }
 0x161   : > { %657 = vst.msk [vmem:[#allocation2] sm:$0xf] %vm656_vm4, %v645_v47 }
 0x163   : > { %v764_v50 = vpop.permute.xlu1 %763 }
 0x164   : > { %v651_v49 = vpop.permute.xlu0 %650  ;;  %774 = vst.msk [vmem:[#allocation2 + $0x8] sm:$0xf] %vm771_vm5, %v764_v50 }
 0x165   : > { %660 = vst.msk [vmem:[#allocation2 + $0xc] sm:$0xf] %vm656_vm4, %v651_v49 }
 0x167   : > { %v766_v52 = vpop.permute.xlu1 %765 }
 0x168   : > { %v760_v51 = vpop.permute.xlu0 %759  ;;  %775 = vst.msk [vmem:[#allocation2 + $0xc] sm:$0xf] %vm771_vm5, %v766_v52 }
 0x169   : > { %772 = vst.msk [vmem:[#allocation2] sm:$0xf] %vm771_vm5, %v760_v51 }
 0x16b   : > { %v762_v54 = vpop.permute.xlu1 %761 }
 0x16c   : > { %v879_v53 = vpop.permute.xlu0 %878  ;;  %773 = vst.msk [vmem:[#allocation2 + $0x4] sm:$0xf] %vm771_vm5, %v762_v54  ;;  %vm2403_vm5 = vcmask 130048  }
 0x16d   : > { %889 = vst.msk [vmem:[#allocation2 + $0x8] sm:$0xf] %vm886_vm6, %v879_v53 }
 0x16f   : > { %v881_v56 = vpop.permute.xlu1 %880 }
 0x170   : > { %v875_v55 = vpop.permute.xlu0 %874  ;;  %890 = vst.msk [vmem:[#allocation2 + $0xc] sm:$0xf] %vm886_vm6, %v881_v56 }
 0x171   : > { %887 = vst.msk [vmem:[#allocation2] sm:$0xf] %vm886_vm6, %v875_v55 }
 0x173   : > { %v877_v58 = vpop.permute.xlu1 %876 }
 0x174   : > { %v994_v57 = vpop.permute.xlu0 %993  ;;  %888 = vst.msk [vmem:[#allocation2 + $0x4] sm:$0xf] %vm886_vm6, %v877_v58 }
 0x175   : > { %1004 = vst.msk [vmem:[#allocation2 + $0x8] sm:$0xf] %vm1001_vm7, %v994_v57 }
 0x176   : > { %1119 = vst.msk [vmem:[#allocation2 + $0x8] sm:$0xf] %vm1116_vm8, %v1109_v40 }
 0x177   : > { %v996_v60 = vpop.permute.xlu1 %995 }
 0x178   : > { %v990_v59 = vpop.permute.xlu0 %989  ;;  %1005 = vst.msk [vmem:[#allocation2 + $0xc] sm:$0xf] %vm1001_vm7, %v996_v60 }
 0x179   : > { %1002 = vst.msk [vmem:[#allocation2] sm:$0xf] %vm1001_vm7, %v990_v59 }
 0x17a   : > { %1117 = vst.msk [vmem:[#allocation2] sm:$0xf] %vm1116_vm8, %v1105_v41  ;;  %1120 = vst.msk [vmem:[#allocation2 + $0xc] sm:$0xf] %vm1116_vm8, %v1111_v42 }
 0x17b   : > { %v992_v62 = vpop.permute.xlu1 %991 }
 0x17c   : > { %v1224_v61 = vpop.permute.xlu0 %1223  ;;  %1003 = vst.msk [vmem:[#allocation2 + $0x4] sm:$0xf] %vm1001_vm7, %v992_v62 }
 0x17d   : > { %1234 = vst.msk [vmem:[#allocation2 + $0x8] sm:$0xf] %vm1231_vm9, %v1224_v61 }
 0x17e   : > { %1349 = vst.msk [vmem:[#allocation2 + $0x8] sm:$0xf] %vm1346_vm10, %v1339_v46 }
 0x17f   : > { %1118 = vst.msk [vmem:[#allocation2 + $0x4] sm:$0xf] %vm1116_vm8, %v1107_v43  ;;  %v1226_v0 = vpop.permute.xlu1 %1225 }
 0x180   : > { %v1220_v63 = vpop.permute.xlu0 %1219  ;;  %1235 = vst.msk [vmem:[#allocation2 + $0xc] sm:$0xf] %vm1231_vm9, %v1226_v0 }
 0x181   : > { %1232 = vst.msk [vmem:[#allocation2] sm:$0xf] %vm1231_vm9, %v1220_v63 }
 0x182   : > { %1350 = vst.msk [vmem:[#allocation2 + $0xc] sm:$0xf] %vm1346_vm10, %v1341_v45 }
 0x183   : > { %v1222_v3 = vpop.permute.xlu1 %1221 }
 0x184   : > { %v1335_v1 = vpop.permute.xlu0 %1334  ;;  %1233 = vst.msk [vmem:[#allocation2 + $0x4] sm:$0xf] %vm1231_vm9, %v1222_v3 }
 0x185   : > { %1347 = vst.msk [vmem:[#allocation2] sm:$0xf] %vm1346_vm10, %v1335_v1 }
 0x187   : > { %v1337_v4 = vpop.permute.xlu1 %1336 }
 0x188   : > { %1348 = vst.msk [vmem:[#allocation2 + $0x4] sm:$0xf] %vm1346_vm10, %v1337_v4 }
 0x189   : > { %v4408_v5 = vld [vmem:[#allocation2 + $0x8] sm:$0xff]  }
 0x18a   : > { %4233 = vmatprep.subr.bf16.mxu0 %v4408_v5 }
 0x18b   : > { %4234 = vmatpush3.bf16.msra.mxu0 %v4408_v5 }
 0x18f   : > { %v4409_v6 = vld [vmem:[#allocation2] sm:$0xff]  }
 0x190   : > { %4235 = vmatprep.subr.bf16.mxu0 %v4409_v6 }
 0x191   : > { %4236 = vmatpush3.bf16.msra.mxu0 %v4409_v6  ;;  %v4862_v19 = vpop.permute.xlu0 %1745 }
 0x194   : > { %4238 = vmatmul.mubr.msk.bf16.vlgmr.msra.gmra.mxu0 %vm1395_vm3, %v4411_v7  ;;  %v4864_v20 = vpop.permute.xlu1 %1750 }
 0x195   : > { %4241 = vmatprep.mubr.msk.bf16.mxu0 %vm1395_vm3, %v4412_v8  ;;  %v4873_v22 = vpop.permute.xlu0 %1740 }
 0x196   : > { %5785 = vst [vmem:[#allocation4_spill] sm:$0xff] %v4873_v22 }
 0x198   : > { %v4875_v23 = vpop.permute.xlu1 %1735 }
 0x199   : > { %v4883_v24 = vpop.permute.xlu0 %1730 }
 0x19c   : > { %4242 = vmatmul.mubr.msk.bf16.gmra.mxu0 %vm1395_vm3, %v4413_v9  ;;  %v4885_v25 = vpop.permute.xlu1 %1725 }
 0x254   : > { %v4745_v10 = vpop.f32.mrf.mxu0 }
 0x255   : > { %1517 = vrot.lane.b32.xlu1 %v4745_v10, %s4476_s25  ;;  %1485 = vrot.lane.b32.xlu0 %v4745_v10, %s4472_s14 }
 0x256   : > { %v4751_v11 = vpop.f32.mrf.mxu0 }
 0x258   : > { %v4753_v12 = vpop.f32.mrf.mxu0 }
 0x259   : > { %1549 = vrot.lane.b32.xlu1 %v4745_v10, %s4470_s16  ;;  %1519 = vrot.lane.b32.xlu0 %v4753_v12, %s4476_s25 }
 0x25a   : > { %v4775_v13 = vpop.f32.mrf.mxu0 }
 0x25c   : > { %v4797_v14 = vpop.f32.mrf.mxu0 }
 0x25d   : > { %1581 = vrot.lane.b32.xlu1 %v4745_v10, %s4475_s20  ;;  %1551 = vrot.lane.b32.xlu0 %v4753_v12, %s4470_s16 }
 0x25e   : > { %v4807_v15 = vpop.f32.mrf.mxu0 }
 0x260   : > { %v4825_v16 = vpop.f32.mrf.mxu0 }
 0x261   : > { %1613 = vrot.lane.b32.xlu1 %v4745_v10, %s4474_s19  ;;  %1583 = vrot.lane.b32.xlu0 %v4753_v12, %s4475_s20 }
 0x262   : > { %v4850_v18 = vpop.f32.mrf.mxu0 }
 0x265   : > { %1645 = vrot.lane.b32.xlu1 %v4745_v10, %s4473_s18  ;;  %1615 = vrot.lane.b32.xlu0 %v4753_v12, %s4474_s19 }
 0x269   : > { %1481 = vrot.lane.b32.xlu1 %v4751_v11, %s4472_s14  ;;  %1647 = vrot.lane.b32.xlu0 %v4753_v12, %s4473_s18 }
 0x26d   : > { %1513 = vrot.lane.b32.xlu1 %v4751_v11, %s4476_s25  ;;  %1483 = vrot.lane.b32.xlu0 %v4775_v13, %s4472_s14 }
 0x271   : > { %1545 = vrot.lane.b32.xlu1 %v4751_v11, %s4470_s16  ;;  %1515 = vrot.lane.b32.xlu0 %v4775_v13, %s4476_s25 }
 0x275   : > { %1577 = vrot.lane.b32.xlu1 %v4751_v11, %s4475_s20  ;;  %1547 = vrot.lane.b32.xlu0 %v4775_v13, %s4470_s16 }
 0x279   : > { %1609 = vrot.lane.b32.xlu1 %v4751_v11, %s4474_s19  ;;  %1579 = vrot.lane.b32.xlu0 %v4775_v13, %s4475_s20 }
 0x27d   : > { %1487 = vrot.lane.b32.xlu1 %v4753_v12, %s4472_s14  ;;  %1611 = vrot.lane.b32.xlu0 %v4775_v13, %s4474_s19 }
 0x281   : > { %1653 = vrot.lane.b32.xlu1 %v4797_v14, %s4473_s18  ;;  %1493 = vrot.lane.b32.xlu0 %v4797_v14, %s4472_s14 }
 0x285   : > { %1685 = vrot.lane.b32.xlu1 %v4797_v14, %s5784_s30  ;;  %1525 = vrot.lane.b32.xlu0 %v4797_v14, %s4476_s25 }
 0x289   : > { %1557 = vrot.lane.b32.xlu0 %v4797_v14, %s4470_s16  ;;  %1585 = vrot.lane.b32.xlu1 %v4807_v15, %s4475_s20 }
 0x28d   : > { %1589 = vrot.lane.b32.xlu0 %v4797_v14, %s4475_s20  ;;  %1617 = vrot.lane.b32.xlu1 %v4807_v15, %s4474_s19 }
 0x291   : > { %1621 = vrot.lane.b32.xlu0 %v4797_v14, %s4474_s19  ;;  %1649 = vrot.lane.b32.xlu1 %v4807_v15, %s4473_s18 }
 0x295   : > { %1681 = vrot.lane.b32.xlu1 %v4807_v15, %s5784_s30  ;;  %1489 = vrot.lane.b32.xlu0 %v4807_v15, %s4472_s14 }
 0x299   : > { %1521 = vrot.lane.b32.xlu0 %v4807_v15, %s4476_s25  ;;  %1495 = vrot.lane.b32.xlu1 %v4825_v16, %s4472_s14 }
 0x29d   : > { %1553 = vrot.lane.b32.xlu0 %v4807_v15, %s4470_s16  ;;  %1527 = vrot.lane.b32.xlu1 %v4825_v16, %s4476_s25 }
 0x2a1   : > { %1655 = vrot.lane.b32.xlu0 %v4825_v16, %s4473_s18  ;;  %1559 = vrot.lane.b32.xlu1 %v4825_v16, %s4470_s16 }
 0x2a5   : > { %1687 = vrot.lane.b32.xlu0 %v4825_v16, %s5784_s30  ;;  %1591 = vrot.lane.b32.xlu1 %v4825_v16, %s4475_s20 }
 0x2a9   : > { %1679 = vrot.lane.b32.xlu0 %v4753_v12, %s5784_s30  ;;  %1623 = vrot.lane.b32.xlu1 %v4825_v16, %s4474_s19 }
 0x2ad   : > { %1720 = vperm.xlu0 %4390, %v1706_v17   ;;  %1491 = vrot.lane.b32.xlu1 %v4850_v18, %s4472_s14  ;;  %s3956_s14 = sshll.u32 %s5796_s21, 4 }
 0x2b1   : > { %1587 = vrot.lane.b32.xlu0 %v4850_v18, %s4475_s20  ;;  %1523 = vrot.lane.b32.xlu1 %v4850_v18, %s4476_s25  ;;  %s436_s25 = scalar_lea.vmem %s5781_s12, %s3956_s14 }
 0x2b5   : > { %1619 = vrot.lane.b32.xlu0 %v4850_v18, %s4474_s19  ;;  %1555 = vrot.lane.b32.xlu1 %v4850_v18, %s4470_s16 }
 0x2b9   : > { %1651 = vrot.lane.b32.xlu0 %v4850_v18, %s4473_s18  ;;  %1677 = vrot.lane.b32.xlu1 %v4745_v10, %s5784_s30 }
 0x2bd   : > { %1683 = vrot.lane.b32.xlu0 %v4850_v18, %s5784_s30  ;;  %1715 = vperm.xlu1 %4391, %v1705_v21  }
 0x2c1   : > { %1643 = vrot.lane.b32.xlu0 %v4775_v13, %s4473_s18  ;;  %1641 = vrot.lane.b32.xlu1 %v4751_v11, %s4473_s18 }
 0x2c5   : > { %1675 = vrot.lane.b32.xlu0 %v4775_v13, %s5784_s30  ;;  %1673 = vrot.lane.b32.xlu1 %v4751_v11, %s5784_s30 }
 0x2c7   : > { %v4891_v26 = vpop.permute.xlu1 %1517  ;;  %v4893_v27 = vpop.permute.xlu0 %1485 }
 0x2cb   : > { %v4895_v28 = vpop.permute.xlu1 %1549  ;;  %v4897_v29 = vpop.permute.xlu0 %1519 }
 0x2cf   : > { %v4903_v31 = vpop.permute.xlu1 %1581  ;;  %v4905_v32 = vpop.permute.xlu0 %1551 }
 0x2d3   : > { %v4907_v2 = vpop.permute.xlu1 %1613  ;;  %v4909_v33 = vpop.permute.xlu0 %1583 }
 0x2d7   : > { %v4911_v34 = vpop.permute.xlu1 %1645  ;;  %v4913_v35 = vpop.permute.xlu0 %1615 }
 0x2db   : > { %v4915_v36 = vpop.permute.xlu1 %1481  ;;  %v4917_v37 = vpop.permute.xlu0 %1647 }
 0x2df   : > { %v4919_v38 = vpop.permute.xlu1 %1513  ;;  %v4921_v39 = vpop.permute.xlu0 %1483 }
 0x2e3   : > { %v4923_v40 = vpop.permute.xlu1 %1545  ;;  %v4925_v41 = vpop.permute.xlu0 %1515 }
 0x2e7   : > { %v4927_v42 = vpop.permute.xlu1 %1577  ;;  %v4929_v43 = vpop.permute.xlu0 %1547 }
 0x2eb   : > { %v4931_v44 = vpop.permute.xlu1 %1609  ;;  %v4933_v45 = vpop.permute.xlu0 %1579 }
 0x2ec   : > { %5786 = vst [vmem:[#allocation5_spill] sm:$0xff] %v4931_v44 }
 0x2ef   : > { %v1488_v46 = vpop.permute.xlu1 %1487  ;;  %v4935_v47 = vpop.permute.xlu0 %1611 }
 0x2f0   : > { %5787 = vst [vmem:[#allocation6_spill] sm:$0xff] %v4935_v47 }
 0x2f3   : > { %v1654_v48 = vpop.permute.xlu1 %1653  ;;  %v1494_v49 = vpop.permute.xlu0 %1493 }
 0x2f4   : > { %v1511_v60 = vmax.f32 %v4797_v14, %v1494_v49 }
 0x2f7   : > { %v1686_v50 = vpop.permute.xlu1 %1685  ;;  %v1526_v51 = vpop.permute.xlu0 %1525 }
 0x2f8   : > { %v1543_v62 = vmax.f32 %v1511_v60, %v1526_v51 }
 0x2fb   : > { %v1558_v52 = vpop.permute.xlu0 %1557  ;;  %v1586_v53 = vpop.permute.xlu1 %1585 }
 0x2fc   : > { %v1575_v0 = vmax.f32 %v1543_v62, %v1558_v52 }
 0x2ff   : > { %v1590_v54 = vpop.permute.xlu0 %1589  ;;  %v1618_v55 = vpop.permute.xlu1 %1617 }
 0x300   : > { %v1607_v3 = vmax.f32 %v1575_v0, %v1590_v54 }
 0x303   : > { %v1622_v56 = vpop.permute.xlu0 %1621  ;;  %v1650_v57 = vpop.permute.xlu1 %1649 }
 0x304   : > { %v1639_v4 = vmax.f32 %v1607_v3, %v1622_v56  ;;  %v1508_v56 = vmax.f32 %v4753_v12, %v1488_v46 }
 0x306   : > { %v1671_v8 = vmax.f32 %v1639_v4, %v1654_v48 }
 0x307   : > { %v4937_v58 = vpop.permute.xlu1 %1681  ;;  %v1490_v59 = vpop.permute.xlu0 %1489 }
 0x308   : > { %v1703_v47 = vmax.f32 %v1671_v8, %v1686_v50  ;;  %v1509_v51 = vmax.f32 %v4807_v15, %v1490_v59  ;;  %v1507_v50 = vmax.f32 %v4745_v10, %v4893_v27 }
 0x30a   : > { %v1759_v49 = vadd.f32 %v4862_v19, %v1703_v47  ;;  %v1539_v46 = vmax.f32 %v1507_v50, %v4891_v26 }
 0x30b   : > { %v1496_v61 = vpop.permute.xlu1 %1495  ;;  %v1522_v63 = vpop.permute.xlu0 %1521 }
 0x30c   : > { %v1512_v7 = vmax.f32 %v4825_v16, %v1496_v61  ;;  %v1541_v62 = vmax.f32 %v1509_v51, %v1522_v63  ;;  %v1775_v0 = vmul.f32 0.2, %v1759_v49  ;;  %vm1767_vm12 = vcmp.gt.f32.partialorder %v1759_v49, 0.0 }
 0x30d   : > { %v1571_v27 = vmax.f32 %v1539_v46, %v4895_v28 }
 0x30e   : > { %v1783_v59 = vsel %vm1767_vm12, %v1759_v49, %v1775_v0 }
 0x30f   : > { %v1528_v1 = vpop.permute.xlu1 %1527  ;;  %v1554_v5 = vpop.permute.xlu0 %1553 }
 0x310   : > { %v1544_v9 = vmax.f32 %v1512_v7, %v1528_v1  ;;  %v1573_v48 = vmax.f32 %v1541_v62, %v1554_v5 }
 0x312   : > { %v1605_v47 = vmax.f32 %v1573_v48, %v1586_v53  ;;  %v1603_v53 = vmax.f32 %v1571_v27, %v4903_v31  ;;  %v5790_v48 = vld [vmem:[#allocation6_spill] sm:$0xff] }
 0x313   : > { %v1560_v6 = vpop.permute.xlu1 %1559  ;;  %v1656_v21 = vpop.permute.xlu0 %1655 }
 0x314   : > { %v1576_v30 = vmax.f32 %v1544_v9, %v1560_v6  ;;  %v1637_v3 = vmax.f32 %v1605_v47, %v1618_v55  ;;  %v1635_v26 = vmax.f32 %v1603_v53, %v4907_v2  ;;  %v1506_v2 = vmax.f32 %v4775_v13, %v4921_v39  ;;  %v4415_v53 = vld [vmem:[%s5773_s4 + $0x8] sm:$0xff]  }
 0x316   : > { %v1669_v6 = vmax.f32 %v1637_v3, %v1650_v57  ;;  %v1667_v55 = vmax.f32 %v1635_v26, %v4911_v34  ;;  %v1538_v49 = vmax.f32 %v1506_v2, %v4925_v41  ;;  %v4419_v26 = vld [vmem:[%s5773_s4 + $0x28] sm:$0xff]   ;;  %v4432_v2 = vld [vmem:[%s5773_s4 + $0x90] sm:$0xff]  }
 0x317   : > { %v1592_v17 = vpop.permute.xlu1 %1591  ;;  %v1688_v52 = vpop.permute.xlu0 %1687 }
 0x318   : > { %v1608_v44 = vmax.f32 %v1576_v30, %v1592_v17  ;;  %v1701_v28 = vmax.f32 %v1669_v6, %v4937_v58  ;;  %v4418_v6 = vld [vmem:[%s5773_s4 + $0x20] sm:$0xff]  }
 0x31a   : > { %v1757_v34 = vadd.f32 %v4875_v23, %v1701_v28  ;;  %v4426_v28 = vld [vmem:[%s5773_s4 + $0x60] sm:$0xff]  }
 0x31b   : > { %v1624_v22 = vpop.permute.xlu1 %1623  ;;  %v1680_v19 = vpop.permute.xlu0 %1679 }
 0x31c   : > { %v1640_v14 = vmax.f32 %v1608_v44, %v1624_v22  ;;  %v1540_v22 = vmax.f32 %v1508_v56, %v4897_v29  ;;  %v1773_v56 = vmul.f32 0.2, %v1757_v34  ;;  %vm1765_vm14 = vcmp.gt.f32.partialorder %v1757_v34, 0.0 }
 0x31e   : > { %v1672_v54 = vmax.f32 %v1640_v14, %v1656_v21  ;;  %v1572_v63 = vmax.f32 %v1540_v22, %v4905_v32  ;;  %v1781_v0 = vsel %vm1765_vm14, %v1757_v34, %v1773_v56  ;;  %v4436_v34 = vld [vmem:[%s5773_s4 + $0xb0] sm:$0xff]  }
 0x31f   : > { %v1492_v60 = vpop.permute.xlu1 %1491 }
 0x320   : > { %v1704_v16 = vmax.f32 %v1672_v54, %v1688_v52  ;;  %v1604_v29 = vmax.f32 %v1572_v63, %v4909_v33  ;;  %v1510_v5 = vmax.f32 %v4850_v18, %v1492_v60  ;;  %v1505_v18 = vmax.f32 %v4751_v11, %v4915_v36  ;;  %v5788_v60 = vld [vmem:[#allocation4_spill] sm:$0xff] }
 0x321   : > { %v1570_v11 = vmax.f32 %v1538_v49, %v4929_v43  ;;  %v4437_v49 = vld [vmem:[%s5773_s4 + $0xb8] sm:$0xff]  }
 0x322   : > { %v1760_v61 = vadd.f32 %v4864_v20, %v1704_v16  ;;  %v1636_v32 = vmax.f32 %v1604_v29, %v4913_v35  ;;  %v1537_v14 = vmax.f32 %v1505_v18, %v4919_v38  ;;  %v4430_v18 = vld [vmem:[%s5773_s4 + $0x80] sm:$0xff]  }
 0x323   : > { %v1524_v44 = vpop.permute.xlu1 %1523  ;;  %v1602_v38 = vmax.f32 %v1570_v11, %v4933_v45  ;;  %v4443_v11 = vld [vmem:[%s5773_s4 + $0xe8] sm:$0xff]  }
 0x324   : > { %vm1768_vm13 = vcmp.gt.f32.partialorder %v1760_v61, 0.0  ;;  %v1776_v15 = vmul.f32 0.2, %v1760_v61  ;;  %v1542_v7 = vmax.f32 %v1510_v5, %v1524_v44  ;;  %v1668_v33 = vmax.f32 %v1636_v32, %v4917_v37  ;;  %v4417_v5 = vld [vmem:[%s5773_s4 + $0x18] sm:$0xff]   ;;  %v4420_v32 = vld [vmem:[%s5773_s4 + $0x30] sm:$0xff]  }
 0x325   : > { %v1569_v51 = vmax.f32 %v1537_v14, %v4923_v40  ;;  %v4435_v14 = vld [vmem:[%s5773_s4 + $0xa8] sm:$0xff]  }
 0x326   : > { %v1784_v12 = vsel %vm1768_vm13, %v1760_v61, %v1776_v15  ;;  %v1700_v35 = vmax.f32 %v1668_v33, %v1680_v19  ;;  %v1634_v61 = vmax.f32 %v1602_v38, %v5790_v48  ;;  %v4427_v33 = vld [vmem:[%s5773_s4 + $0x68] sm:$0xff]  }
 0x327   : > { %v1788_v1 = vpack.c.bf16 %v1784_v12, %v1783_v59  ;;  %v1556_v10 = vpop.permute.xlu1 %1555  ;;  %v1601_v39 = vmax.f32 %v1569_v51, %v4927_v42  ;;  %v4440_v51 = vld [vmem:[%s5773_s4 + $0xd0] sm:$0xff]  }
 0x328   : > { %v4950_v20 = vpop.permute.xlu0 %1720  ;;  %v1574_v17 = vmax.f32 %v1542_v7, %v1556_v10  ;;  %v1756_v36 = vadd.f32 %v4883_v24, %v1700_v35  ;;  %v4421_v7 = vld [vmem:[%s5773_s4 + $0x38] sm:$0xff]  }
 0x329   : > { %4245 = vmatprep.subr.bf16.mxu1 %v1788_v1  ;;  %v4433_v35 = vld [vmem:[%s5773_s4 + $0x98] sm:$0xff]  }
 0x32a   : > { %4246 = vmatpush3.bf16.msra.mxu1 %v1788_v1  ;;  %v1772_v43 = vmul.f32 0.2, %v1756_v36  ;;  %vm1764_vm1 = vcmp.gt.f32.partialorder %v1756_v36, 0.0 }
 0x32b   : > { %v1678_v8 = vpop.permute.xlu1 %1677 }
 0x32c   : > { %v1588_v4 = vpop.permute.xlu0 %1587  ;;  %v1699_v21 = vmax.f32 %v1667_v55, %v1678_v8  ;;  %v1780_v12 = vsel %vm1764_vm1, %v1756_v36, %v1772_v43  ;;  %v4422_v8 = vld [vmem:[%s5773_s4 + $0x40] sm:$0xff]   ;;  %v4424_v55 = vld [vmem:[%s5773_s4 + $0x50] sm:$0xff]  }
 0x32d   : > { %v1606_v30 = vmax.f32 %v1574_v17, %v1588_v4  ;;  %v4425_v17 = vld [vmem:[%s5773_s4 + $0x58] sm:$0xff]   ;;  %v4444_v36 = vld [vmem:[%s5773_s4 + $0xf0] sm:$0xff]  }
 0x32e   : > { %v1755_v58 = vadd.f32 %v4885_v25, %v1699_v21  ;;  %v5789_v25 = vld [vmem:[#allocation5_spill] sm:$0xff]  ;;  %v4428_v21 = vld [vmem:[%s5773_s4 + $0x70] sm:$0xff]  }
 0x32f   : > { %v1633_v62 = vmax.f32 %v1601_v39, %v5789_v25 }
 0x330   : > { %v1620_v9 = vpop.permute.xlu0 %1619  ;;  %v1771_v23 = vmul.f32 0.2, %v1755_v58  ;;  %vm1763_vm15 = vcmp.gt.f32.partialorder %v1755_v58, 0.0 }
 0x331   : > { %v1638_v57 = vmax.f32 %v1606_v30, %v1620_v9  ;;  %v4423_v9 = vld [vmem:[%s5773_s4 + $0x48] sm:$0xff]   ;;  %v4429_v30 = vld [vmem:[%s5773_s4 + $0x78] sm:$0xff]  }
 0x332   : > { %v1779_v45 = vsel %vm1763_vm15, %v1755_v58, %v1771_v23  ;;  %v4438_v58 = vld [vmem:[%s5773_s4 + $0xc0] sm:$0xff]  }
 0x333   : > { %v1786_v46 = vpack.c.bf16 %v1780_v12, %v1779_v45 }
 0x334   : > { %v1652_v31 = vpop.permute.xlu0 %1651 }
 0x335   : > { %v1670_v37 = vmax.f32 %v1638_v57, %v1652_v31  ;;  %v4431_v31 = vld [vmem:[%s5773_s4 + $0x88] sm:$0xff]   ;;  %v4434_v57 = vld [vmem:[%s5773_s4 + $0xa0] sm:$0xff]  }
 0x338   : > { %v1684_v52 = vpop.permute.xlu0 %1683  ;;  %v1716_v54 = vpop.permute.xlu1 %1715 }
 0x339   : > { %v1702_v13 = vmax.f32 %v1670_v37, %v1684_v52  ;;  %v4439_v37 = vld [vmem:[%s5773_s4 + $0xc8] sm:$0xff]   ;;  %v4441_v52 = vld [vmem:[%s5773_s4 + $0xd8] sm:$0xff]  }
 0x33b   : > { %v1758_v41 = vadd.f32 %v5788_v60, %v1702_v13  ;;  %v4445_v13 = vld [vmem:[%s5773_s4 + $0xf8] sm:$0xff]  }
 0x33c   : > { %v1644_v40 = vpop.permute.xlu0 %1643  ;;  %v1642_v16 = vpop.permute.xlu1 %1641 }
 0x33d   : > { %vm1766_vm0 = vcmp.gt.f32.partialorder %v1758_v41, 0.0  ;;  %v1774_v24 = vmul.f32 0.2, %v1758_v41  ;;  %v1666_v42 = vmax.f32 %v1634_v61, %v1644_v40  ;;  %v1665_v50 = vmax.f32 %v1633_v62, %v1642_v16 }
 0x33f   : > { %v1782_v22 = vsel %vm1766_vm0, %v1758_v41, %v1774_v24 }
 0x340   : > { %v1676_v19 = vpop.permute.xlu0 %1675  ;;  %v1674_v44 = vpop.permute.xlu1 %1673  ;;  %v1787_v15 = vpack.c.bf16 %v1782_v22, %v1781_v0 }
 0x341   : > { %v1698_v47 = vmax.f32 %v1666_v42, %v1676_v19  ;;  %v1697_v59 = vmax.f32 %v1665_v50, %v1674_v44 }
 0x342   : > { %4247 = vmatprep.subr.bf16.mxu1 %v1787_v15 }
 0x343   : > { %v1754_v63 = vadd.f32 %v4950_v20, %v1698_v47  ;;  %v1753_v1 = vadd.f32 %v1716_v54, %v1697_v59  ;;  %4248 = vmatpush3.bf16.msra.mxu1 %v1787_v15  ;;  %v4416_v20 = vld [vmem:[%s5773_s4 + $0x10] sm:$0xff]   ;;  %v4442_v54 = vld [vmem:[%s5773_s4 + $0xe0] sm:$0xff]  }
 0x344   : > { %4249 = vmatprep.subr.bf16.mxu1 %v1786_v46 }
 0x345   : > { %vm1762_vm2 = vcmp.gt.f32.partialorder %v1754_v63, 0.0  ;;  %v1770_v3 = vmul.f32 0.2, %v1754_v63  ;;  %vm1761_vm4 = vcmp.gt.f32.partialorder %v1753_v1, 0.0  ;;  %v1769_v10 = vmul.f32 0.2, %v1753_v1 }
 0x347   : > { %4250 = vmatpush3.bf16.msra.mxu1 %v1786_v46  ;;  %v1777_v27 = vsel %vm1761_vm4, %v1753_v1, %v1769_v10  ;;  %v1778_v29 = vsel %vm1762_vm2, %v1754_v63, %v1770_v3 }
 0x348   : > { %v1785_v4 = vpack.c.bf16 %v1778_v29, %v1777_v27 }
 0x34a   : > { %4251 = vmatprep.subr.bf16.mxu1 %v1785_v4 }
 0x34b   : > { %4252 = vmatpush3.bf16.msra.mxu1 %v1785_v4 }
 0x34e   : > { %4254 = vmatmul.mubr.msk.bf16.vlgmr.msra.gmra.mxu1 %vm2013_vm11, %v4415_v53 }
 0x34f   : > { %4257 = vmatprep.mubr.msk.bf16.mxu1 %vm2013_vm11, %v4416_v20 }
 0x356   : > { %4258 = vmatmul.mubr.msk.bf16.gmra.mxu1 %vm2013_vm11, %v4417_v5 }
 0x357   : > { %4261 = vmatprep.mubr.msk.bf16.mxu1 %vm2013_vm11, %v4418_v6 }
 0x35e   : > { %4262 = vmatmul.mubr.msk.bf16.gmra.mxu1 %vm2013_vm11, %v4419_v26 }
 0x35f   : > { %4265 = vmatprep.mubr.msk.bf16.mxu1 %vm2013_vm11, %v4420_v32 }
 0x366   : > { %4266 = vmatmul.mubr.msk.bf16.gmra.mxu1 %vm2013_vm11, %v4421_v7 }
 0x367   : > { %4269 = vmatprep.mubr.msk.bf16.mxu1 %vm2013_vm11, %v4422_v8 }
 0x36e   : > { %4270 = vmatmul.mubr.msk.bf16.gmra.mxu1 %vm2013_vm11, %v4423_v9 }
 0x36f   : > { %4273 = vmatprep.mubr.msk.bf16.mxu1 %vm2013_vm11, %v4424_v55 }
 0x376   : > { %4274 = vmatmul.mubr.msk.bf16.gmra.mxu1 %vm2013_vm11, %v4425_v17 }
 0x377   : > { %4277 = vmatprep.mubr.msk.bf16.mxu1 %vm2013_vm11, %v4426_v28 }
 0x37e   : > { %4278 = vmatmul.mubr.msk.bf16.gmra.mxu1 %vm2013_vm11, %v4427_v33 }
 0x37f   : > { %4281 = vmatprep.mubr.msk.bf16.mxu1 %vm2013_vm11, %v4428_v21 }
 0x386   : > { %4282 = vmatmul.mubr.msk.bf16.gmra.mxu1 %vm2013_vm11, %v4429_v30 }
 0x387   : > { %4285 = vmatprep.mubr.msk.bf16.mxu1 %vm2013_vm11, %v4430_v18 }
 0x38e   : > { %4286 = vmatmul.mubr.msk.bf16.gmra.mxu1 %vm2013_vm11, %v4431_v31 }
 0x38f   : > { %4289 = vmatprep.mubr.msk.bf16.mxu1 %vm2013_vm11, %v4432_v2 }
 0x396   : > { %4290 = vmatmul.mubr.msk.bf16.gmra.mxu1 %vm2013_vm11, %v4433_v35 }
 0x397   : > { %4293 = vmatprep.mubr.msk.bf16.mxu1 %vm2013_vm11, %v4434_v57 }
 0x39e   : > { %4294 = vmatmul.mubr.msk.bf16.gmra.mxu1 %vm2013_vm11, %v4435_v14 }
 0x39f   : > { %4297 = vmatprep.mubr.msk.bf16.mxu1 %vm2013_vm11, %v4436_v34 }
 0x3a6   : > { %4298 = vmatmul.mubr.msk.bf16.gmra.mxu1 %vm2013_vm11, %v4437_v49 }
 0x3a7   : > { %4301 = vmatprep.mubr.msk.bf16.mxu1 %vm2013_vm11, %v4438_v58 }
 0x3ae   : > { %4302 = vmatmul.mubr.msk.bf16.gmra.mxu1 %vm2013_vm11, %v4439_v37 }
 0x3af   : > { %4305 = vmatprep.mubr.msk.bf16.mxu1 %vm2013_vm11, %v4440_v51 }
 0x3b6   : > { %4306 = vmatmul.mubr.msk.bf16.gmra.mxu1 %vm2013_vm11, %v4441_v52 }
 0x3b7   : > { %4309 = vmatprep.mubr.msk.bf16.mxu1 %vm2013_vm11, %v4442_v54 }
 0x3be   : > { %4310 = vmatmul.mubr.msk.bf16.gmra.mxu1 %vm2013_vm11, %v4443_v11 }
 0x3bf   : > { %4313 = vmatprep.mubr.msk.bf16.mxu1 %vm2013_vm11, %v4444_v36 }
 0x3c6   : > { %4314 = vmatmul.mubr.msk.bf16.gmra.mxu1 %vm2013_vm11, %v4445_v13 }
 0x40e   : > { %v4255_v39 = vpop.f32.mrf.mxu1 }
 0x40f   : > { %2406 = vst.msk [vmem:[#allocation3 + $0x10] sm:$0xff] %vm2403_vm5, %v4255_v39 }
 0x410   : > { %v2144_v56 = vpop.f32.mrf.mxu1 }
 0x411   : > { %2404 = vst.msk [vmem:[#allocation3] sm:$0xff] %vm2403_vm5, %v2144_v56 }
 0x412   : > { %v4256_v38 = vpop.f32.mrf.mxu1 }
 0x413   : > { %2407 = vst.msk [vmem:[#allocation3 + $0x18] sm:$0xff] %vm2403_vm5, %v4256_v38 }
 0x414   : > { %v2147_v23 = vpop.f32.mrf.mxu1 }
 0x415   : > { %2405 = vst.msk [vmem:[#allocation3 + $0x8] sm:$0xff] %vm2403_vm5, %v2147_v23 }
 0x416   : > { %v4259_v60 = vpop.f32.mrf.mxu1  ;;  %v2670_v41 = vld [vmem:[#allocation3 + $0x10] sm:$0xff] }
 0x417   : > { %2410 = vst.msk [vmem:[#allocation3 + $0x30] sm:$0xff] %vm2403_vm5, %v4259_v60  ;;  %v2739_v25 = vsel %vm2403_vm5, %v2670_v41, -inf }
 0x418   : > { %2740 = vmax.xlane.f32.xlu1 %v2739_v25  ;;  %v2160_v62 = vpop.f32.mrf.mxu1  ;;  %v2668_v40 = vld [vmem:[#allocation3] sm:$0xff] }
 0x419   : > { %2408 = vst.msk [vmem:[#allocation3 + $0x20] sm:$0xff] %vm2403_vm5, %v2160_v62  ;;  %v2733_v48 = vsel %vm2403_vm5, %v2668_v40, -inf }
 0x41a   : > { %v4260_v16 = vpop.f32.mrf.mxu1  ;;  %v2671_v43 = vld [vmem:[#allocation3 + $0x18] sm:$0xff] }
 0x41b   : > { %2411 = vst.msk [vmem:[#allocation3 + $0x38] sm:$0xff] %vm2403_vm5, %v4260_v16  ;;  %v2742_v0 = vsel %vm2403_vm5, %v2671_v43, -inf }
 0x41c   : > { %2734 = vmax.xlane.f32.xlu1 %v2733_v48  ;;  %v2163_v61 = vpop.f32.mrf.mxu1  ;;  %v2669_v50 = vld [vmem:[#allocation3 + $0x8] sm:$0xff] }
 0x41d   : > { %2409 = vst.msk [vmem:[#allocation3 + $0x28] sm:$0xff] %vm2403_vm5, %v2163_v61  ;;  %v2736_v45 = vsel %vm2403_vm5, %v2669_v50, -inf }
 0x41e   : > { %v4263_v24 = vpop.f32.mrf.mxu1  ;;  %v2674_v44 = vld [vmem:[#allocation3 + $0x30] sm:$0xff] }
 0x41f   : > { %2414 = vst.msk [vmem:[#allocation3 + $0x50] sm:$0xff] %vm2403_vm5, %v4263_v24  ;;  %v2751_v47 = vsel %vm2403_vm5, %v2674_v44, -inf }
 0x420   : > { %2743 = vmax.xlane.f32.xlu1 %v2742_v0  ;;  %v2176_v42 = vpop.f32.mrf.mxu1  ;;  %v2672_v12 = vld [vmem:[#allocation3 + $0x20] sm:$0xff] }
 0x421   : > { %2412 = vst.msk [vmem:[#allocation3 + $0x40] sm:$0xff] %vm2403_vm5, %v2176_v42  ;;  %v2745_v63 = vsel %vm2403_vm5, %v2672_v12, -inf }
 0x422   : > { %v4264_v22 = vpop.f32.mrf.mxu1  ;;  %v2675_v3 = vld [vmem:[#allocation3 + $0x38] sm:$0xff] }
 0x423   : > { %2415 = vst.msk [vmem:[#allocation3 + $0x58] sm:$0xff] %vm2403_vm5, %v4264_v22  ;;  %v2754_v27 = vsel %vm2403_vm5, %v2675_v3, -inf }
 0x424   : > { %2737 = vmax.xlane.f32.xlu1 %v2736_v45  ;;  %v2179_v19 = vpop.f32.mrf.mxu1  ;;  %v2673_v4 = vld [vmem:[#allocation3 + $0x28] sm:$0xff] }
 0x425   : > { %2413 = vst.msk [vmem:[#allocation3 + $0x48] sm:$0xff] %vm2403_vm5, %v2179_v19  ;;  %v2748_v5 = vsel %vm2403_vm5, %v2673_v4, -inf }
 0x426   : > { %v4267_v15 = vpop.f32.mrf.mxu1  ;;  %v2678_v32 = vld [vmem:[#allocation3 + $0x50] sm:$0xff] }
 0x427   : > { %2418 = vst.msk [vmem:[#allocation3 + $0x70] sm:$0xff] %vm2403_vm5, %v4267_v15  ;;  %v2763_v9 = vsel %vm2403_vm5, %v2678_v32, -inf }
 0x428   : > { %2752 = vmax.xlane.f32.xlu1 %v2751_v47  ;;  %v2192_v59 = vpop.f32.mrf.mxu1  ;;  %v2676_v28 = vld [vmem:[#allocation3 + $0x40] sm:$0xff] }
 0x429   : > { %2416 = vst.msk [vmem:[#allocation3 + $0x60] sm:$0xff] %vm2403_vm5, %v2192_v59  ;;  %v2757_v30 = vsel %vm2403_vm5, %v2676_v28, -inf }
 0x42a   : > { %v4268_v46 = vpop.f32.mrf.mxu1  ;;  %v2679_v2 = vld [vmem:[#allocation3 + $0x58] sm:$0xff] }
 0x42b   : > { %2419 = vst.msk [vmem:[#allocation3 + $0x78] sm:$0xff] %vm2403_vm5, %v4268_v46  ;;  %v2766_v14 = vsel %vm2403_vm5, %v2679_v2, -inf }
 0x42c   : > { %2746 = vmax.xlane.f32.xlu1 %v2745_v63  ;;  %v2195_v1 = vpop.f32.mrf.mxu1  ;;  %v2677_v58 = vld [vmem:[#allocation3 + $0x48] sm:$0xff] }
 0x42d   : > { %2417 = vst.msk [vmem:[#allocation3 + $0x68] sm:$0xff] %vm2403_vm5, %v2195_v1  ;;  %v2760_v52 = vsel %vm2403_vm5, %v2677_v58, -inf }
 0x42e   : > { %v4271_v10 = vpop.f32.mrf.mxu1  ;;  %v2682_v36 = vld [vmem:[#allocation3 + $0x70] sm:$0xff] }
 0x42f   : > { %2422 = vst.msk [vmem:[#allocation3 + $0x90] sm:$0xff] %vm2403_vm5, %v4271_v10  ;;  %v2775_v56 = vsel %vm2403_vm5, %v2682_v36, -inf }
 0x430   : > { %2755 = vmax.xlane.f32.xlu1 %v2754_v27  ;;  %v2208_v29 = vpop.f32.mrf.mxu1  ;;  %v2680_v60 = vld [vmem:[#allocation3 + $0x60] sm:$0xff] }
 0x431   : > { %2420 = vst.msk [vmem:[#allocation3 + $0x80] sm:$0xff] %vm2403_vm5, %v2208_v29  ;;  %v2769_v62 = vsel %vm2403_vm5, %v2680_v60, -inf }
 0x432   : > { %v4272_v53 = vpop.f32.mrf.mxu1  ;;  %v2683_v20 = vld [vmem:[#allocation3 + $0x78] sm:$0xff] }
 0x433   : > { %2423 = vst.msk [vmem:[#allocation3 + $0x98] sm:$0xff] %vm2403_vm5, %v4272_v53  ;;  %v2778_v6 = vsel %vm2403_vm5, %v2683_v20, -inf }
 0x434   : > { %2749 = vmax.xlane.f32.xlu1 %v2748_v5  ;;  %2779 = vmax.xlane.f32.xlu0 %v2778_v6  ;;  %v2211_v26 = vpop.f32.mrf.mxu1  ;;  %v2681_v48 = vld [vmem:[#allocation3 + $0x68] sm:$0xff] }
 0x435   : > { %2421 = vst.msk [vmem:[#allocation3 + $0x88] sm:$0xff] %vm2403_vm5, %v2211_v26  ;;  %v2772_v24 = vsel %vm2403_vm5, %v2681_v48, -inf }
 0x436   : > { %v4275_v7 = vpop.f32.mrf.mxu1  ;;  %v2686_v8 = vld [vmem:[#allocation3 + $0x90] sm:$0xff] }
 0x437   : > { %2426 = vst.msk [vmem:[#allocation3 + $0xb0] sm:$0xff] %vm2403_vm5, %v4275_v7  ;;  %v2787_v55 = vsel %vm2403_vm5, %v2686_v8, -inf }
 0x438   : > { %2764 = vmax.xlane.f32.xlu1 %v2763_v9  ;;  %2788 = vmax.xlane.f32.xlu0 %v2787_v55  ;;  %v2224_v17 = vpop.f32.mrf.mxu1  ;;  %v2684_v33 = vld [vmem:[#allocation3 + $0x80] sm:$0xff] }
 0x439   : > { %2424 = vst.msk [vmem:[#allocation3 + $0xa0] sm:$0xff] %vm2403_vm5, %v2224_v17  ;;  %v2781_v18 = vsel %vm2403_vm5, %v2684_v33, -inf }
 0x43a   : > { %v4276_v21 = vpop.f32.mrf.mxu1  ;;  %v2687_v35 = vld [vmem:[#allocation3 + $0x98] sm:$0xff] }
 0x43b   : > { %2427 = vst.msk [vmem:[#allocation3 + $0xb8] sm:$0xff] %vm2403_vm5, %v4276_v21  ;;  %v2790_v34 = vsel %vm2403_vm5, %v2687_v35, -inf }
 0x43c   : > { %2758 = vmax.xlane.f32.xlu1 %v2757_v30  ;;  %2782 = vmax.xlane.f32.xlu0 %v2781_v18  ;;  %v2227_v31 = vpop.f32.mrf.mxu1  ;;  %v2685_v37 = vld [vmem:[#allocation3 + $0x88] sm:$0xff] }
 0x43d   : > { %2425 = vst.msk [vmem:[#allocation3 + $0xa8] sm:$0xff] %vm2403_vm5, %v2227_v31  ;;  %v2784_v54 = vsel %vm2403_vm5, %v2685_v37, -inf }
 0x43e   : > { %v4279_v57 = vpop.f32.mrf.mxu1  ;;  %v2690_v13 = vld [vmem:[#allocation3 + $0xb0] sm:$0xff] }
 0x43f   : > { %2430 = vst.msk [vmem:[#allocation3 + $0xd0] sm:$0xff] %vm2403_vm5, %v4279_v57  ;;  %v2799_v38 = vsel %vm2403_vm5, %v2690_v13, -inf }
 0x440   : > { %2767 = vmax.xlane.f32.xlu1 %v2766_v14  ;;  %2791 = vmax.xlane.f32.xlu0 %v2790_v34  ;;  %v2240_v49 = vpop.f32.mrf.mxu1  ;;  %v2688_v41 = vld [vmem:[#allocation3 + $0xa0] sm:$0xff] }
 0x441   : > { %2428 = vst.msk [vmem:[#allocation3 + $0xc0] sm:$0xff] %vm2403_vm5, %v2240_v49  ;;  %v2793_v40 = vsel %vm2403_vm5, %v2688_v41, -inf }
 0x442   : > { %v4280_v51 = vpop.f32.mrf.mxu1  ;;  %v2691_v61 = vld [vmem:[#allocation3 + $0xb8] sm:$0xff] }
 0x443   : > { %2431 = vst.msk [vmem:[#allocation3 + $0xd8] sm:$0xff] %vm2403_vm5, %v4280_v51  ;;  %v2802_v0 = vsel %vm2403_vm5, %v2691_v61, -inf }
 0x444   : > { %2761 = vmax.xlane.f32.xlu1 %v2760_v52  ;;  %2785 = vmax.xlane.f32.xlu0 %v2784_v54  ;;  %v2243_v11 = vpop.f32.mrf.mxu1  ;;  %v2689_v50 = vld [vmem:[#allocation3 + $0xa8] sm:$0xff] }
 0x445   : > { %2429 = vst.msk [vmem:[#allocation3 + $0xc8] sm:$0xff] %vm2403_vm5, %v2243_v11  ;;  %v2796_v19 = vsel %vm2403_vm5, %v2689_v50, -inf }
 0x446   : > { %v4283_v39 = vpop.f32.mrf.mxu1  ;;  %v2694_v47 = vld [vmem:[#allocation3 + $0xd0] sm:$0xff] }
 0x447   : > { %2434 = vst.msk [vmem:[#allocation3 + $0xf0] sm:$0xff] %vm2403_vm5, %v4283_v39  ;;  %v2811_v12 = vsel %vm2403_vm5, %v2694_v47, -inf }
 0x448   : > { %2776 = vmax.xlane.f32.xlu1 %v2775_v56  ;;  %2800 = vmax.xlane.f32.xlu0 %v2799_v38  ;;  %v2256_v23 = vpop.f32.mrf.mxu1  ;;  %v2692_v63 = vld [vmem:[#allocation3 + $0xc0] sm:$0xff] }
 0x449   : > { %2432 = vst.msk [vmem:[#allocation3 + $0xe0] sm:$0xff] %vm2403_vm5, %v2256_v23  ;;  %v2805_v3 = vsel %vm2403_vm5, %v2692_v63, -inf }
 0x44a   : > { %v4284_v25 = vpop.f32.mrf.mxu1  ;;  %v2695_v27 = vld [vmem:[#allocation3 + $0xd8] sm:$0xff] }
 0x44b   : > { %2435 = vst.msk [vmem:[#allocation3 + $0xf8] sm:$0xff] %vm2403_vm5, %v4284_v25  ;;  %v2814_v4 = vsel %vm2403_vm5, %v2695_v27, -inf }
 0x44c   : > { %2770 = vmax.xlane.f32.xlu1 %v2769_v62  ;;  %2794 = vmax.xlane.f32.xlu0 %v2793_v40  ;;  %v2259_v16 = vpop.f32.mrf.mxu1  ;;  %v2693_v20 = vld [vmem:[#allocation3 + $0xc8] sm:$0xff] }
 0x44d   : > { %2433 = vst.msk [vmem:[#allocation3 + $0xe8] sm:$0xff] %vm2403_vm5, %v2259_v16  ;;  %v2808_v26 = vsel %vm2403_vm5, %v2693_v20, -inf }
 0x44e   : > { %v4287_v43 = vpop.f32.mrf.mxu1  ;;  %v2698_v8 = vld [vmem:[#allocation3 + $0xf0] sm:$0xff] }
 0x44f   : > { %2438 = vst.msk [vmem:[#allocation3 + $0x110] sm:$0xff] %vm2403_vm5, %v4287_v43  ;;  %v2823_v17 = vsel %vm2403_vm5, %v2698_v8, -inf }
 0x450   : > { %2773 = vmax.xlane.f32.xlu1 %v2772_v24  ;;  %2803 = vmax.xlane.f32.xlu0 %v2802_v0  ;;  %v2272_v42 = vpop.f32.mrf.mxu1  ;;  %v2696_v21 = vld [vmem:[#allocation3 + $0xe0] sm:$0xff] }
 0x451   : > { %2436 = vst.msk [vmem:[#allocation3 + $0x100] sm:$0xff] %vm2403_vm5, %v2272_v42  ;;  %v2817_v31 = vsel %vm2403_vm5, %v2696_v21, -inf }
 0x452   : > { %v4288_v22 = vpop.f32.mrf.mxu1  ;;  %v2699_v45 = vld [vmem:[#allocation3 + $0xf8] sm:$0xff] }
 0x453   : > { %2439 = vst.msk [vmem:[#allocation3 + $0x118] sm:$0xff] %vm2403_vm5, %v4288_v22  ;;  %v2826_v44 = vsel %vm2403_vm5, %v2699_v45, -inf }
 0x454   : > { %2797 = vmax.xlane.f32.xlu0 %v2796_v19  ;;  %2827 = vmax.xlane.f32.xlu1 %v2826_v44  ;;  %v2275_v15 = vpop.f32.mrf.mxu1  ;;  %v2697_v57 = vld [vmem:[#allocation3 + $0xe8] sm:$0xff] }
 0x455   : > { %2437 = vst.msk [vmem:[#allocation3 + $0x108] sm:$0xff] %vm2403_vm5, %v2275_v15  ;;  %v2820_v49 = vsel %vm2403_vm5, %v2697_v57, -inf }
 0x456   : > { %v4291_v59 = vpop.f32.mrf.mxu1 }
 0x457   : > { %2442 = vst.msk [vmem:[#allocation3 + $0x130] sm:$0xff] %vm2403_vm5, %v4291_v59 }
 0x458   : > { %2812 = vmax.xlane.f32.xlu0 %v2811_v12  ;;  %v2288_v46 = vpop.f32.mrf.mxu1 }
 0x459   : > { %2440 = vst.msk [vmem:[#allocation3 + $0x120] sm:$0xff] %vm2403_vm5, %v2288_v46 }
 0x45a   : > { %v4292_v1 = vpop.f32.mrf.mxu1 }
 0x45b   : > { %2443 = vst.msk [vmem:[#allocation3 + $0x138] sm:$0xff] %vm2403_vm5, %v4292_v1 }
 0x45c   : > { %2806 = vmax.xlane.f32.xlu0 %v2805_v3  ;;  %v2291_v10 = vpop.f32.mrf.mxu1  ;;  %v2701_v8 = vld [vmem:[#allocation3 + $0x108] sm:$0xff] }
 0x45d   : > { %2441 = vst.msk [vmem:[#allocation3 + $0x128] sm:$0xff] %vm2403_vm5, %v2291_v10 }
 0x45e   : > { %v4295_v29 = vpop.f32.mrf.mxu1  ;;  %v2706_v50 = vld [vmem:[#allocation3 + $0x130] sm:$0xff] }
 0x45f   : > { %2446 = vst.msk [vmem:[#allocation3 + $0x150] sm:$0xff] %vm2403_vm5, %v4295_v29  ;;  %v2847_v19 = vsel %vm2403_vm5, %v2706_v50, -inf }
 0x460   : > { %2815 = vmax.xlane.f32.xlu0 %v2814_v4  ;;  %v2304_v53 = vpop.f32.mrf.mxu1  ;;  %v2704_v3 = vld [vmem:[#allocation3 + $0x120] sm:$0xff]  ;;  %v2703_v4 = vld [vmem:[#allocation3 + $0x118] sm:$0xff] }
 0x461   : > { %2444 = vst.msk [vmem:[#allocation3 + $0x140] sm:$0xff] %vm2403_vm5, %v2304_v53  ;;  %v2841_v27 = vsel %vm2403_vm5, %v2704_v3, -inf }
 0x462   : > { %v4296_v5 = vpop.f32.mrf.mxu1  ;;  %v2707_v6 = vld [vmem:[#allocation3 + $0x138] sm:$0xff] }
 0x463   : > { %2447 = vst.msk [vmem:[#allocation3 + $0x158] sm:$0xff] %vm2403_vm5, %v4296_v5  ;;  %v2850_v32 = vsel %vm2403_vm5, %v2707_v6, -inf  ;;  %v2838_v5 = vsel %vm2403_vm5, %v2703_v4, -inf }
 0x464   : > { %2809 = vmax.xlane.f32.xlu0 %v2808_v26  ;;  %2851 = vmax.xlane.f32.xlu1 %v2850_v32  ;;  %v2307_v7 = vpop.f32.mrf.mxu1  ;;  %v2705_v47 = vld [vmem:[#allocation3 + $0x128] sm:$0xff]  ;;  %v2702_v26 = vld [vmem:[#allocation3 + $0x110] sm:$0xff] }
 0x465   : > { %2445 = vst.msk [vmem:[#allocation3 + $0x148] sm:$0xff] %vm2403_vm5, %v2307_v7  ;;  %v2844_v46 = vsel %vm2403_vm5, %v2705_v47, -inf  ;;  %v2835_v7 = vsel %vm2403_vm5, %v2702_v26, -inf  ;;  %v2940_v47 = vld [vmem:[%s5774_s5 + $0x78] sm:$0xff]  ;;  %v2939_v26 = vld [vmem:[%s5774_s5 + $0x70] sm:$0xff] }
 0x466   : > { %v4299_v9 = vpop.f32.mrf.mxu1  ;;  %v2710_v55 = vld [vmem:[#allocation3 + $0x150] sm:$0xff] }
 0x467   : > { %2450 = vst.msk [vmem:[#allocation3 + $0x170] sm:$0xff] %vm2403_vm5, %v4299_v9  ;;  %v2859_v28 = vsel %vm2403_vm5, %v2710_v55, -inf  ;;  %v2832_v55 = vsel %vm2403_vm5, %v2701_v8, -inf }
 0x468   : > { %2824 = vmax.xlane.f32.xlu0 %v2823_v17  ;;  %2860 = vmax.xlane.f32.xlu1 %v2859_v28  ;;  %v2320_v33 = vpop.f32.mrf.mxu1  ;;  %v2708_v30 = vld [vmem:[#allocation3 + $0x140] sm:$0xff] }
 0x469   : > { %2448 = vst.msk [vmem:[#allocation3 + $0x160] sm:$0xff] %vm2403_vm5, %v2320_v33  ;;  %v2853_v2 = vsel %vm2403_vm5, %v2708_v30, -inf  ;;  %v2700_v28 = vld [vmem:[#allocation3 + $0x100] sm:$0xff] }
 0x46a   : > { %v4300_v18 = vpop.f32.mrf.mxu1  ;;  %v2711_v14 = vld [vmem:[#allocation3 + $0x158] sm:$0xff]  ;;  %v2829_v21 = vsel %vm2403_vm5, %v2700_v28, -inf }
 0x46b   : > { %2451 = vst.msk [vmem:[#allocation3 + $0x178] sm:$0xff] %vm2403_vm5, %v4300_v18  ;;  %v2862_v58 = vsel %vm2403_vm5, %v2711_v14, -inf }
 0x46c   : > { %2818 = vmax.xlane.f32.xlu0 %v2817_v31  ;;  %2854 = vmax.xlane.f32.xlu1 %v2853_v2  ;;  %v2323_v35 = vpop.f32.mrf.mxu1  ;;  %v2709_v51 = vld [vmem:[#allocation3 + $0x148] sm:$0xff] }
 0x46d   : > { %2449 = vst.msk [vmem:[#allocation3 + $0x168] sm:$0xff] %vm2403_vm5, %v2323_v35  ;;  %v2856_v54 = vsel %vm2403_vm5, %v2709_v51, -inf }
 0x46e   : > { %v4303_v34 = vpop.f32.mrf.mxu1  ;;  %v2714_v36 = vld [vmem:[#allocation3 + $0x170] sm:$0xff] }
 0x46f   : > { %2454 = vst.msk [vmem:[#allocation3 + $0x190] sm:$0xff] %vm2403_vm5, %v4303_v34  ;;  %v2871_v39 = vsel %vm2403_vm5, %v2714_v36, -inf }
 0x470   : > { %2821 = vmax.xlane.f32.xlu0 %v2820_v49  ;;  %2863 = vmax.xlane.f32.xlu1 %v2862_v58  ;;  %v2336_v37 = vpop.f32.mrf.mxu1  ;;  %v2712_v38 = vld [vmem:[#allocation3 + $0x160] sm:$0xff] }
 0x471   : > { %2452 = vst.msk [vmem:[#allocation3 + $0x180] sm:$0xff] %vm2403_vm5, %v2336_v37  ;;  %v2865_v60 = vsel %vm2403_vm5, %v2712_v38, -inf }
 0x472   : > { %v4304_v52 = vpop.f32.mrf.mxu1  ;;  %v2715_v25 = vld [vmem:[#allocation3 + $0x178] sm:$0xff] }
 0x473   : > { %2455 = vst.msk [vmem:[#allocation3 + $0x198] sm:$0xff] %vm2403_vm5, %v4304_v52  ;;  %v2874_v40 = vsel %vm2403_vm5, %v2715_v25, -inf  ;;  %v3246_v52 = vld [vmem:[%s5775_s6 + $0x8] sm:$0xff] }
 0x474   : > { %2857 = vmax.xlane.f32.xlu1 %v2856_v54  ;;  %v2339_v11 = vpop.f32.mrf.mxu1  ;;  %v2713_v48 = vld [vmem:[#allocation3 + $0x168] sm:$0xff]  ;;  %3349 = vmatprep.mubr.f32.mxu0 %v3246_v52 }
 0x475   : > { %2453 = vst.msk [vmem:[#allocation3 + $0x188] sm:$0xff] %vm2403_vm5, %v2339_v11  ;;  %v2868_v24 = vsel %vm2403_vm5, %v2713_v48, -inf }
 0x476   : > { %v4307_v13 = vpop.f32.mrf.mxu1 }
 0x477   : > { %2458 = vst.msk [vmem:[#allocation3 + $0x1b0] sm:$0xff] %vm2403_vm5, %v4307_v13 }
 0x478   : > { %2872 = vmax.xlane.f32.xlu1 %v2871_v39  ;;  %v2352_v56 = vpop.f32.mrf.mxu1  ;;  %v2718_v39 = vld [vmem:[#allocation3 + $0x190] sm:$0xff]  ;;  %v2716_v25 = vld [vmem:[#allocation3 + $0x180] sm:$0xff] }
 0x479   : > { %2456 = vst.msk [vmem:[#allocation3 + $0x1a0] sm:$0xff] %vm2403_vm5, %v2352_v56  ;;  %v2883_v38 = vsel %vm2403_vm5, %v2718_v39, -inf }
 0x47a   : > { %v4308_v23 = vpop.f32.mrf.mxu1  ;;  %v2719_v11 = vld [vmem:[#allocation3 + $0x198] sm:$0xff] }
 0x47b   : > { %2459 = vst.msk [vmem:[#allocation3 + $0x1b8] sm:$0xff] %vm2403_vm5, %v4308_v23  ;;  %v2886_v13 = vsel %vm2403_vm5, %v2719_v11, -inf  ;;  %v2936_v11 = vld [vmem:[%s5774_s5 + $0x58] sm:$0xff] }
 0x47c   : > { %2866 = vmax.xlane.f32.xlu1 %v2865_v60  ;;  %v2355_v41 = vpop.f32.mrf.mxu1  ;;  %v2717_v23 = vld [vmem:[#allocation3 + $0x188] sm:$0xff] }
 0x47d   : > { %2457 = vst.msk [vmem:[#allocation3 + $0x1a8] sm:$0xff] %vm2403_vm5, %v2355_v41  ;;  %v2880_v41 = vsel %vm2403_vm5, %v2717_v23, -inf }
 0x47e   : > { %v4311_v62 = vpop.f32.mrf.mxu1  ;;  %v2722_v35 = vld [vmem:[#allocation3 + $0x1b0] sm:$0xff] }
 0x47f   : > { %2462 = vst.msk [vmem:[#allocation3 + $0x1d0] sm:$0xff] %vm2403_vm5, %v4311_v62  ;;  %v2895_v14 = vsel %vm2403_vm5, %v2722_v35, -inf  ;;  %v2937_v35 = vld [vmem:[%s5774_s5 + $0x60] sm:$0xff] }
 0x480   : > { %2875 = vmax.xlane.f32.xlu1 %v2874_v40  ;;  %v2368_v16 = vpop.f32.mrf.mxu1  ;;  %v2720_v37 = vld [vmem:[#allocation3 + $0x1a0] sm:$0xff] }
 0x481   : > { %2460 = vst.msk [vmem:[#allocation3 + $0x1c0] sm:$0xff] %vm2403_vm5, %v2368_v16  ;;  %v2889_v54 = vsel %vm2403_vm5, %v2720_v37, -inf  ;;  %v2877_v16 = vsel %vm2403_vm5, %v2716_v25, -inf  ;;  %v2952_v37 = vld [vmem:[%s5774_s5 + $0xd8] sm:$0xff] }
 0x482   : > { %v4312_v61 = vpop.f32.mrf.mxu1  ;;  %v2723_v43 = vld [vmem:[#allocation3 + $0x1b8] sm:$0xff] }
 0x483   : > { %2463 = vst.msk [vmem:[#allocation3 + $0x1d8] sm:$0xff] %vm2403_vm5, %v4312_v61  ;;  %v2898_v0 = vsel %vm2403_vm5, %v2723_v43, -inf }
 0x484   : > { %2869 = vmax.xlane.f32.xlu1 %v2868_v24  ;;  %2899 = vmax.xlane.f32.xlu0 %v2898_v0  ;;  %v2371_v42 = vpop.f32.mrf.mxu1  ;;  %v2721_v34 = vld [vmem:[#allocation3 + $0x1a8] sm:$0xff] }
 0x485   : > { %2461 = vst.msk [vmem:[#allocation3 + $0x1c8] sm:$0xff] %vm2403_vm5, %v2371_v42  ;;  %v2892_v58 = vsel %vm2403_vm5, %v2721_v34, -inf }
 0x486   : > { %v2726_v22 = vld [vmem:[#allocation3 + $0x1d0] sm:$0xff]  ;;  %v4315_v45 = vpop.f32.mrf.mxu1 }
 0x487   : > { %v2907_v44 = vsel %vm2403_vm5, %v2726_v22, -inf  ;;  %2466 = vst.msk [vmem:[#allocation3 + $0x1f0] sm:$0xff] %vm2403_vm5, %v4315_v45 }
 0x488   : > { %2848 = vmax.xlane.f32.xlu1 %v2847_v19  ;;  %2908 = vmax.xlane.f32.xlu0 %v2907_v44  ;;  %v2384_v15 = vpop.f32.mrf.mxu1  ;;  %v2724_v59 = vld [vmem:[#allocation3 + $0x1c0] sm:$0xff] }
 0x489   : > { %2464 = vst.msk [vmem:[#allocation3 + $0x1e0] sm:$0xff] %vm2403_vm5, %v2384_v15  ;;  %v2901_v63 = vsel %vm2403_vm5, %v2724_v59, -inf }
 0x48a   : > { %v4316_v12 = vpop.f32.mrf.mxu1  ;;  %v2727_v10 = vld [vmem:[#allocation3 + $0x1d8] sm:$0xff] }
 0x48b   : > { %2467 = vst.msk [vmem:[#allocation3 + $0x1f8] sm:$0xff] %vm2403_vm5, %v4316_v12  ;;  %v2910_v29 = vsel %vm2403_vm5, %v2727_v10, -inf }
 0x48c   : > { %2845 = vmax.xlane.f32.xlu1 %v2844_v46  ;;  %2902 = vmax.xlane.f32.xlu0 %v2901_v63  ;;  %v2387_v1 = vpop.f32.mrf.mxu1  ;;  %v2725_v53 = vld [vmem:[#allocation3 + $0x1c8] sm:$0xff] }
 0x48d   : > { %2465 = vst.msk [vmem:[#allocation3 + $0x1e8] sm:$0xff] %vm2403_vm5, %v2387_v1  ;;  %v2904_v6 = vsel %vm2403_vm5, %v2725_v53, -inf  ;;  %v2956_v63 = vld [vmem:[%s5774_s5 + $0xf8] sm:$0xff] }
 0x48e   : > { %v2730_v20 = vld [vmem:[#allocation3 + $0x1f0] sm:$0xff] }
 0x48f   : > { %v2919_v32 = vsel %vm2403_vm5, %v2730_v20, -inf }
 0x490   : > { %2842 = vmax.xlane.f32.xlu1 %v2841_v27  ;;  %2911 = vmax.xlane.f32.xlu0 %v2910_v29  ;;  %v2728_v9 = vld [vmem:[#allocation3 + $0x1e0] sm:$0xff] }
 0x491   : > { %v2913_v17 = vsel %vm2403_vm5, %v2728_v9, -inf  ;;  %v2955_v9 = vld [vmem:[%s5774_s5 + $0xf0] sm:$0xff] }
 0x492   : > { %v2731_v33 = vld [vmem:[#allocation3 + $0x1f8] sm:$0xff] }
 0x493   : > { %v2922_v30 = vsel %vm2403_vm5, %v2731_v33, -inf }
 0x494   : > { %2839 = vmax.xlane.f32.xlu1 %v2838_v5  ;;  %2905 = vmax.xlane.f32.xlu0 %v2904_v6  ;;  %v2729_v18 = vld [vmem:[#allocation3 + $0x1e8] sm:$0xff] }
 0x495   : > { %v2916_v2 = vsel %vm2403_vm5, %v2729_v18, -inf  ;;  %v2953_v18 = vld [vmem:[%s5774_s5 + $0xe0] sm:$0xff] }
 0x498   : > { %2836 = vmax.xlane.f32.xlu1 %v2835_v7  ;;  %2920 = vmax.xlane.f32.xlu0 %v2919_v32 }
 0x49c   : > { %2833 = vmax.xlane.f32.xlu1 %v2832_v55  ;;  %2914 = vmax.xlane.f32.xlu0 %v2913_v17 }
 0x4a0   : > { %2830 = vmax.xlane.f32.xlu1 %v2829_v21  ;;  %2923 = vmax.xlane.f32.xlu0 %v2922_v30  ;;  %v2938_v21 = vld [vmem:[%s5774_s5 + $0x68] sm:$0xff] }
 0x4a1   : > { %v5222_v31 = vpop.xlane.xlu1 %2740 }
 0x4a4   : > { %2917 = vmax.xlane.f32.xlu0 %v2916_v2 }
 0x4a5   : > { %v5225_v57 = vpop.xlane.xlu1 %2734 }
 0x4a8   : > { %2896 = vmax.xlane.f32.xlu0 %v2895_v14 }
 0x4a9   : > { %v5228_v49 = vpop.xlane.xlu1 %2743 }
 0x4ac   : > { %2893 = vmax.xlane.f32.xlu0 %v2892_v58 }
 0x4ad   : > { %v5231_v51 = vpop.xlane.xlu1 %2737 }
 0x4b0   : > { %2890 = vmax.xlane.f32.xlu0 %v2889_v54  ;;  %v2954_v54 = vld [vmem:[%s5774_s5 + $0xe8] sm:$0xff] }
 0x4b1   : > { %v5237_v36 = vpop.xlane.xlu1 %2752 }
 0x4b4   : > { %2887 = vmax.xlane.f32.xlu0 %v2886_v13 }
 0x4b5   : > { %v5240_v56 = vpop.xlane.xlu1 %2746 }
 0x4b8   : > { %2884 = vmax.xlane.f32.xlu0 %v2883_v38  ;;  %v2951_v38 = vld [vmem:[%s5774_s5 + $0xd0] sm:$0xff] }
 0x4b9   : > { %v5243_v60 = vpop.xlane.xlu1 %2755 }
 0x4bc   : > { %2881 = vmax.xlane.f32.xlu0 %v2880_v41  ;;  %v2935_v41 = vld [vmem:[%s5774_s5 + $0x50] sm:$0xff] }
 0x4bd   : > { %v5246_v62 = vpop.xlane.xlu1 %2749  ;;  %v2780_v40 = vpop.xlane.xlu0 %2779 }
 0x4be   : > { %v3004_v46 = vadd.f32 %v2940_v47, %v2780_v40  ;;  %v2950_v47 = vld [vmem:[%s5774_s5 + $0xc8] sm:$0xff] }
 0x4c0   : > { %2878 = vmax.xlane.f32.xlu0 %v2877_v16  ;;  %v3132_v27 = vmul.f32 0.2, %v3004_v46  ;;  %vm3068_vm6 = vcmp.gt.f32.partialorder %v3004_v46, 0.0 }
 0x4c1   : > { %v5249_v48 = vpop.xlane.xlu1 %2764  ;;  %v5251_v61 = vpop.xlane.xlu0 %2788 }
 0x4c2   : > { %v3196_v20 = vsel %vm3068_vm6, %v3004_v46, %v3132_v27 }
 0x4c5   : > { %v5253_v43 = vpop.xlane.xlu1 %2758  ;;  %v5255_v24 = vpop.xlane.xlu0 %2782 }
 0x4c9   : > { %v2768_v0 = vpop.xlane.xlu1 %2767  ;;  %v5257_v42 = vpop.xlane.xlu0 %2791 }
 0x4ca   : > { %v3000_v16 = vadd.f32 %v2936_v11, %v2768_v0  ;;  %v2949_v0 = vld [vmem:[%s5774_s5 + $0xc0] sm:$0xff] }
 0x4cc   : > { %vm3064_vm0 = vcmp.gt.f32.partialorder %v3000_v16, 0.0 }
 0x4cd   : > { %v5259_v50 = vpop.xlane.xlu1 %2761  ;;  %v5261_v22 = vpop.xlane.xlu0 %2785 }
 0x4d1   : > { %v2777_v45 = vpop.xlane.xlu1 %2776  ;;  %v5263_v19 = vpop.xlane.xlu0 %2800 }
 0x4d2   : > { %v3003_v8 = vadd.f32 %v2939_v26, %v2777_v45 }
 0x4d4   : > { %v3131_v33 = vmul.f32 0.2, %v3003_v8  ;;  %vm3067_vm8 = vcmp.gt.f32.partialorder %v3003_v8, 0.0 }
 0x4d5   : > { %v2771_v44 = vpop.xlane.xlu1 %2770  ;;  %v5265_v15 = vpop.xlane.xlu0 %2794 }
 0x4d6   : > { %v3195_v52 = vsel %vm3067_vm8, %v3003_v8, %v3131_v33  ;;  %v3001_v39 = vadd.f32 %v2937_v35, %v2771_v44  ;;  %v2934_v44 = vld [vmem:[%s5774_s5 + $0x48] sm:$0xff] }
 0x4d7   : > { %v2998_v26 = vadd.f32 %v2934_v44, %v5259_v50  ;;  %v2928_v44 = vld [vmem:[%s5774_s5 + $0x18] sm:$0xff] }
 0x4d8   : > { %v3129_v27 = vmul.f32 0.2, %v3001_v39  ;;  %vm3065_vm14 = vcmp.gt.f32.partialorder %v3001_v39, 0.0 }
 0x4d9   : > { %v2774_v59 = vpop.xlane.xlu1 %2773  ;;  %v5270_v12 = vpop.xlane.xlu0 %2803  ;;  %vm3062_vm5 = vcmp.gt.f32.partialorder %v2998_v26, 0.0 }
 0x4da   : > { %v3002_v58 = vadd.f32 %v2938_v21, %v2774_v59  ;;  %v2947_v21 = vld [vmem:[%s5774_s5 + $0xb0] sm:$0xff] }
 0x4dc   : > { %vm3066_vm10 = vcmp.gt.f32.partialorder %v3002_v58, 0.0  ;;  %v3130_v45 = vmul.f32 0.2, %v3002_v58 }
 0x4dd   : > { %v5275_v1 = vpop.xlane.xlu0 %2797  ;;  %v2828_v3 = vpop.xlane.xlu1 %2827 }
 0x4de   : > { %v3020_v10 = vadd.f32 %v2956_v63, %v2828_v3  ;;  %v3194_v8 = vsel %vm3066_vm10, %v3002_v58, %v3130_v45  ;;  %v3126_v58 = vmul.f32 0.2, %v2998_v26  ;;  %v2944_v45 = vld [vmem:[%s5774_s5 + $0x98] sm:$0xff] }
 0x4e0   : > { %v3148_v29 = vmul.f32 0.2, %v3020_v10  ;;  %vm3084_vm7 = vcmp.gt.f32.partialorder %v3020_v10, 0.0 }
 0x4e1   : > { %v2813_v4 = vpop.xlane.xlu0 %2812 }
 0x4e2   : > { %v3212_v53 = vsel %vm3084_vm7, %v3020_v10, %v3148_v29  ;;  %v3015_v59 = vadd.f32 %v2951_v38, %v2813_v4  ;;  %v2999_v10 = vadd.f32 %v2935_v41, %v5249_v48  ;;  %v2933_v29 = vld [vmem:[%s5774_s5 + $0x40] sm:$0xff]  ;;  %v2948_v48 = vld [vmem:[%s5774_s5 + $0xb8] sm:$0xff] }
 0x4e3   : > { %4055 = vmatprep.subr.mxu0 %v3212_v53  ;;  %v2997_v50 = vadd.f32 %v2933_v29, %v5253_v43  ;;  %v2945_v38 = vld [vmem:[%s5774_s5 + $0xa0] sm:$0xff]  ;;  %v3008_v29 = vadd.f32 %v2944_v45, %v5257_v42  ;;  %v3250_v45 = vld [vmem:[%s5775_s6 + $0x28] sm:$0xff] }
 0x4e4   : > { %4056 = vmatpush3.msra.mxu0 %v3196_v20  ;;  %v3127_v33 = vmul.f32 0.2, %v2999_v10  ;;  %vm3079_vm1 = vcmp.gt.f32.partialorder %v3015_v59, 0.0  ;;  %vm3063_vm2 = vcmp.gt.f32.partialorder %v2999_v10, 0.0  ;;  %v2929_v41 = vld [vmem:[%s5774_s5 + $0x20] sm:$0xff] }
 0x4e5   : > { %v2807_v5 = vpop.xlane.xlu0 %2806  ;;  %vm3061_vm7 = vcmp.gt.f32.partialorder %v2997_v50, 0.0 }
 0x4e9   : > { %v2816_v6 = vpop.xlane.xlu0 %2815 }
 0x4ea   : > { %v3016_v25 = vadd.f32 %v2952_v37, %v2816_v6  ;;  %v3128_v6 = vmul.f32 0.2, %v3000_v16  ;;  %v2946_v37 = vld [vmem:[%s5774_s5 + $0xa8] sm:$0xff] }
 0x4ec   : > { %v3144_v53 = vmul.f32 0.2, %v3016_v25  ;;  %vm3080_vm15 = vcmp.gt.f32.partialorder %v3016_v25, 0.0 }
 0x4ed   : > { %v2810_v32 = vpop.xlane.xlu0 %2809  ;;  %v5280_v7 = vpop.xlane.xlu1 %2851 }
 0x4ee   : > { %v3014_v4 = vadd.f32 %v2950_v47, %v2810_v32  ;;  %v3208_v43 = vsel %vm3080_vm15, %v3016_v25, %v3144_v53  ;;  %v3010_v25 = vadd.f32 %v2946_v37, %v5275_v1  ;;  %v3190_v47 = vsel %vm3062_vm5, %v2998_v26, %v3126_v58 }
 0x4f0   : > { %vm3078_vm4 = vcmp.gt.f32.partialorder %v3014_v4, 0.0  ;;  %v3138_v53 = vmul.f32 0.2, %v3010_v25 }
 0x4f1   : > { %v2825_v55 = vpop.xlane.xlu0 %2824  ;;  %v5285_v17 = vpop.xlane.xlu1 %2860 }
 0x4f2   : > { %v3019_v28 = vadd.f32 %v2955_v9, %v2825_v55  ;;  %v2932_v9 = vld [vmem:[%s5774_s5 + $0x38] sm:$0xff]  ;;  %v3143_v55 = vmul.f32 0.2, %v3015_v59 }
 0x4f4   : > { %v3147_v30 = vmul.f32 0.2, %v3019_v28  ;;  %vm3083_vm9 = vcmp.gt.f32.partialorder %v3019_v28, 0.0 }
 0x4f5   : > { %v2819_v2 = vpop.xlane.xlu0 %2818  ;;  %v5296_v14 = vpop.xlane.xlu1 %2854 }
 0x4f6   : > { %v3211_v34 = vsel %vm3083_vm9, %v3019_v28, %v3147_v30  ;;  %v3017_v13 = vadd.f32 %v2953_v18, %v2819_v2  ;;  %v3013_v28 = vadd.f32 %v2949_v0, %v2807_v5  ;;  %v3193_v30 = vsel %vm3065_vm14, %v3001_v39, %v3129_v27  ;;  %v2931_v18 = vld [vmem:[%s5774_s5 + $0x30] sm:$0xff] }
 0x4f7   : > { %4057 = vmatprep.subr.mxu0 %v3211_v34  ;;  %v3012_v5 = vadd.f32 %v2948_v48, %v5270_v12  ;;  %v3142_v2 = vmul.f32 0.2, %v3014_v4  ;;  %v2996_v34 = vadd.f32 %v2932_v9, %v5243_v60  ;;  %v2930_v12 = vld [vmem:[%s5774_s5 + $0x28] sm:$0xff]  ;;  %v3207_v60 = vsel %vm3079_vm1, %v3015_v59, %v3143_v55  ;;  %v2943_v27 = vld [vmem:[%s5774_s5 + $0x90] sm:$0xff] }
 0x4f8   : > { %4058 = vmatpush3.msra.mxu0 %v3195_v52  ;;  %v3145_v46 = vmul.f32 0.2, %v3017_v13  ;;  %vm3081_vm13 = vcmp.gt.f32.partialorder %v3017_v13, 0.0  ;;  %v3192_v52 = vsel %vm3064_vm0, %v3000_v16, %v3128_v6  ;;  %v3141_v11 = vmul.f32 0.2, %v3013_v28  ;;  %v2942_v6 = vld [vmem:[%s5774_s5 + $0x88] sm:$0xff] }
 0x4f9   : > { %v2822_v23 = vpop.xlane.xlu0 %2821  ;;  %v5319_v3 = vpop.xlane.xlu1 %2863  ;;  %v3125_v39 = vmul.f32 0.2, %v2997_v50  ;;  %vm3077_vm6 = vcmp.gt.f32.partialorder %v3013_v28, 0.0  ;;  %v2994_v16 = vadd.f32 %v2930_v12, %v5246_v62  ;;  %vm3076_vm8 = vcmp.gt.f32.partialorder %v3012_v5, 0.0  ;;  %v2926_v48 = vld [vmem:[%s5774_s5 + $0x8] sm:$0xff] }
 0x4fa   : > { %v3018_v40 = vadd.f32 %v2954_v54, %v2822_v23  ;;  %v3209_v32 = vsel %vm3081_vm13, %v3017_v13, %v3145_v46  ;;  %v3011_v54 = vadd.f32 %v2947_v21, %v5263_v19  ;;  %v2995_v13 = vadd.f32 %v2931_v18, %v5237_v36 }
 0x4fb   : > { %v3191_v23 = vsel %vm3063_vm2, %v2999_v10, %v3127_v33  ;;  %v3140_v19 = vmul.f32 0.2, %v3012_v5  ;;  %v3206_v36 = vsel %vm3078_vm4, %v3014_v4, %v3142_v2  ;;  %vm3060_vm9 = vcmp.gt.f32.partialorder %v2996_v34, 0.0 }
 0x4fc   : > { %v3146_v63 = vmul.f32 0.2, %v3018_v40  ;;  %vm3082_vm12 = vcmp.gt.f32.partialorder %v3018_v40, 0.0  ;;  %v3139_v1 = vmul.f32 0.2, %v3011_v54  ;;  %v3009_v59 = vadd.f32 %v2945_v38, %v5265_v15  ;;  %v2927_v15 = vld [vmem:[%s5774_s5 + $0x10] sm:$0xff] }
 0x4fd   : > { %v5346_v35 = vpop.xlane.xlu1 %2857  ;;  %v3205_v62 = vsel %vm3077_vm6, %v3013_v28, %v3141_v11  ;;  %v2993_v10 = vadd.f32 %v2929_v41, %v5240_v56  ;;  %v3189_v0 = vsel %vm3061_vm7, %v2997_v50, %v3125_v39  ;;  %vm3075_vm10 = vcmp.gt.f32.partialorder %v3011_v54, 0.0  ;;  %v2941_v28 = vld [vmem:[%s5774_s5 + $0x80] sm:$0xff] }
 0x4fe   : > { %v3210_v20 = vsel %vm3082_vm12, %v3018_v40, %v3146_v63  ;;  %v3124_v40 = vmul.f32 0.2, %v2996_v34  ;;  %v3123_v63 = vmul.f32 0.2, %v2995_v13  ;;  %vm3059_vm12 = vcmp.gt.f32.partialorder %v2995_v13, 0.0 }
 0x4ff   : > { %4059 = vmatprep.subr.mxu0 %v3210_v20  ;;  %v3204_v4 = vsel %vm3076_vm8, %v3012_v5, %v3140_v19  ;;  %v2992_v56 = vadd.f32 %v2928_v44, %v5228_v49  ;;  %v3122_v20 = vmul.f32 0.2, %v2994_v16  ;;  %vm3074_vm13 = vcmp.gt.f32.partialorder %v3010_v25, 0.0  ;;  %v3249_v44 = vld [vmem:[%s5775_s6 + $0x20] sm:$0xff] }
 0x500   : > { %4060 = vmatpush3.msra.mxu0 %v3194_v8  ;;  %v3188_v26 = vsel %vm3060_vm9, %v2996_v34, %v3124_v40  ;;  %vm3058_vm14 = vcmp.gt.f32.partialorder %v2994_v16, 0.0  ;;  %v3007_v42 = vadd.f32 %v2943_v27, %v5251_v61  ;;  %v3137_v8 = vmul.f32 0.2, %v3009_v59  ;;  %v2925_v61 = vld [vmem:[%s5774_s5] sm:$0xff]  ;;  %v3258_v27 = vld [vmem:[%s5775_s6 + $0x68] sm:$0xff] }
 0x501   : > { %4061 = vmatprep.subr.mxu0 %v3209_v32  ;;  %v5378_v46 = vpop.xlane.xlu1 %2872  ;;  %v3203_v49 = vsel %vm3075_vm10, %v3011_v54, %v3139_v1  ;;  %v2991_v9 = vadd.f32 %v2927_v15, %v5222_v31  ;;  %v3121_v55 = vmul.f32 0.2, %v2993_v10  ;;  %v3187_v33 = vsel %vm3059_vm12, %v2995_v13, %v3123_v63  ;;  %v3253_v63 = vld [vmem:[%s5775_s6 + $0x40] sm:$0xff] }
 0x502   : > { %4062 = vmatpush3.msra.mxu0 %v3193_v30  ;;  %vm3073_vm15 = vcmp.gt.f32.partialorder %v3009_v59, 0.0  ;;  %vm3057_vm0 = vcmp.gt.f32.partialorder %v2993_v10, 0.0  ;;  %v3136_v50 = vmul.f32 0.2, %v3008_v29  ;;  %v3006_v21 = vadd.f32 %v2942_v6, %v5261_v22  ;;  %v3257_v15 = vld [vmem:[%s5775_s6 + $0x60] sm:$0xff] }
 0x503   : > { %4063 = vmatprep.subr.mxu0 %v3208_v43  ;;  %v3202_v30 = vsel %vm3074_vm13, %v3010_v25, %v3138_v53  ;;  %v3120_v18 = vmul.f32 0.2, %v2992_v56  ;;  %v2990_v5 = vadd.f32 %v2926_v48, %v5231_v51  ;;  %v3186_v2 = vsel %vm3058_vm14, %v2994_v16, %v3122_v20  ;;  %v2970_v48 = vld [vmem:[%s5774_s5 + $0x168] sm:$0xff] }
 0x504   : > { %4064 = vmatpush3.msra.mxu0 %v3192_v52  ;;  %vm3072_vm1 = vcmp.gt.f32.partialorder %v3008_v29, 0.0  ;;  %vm3056_vm2 = vcmp.gt.f32.partialorder %v2992_v56, 0.0  ;;  %v3135_v43 = vmul.f32 0.2, %v3007_v42  ;;  %v3005_v34 = vadd.f32 %v2941_v28, %v5255_v24  ;;  %v3266_v28 = vld [vmem:[%s5775_s6 + $0xa8] sm:$0xff] }
 0x505   : > { %4065 = vmatprep.subr.mxu0 %v3207_v60  ;;  %v5412_v31 = vpop.xlane.xlu1 %2866  ;;  %v3201_v58 = vsel %vm3073_vm15, %v3009_v59, %v3137_v8  ;;  %v3119_v22 = vmul.f32 0.2, %v2991_v9  ;;  %v2989_v37 = vadd.f32 %v2925_v61, %v5225_v57  ;;  %v3185_v12 = vsel %vm3057_vm0, %v2993_v10, %v3121_v55  ;;  %v3254_v59 = vld [vmem:[%s5775_s6 + $0x48] sm:$0xff]  ;;  %v3261_v8 = vld [vmem:[%s5775_s6 + $0x80] sm:$0xff] }
 0x506   : > { %4066 = vmatpush3.msra.mxu0 %v3191_v23  ;;  %vm3071_vm4 = vcmp.gt.f32.partialorder %v3007_v42, 0.0  ;;  %vm3055_vm5 = vcmp.gt.f32.partialorder %v2991_v9, 0.0  ;;  %v3134_v51 = vmul.f32 0.2, %v3006_v21  ;;  %v3200_v54 = vsel %vm3072_vm1, %v3008_v29, %v3136_v50  ;;  %v2987_v29 = vld [vmem:[%s5774_s5 + $0x1f0] sm:$0xff]  ;;  %v2969_v61 = vld [vmem:[%s5774_s5 + $0x160] sm:$0xff] }
 0x507   : > { %4067 = vmatprep.subr.mxu0 %v3206_v36  ;;  %v3118_v11 = vmul.f32 0.2, %v2990_v5  ;;  %v3184_v24 = vsel %vm3056_vm2, %v2992_v56, %v3120_v18  ;;  %vm3070_vm6 = vcmp.gt.f32.partialorder %v3006_v21, 0.0  ;;  %vm3054_vm7 = vcmp.gt.f32.partialorder %v2990_v5, 0.0  ;;  %v3245_v36 = vld [vmem:[%s5775_s6] sm:$0xff]  ;;  %v2971_v56 = vld [vmem:[%s5774_s5 + $0x170] sm:$0xff] }
 0x508   : > { %4068 = vmatpush3.msra.mxu0 %v3190_v47  ;;  %v3133_v60 = vmul.f32 0.2, %v3005_v34  ;;  %v3199_v57 = vsel %vm3071_vm4, %v3007_v42, %v3135_v43  ;;  %v3117_v39 = vmul.f32 0.2, %v2989_v37  ;;  %v3183_v23 = vsel %vm3055_vm5, %v2991_v9, %v3119_v22  ;;  %v2985_v9 = vld [vmem:[%s5774_s5 + $0x1e0] sm:$0xff]  ;;  %v2984_v18 = vld [vmem:[%s5774_s5 + $0x1d8] sm:$0xff] }
 0x509   : > { %4069 = vmatprep.subr.mxu0 %v3205_v62  ;;  %v2876_v13 = vpop.xlane.xlu1 %2875  ;;  %vm3069_vm8 = vcmp.gt.f32.partialorder %v3005_v34, 0.0  ;;  %vm3053_vm9 = vcmp.gt.f32.partialorder %v2989_v37, 0.0  ;;  %v3198_v41 = vsel %vm3070_vm6, %v3006_v21, %v3134_v51  ;;  %v3182_v19 = vsel %vm3054_vm7, %v2990_v5, %v3118_v11  ;;  %v2986_v5 = vld [vmem:[%s5774_s5 + $0x1e8] sm:$0xff]  ;;  %v3265_v22 = vld [vmem:[%s5775_s6 + $0xa0] sm:$0xff] }
 0x50a   : > { %4070 = vmatpush3.msra.mxu0 %v3189_v0  ;;  %v3197_v25 = vsel %vm3069_vm8, %v3005_v34, %v3133_v60  ;;  %v3181_v16 = vsel %vm3053_vm9, %v2989_v37, %v3117_v39  ;;  %v2972_v0 = vld [vmem:[%s5774_s5 + $0x178] sm:$0xff]  ;;  %v3033_v51 = vadd.f32 %v2969_v61, %v5412_v31  ;;  %v3270_v11 = vld [vmem:[%s5775_s6 + $0xc8] sm:$0xff] }
 0x50b   : > { %4071 = vmatprep.subr.mxu0 %v3204_v4  ;;  %v3262_v4 = vld [vmem:[%s5775_s6 + $0x88] sm:$0xff]  ;;  %v3036_v6 = vadd.f32 %v2972_v0, %v2876_v13 }
 0x50c   : > { %4072 = vmatpush3.msra.mxu0 %v3188_v26  ;;  %v2988_v26 = vld [vmem:[%s5774_s5 + $0x1f8] sm:$0xff]  ;;  %vm3097_vm2 = vcmp.gt.f32.partialorder %v3033_v51, 0.0 }
 0x50d   : > { %4073 = vmatprep.subr.mxu0 %v3203_v49  ;;  %v5405_v32 = vpop.xlane.xlu0 %2899  ;;  %v2870_v47 = vpop.xlane.xlu1 %2869  ;;  %v3035_v49 = vadd.f32 %v2971_v56, %v5378_v46  ;;  %vm3100_vm10 = vcmp.gt.f32.partialorder %v3036_v6, 0.0  ;;  %v3164_v46 = vmul.f32 0.2, %v3036_v6 }
 0x50e   : > { %4074 = vmatpush3.msra.mxu0 %v3187_v33  ;;  %v2968_v33 = vld [vmem:[%s5774_s5 + $0x158] sm:$0xff]  ;;  %v3034_v21 = vadd.f32 %v2970_v48, %v2870_v47 }
 0x50f   : > { %4075 = vmatprep.subr.mxu0 %v3202_v30  ;;  %v2983_v30 = vld [vmem:[%s5774_s5 + $0x1d0] sm:$0xff]  ;;  %v5503_v37 = vadd.f32 %v2968_v33, %v5319_v3  ;;  %vm3099_vm14 = vcmp.gt.f32.partialorder %v3035_v49, 0.0  ;;  %v2966_v3 = vld [vmem:[%s5774_s5 + $0x148] sm:$0xff] }
 0x510   : > { %4076 = vmatpush3.msra.mxu0 %v3186_v2  ;;  %vm3098_vm15 = vcmp.gt.f32.partialorder %v3034_v21, 0.0  ;;  %v3162_v31 = vmul.f32 0.2, %v3034_v21 }
 0x511   : > { %4077 = vmatprep.subr.mxu0 %v3201_v58  ;;  %v5420_v52 = vpop.xlane.xlu0 %2908  ;;  %v5441_v62 = vpop.xlane.xlu1 %2848  ;;  %vm3096_vm5 = vcmp.gt.f32.partialorder %v5503_v37, 0.0 }
 0x512   : > { %4078 = vmatpush3.msra.mxu0 %v3185_v12  ;;  %v3163_v12 = vmul.f32 0.2, %v3035_v49  ;;  %v5516_v39 = vadd.f32 %v2983_v30, %v5420_v52  ;;  %v3269_v52 = vld [vmem:[%s5775_s6 + $0xc0] sm:$0xff] }
 0x513   : > { %4079 = vmatprep.subr.mxu0 %v3200_v54 }
 0x514   : > { %4080 = vmatpush3.msra.mxu0 %v3184_v24  ;;  %v2967_v24 = vld [vmem:[%s5774_s5 + $0x150] sm:$0xff]  ;;  %v3175_v56 = vmul.f32 0.2, %v5516_v39  ;;  %vm3111_vm6 = vcmp.gt.f32.partialorder %v5516_v39, 0.0 }
 0x515   : > { %4081 = vmatprep.subr.mxu0 %v3199_v57  ;;  %v5424_v38 = vpop.xlane.xlu0 %2902  ;;  %v5464_v20 = vpop.xlane.xlu1 %2845 }
 0x516   : > { %4082 = vmatpush3.msra.mxu0 %v3183_v23  ;;  %v2982_v23 = vld [vmem:[%s5774_s5 + $0x1c8] sm:$0xff] }
 0x517   : > { %4083 = vmatprep.subr.mxu0 %v3198_v41  ;;  %v3228_v41 = vsel %vm3100_vm10, %v3036_v6, %v3164_v46  ;;  %v2978_v46 = vld [vmem:[%s5774_s5 + $0x1a8] sm:$0xff] }
 0x518   : > { %4084 = vmatpush3.msra.mxu0 %v3182_v19 }
 0x519   : > { %4085 = vmatprep.subr.mxu0 %v3197_v25  ;;  %v2912_v40 = vpop.xlane.xlu0 %2911  ;;  %v5497_v2 = vpop.xlane.xlu1 %2842 }
 0x51a   : > { %4086 = vmatpush3.msra.mxu0 %v3181_v16  ;;  %v3048_v60 = vadd.f32 %v2984_v18, %v2912_v40  ;;  %v5527_v40 = vadd.f32 %v2967_v24, %v5285_v17  ;;  %v3161_v16 = vmul.f32 0.2, %v3033_v51 }
 0x51b   : > { %3350 = vmatmul.mubr.f32.vlgmr.msra.gmra.mxu0 %v3245_v36 }
 0x51c   : > { %3354 = vmatprep.mubr.f32.mxu0 %v3250_v45  ;;  %v2981_v45 = vld [vmem:[%s5774_s5 + $0x1c0] sm:$0xff]  ;;  %v3176_v17 = vmul.f32 0.2, %v3048_v60  ;;  %vm3112_vm4 = vcmp.gt.f32.partialorder %v3048_v60, 0.0  ;;  %v3159_v48 = vmul.f32 0.2, %v5527_v40 }
 0x51d   : > { %v5436_v1 = vpop.xlane.xlu0 %2905  ;;  %v3045_v6 = vadd.f32 %v2981_v45, %v5424_v38  ;;  %v3225_v38 = vsel %vm3097_vm2, %v3033_v51, %v3161_v16  ;;  %vm3095_vm7 = vcmp.gt.f32.partialorder %v5527_v40, 0.0  ;;  %v2961_v51 = vld [vmem:[%s5774_s5 + $0x120] sm:$0xff] }
 0x51e   : > { %v3240_v33 = vsel %vm3112_vm4, %v3048_v60, %v3176_v17 }
 0x51f   : > { %3355 = vmatmul.mubr.f32.gmra.mxu0 %v3249_v44  ;;  %v3227_v44 = vsel %vm3099_vm14, %v3035_v49, %v3163_v12  ;;  %v3173_v30 = vmul.f32 0.2, %v3045_v6  ;;  %vm3109_vm10 = vcmp.gt.f32.partialorder %v3045_v6, 0.0 }
 0x520   : > { %3359 = vmatprep.mubr.f32.mxu0 %v3254_v59  ;;  %v3274_v59 = vld [vmem:[%s5775_s6 + $0xe8] sm:$0xff] }
 0x521   : > { %v2921_v10 = vpop.xlane.xlu0 %2920 }
 0x522   : > { %v3051_v42 = vadd.f32 %v2987_v29, %v2921_v10  ;;  %v5539_v10 = vpop.xlane.xlu1 %2839  ;;  %v3030_v29 = vadd.f32 %v2966_v3, %v5346_v35 }
 0x523   : > { %3360 = vmatmul.mubr.f32.gmra.mxu0 %v3253_v63  ;;  %v2965_v63 = vld [vmem:[%s5774_s5 + $0x140] sm:$0xff] }
 0x524   : > { %3364 = vmatprep.mubr.f32.mxu0 %v3258_v27  ;;  %v3179_v43 = vmul.f32 0.2, %v3051_v42  ;;  %vm3115_vm13 = vcmp.gt.f32.partialorder %v3051_v42, 0.0  ;;  %v3046_v27 = vadd.f32 %v2982_v23, %v5436_v1  ;;  %v2964_v1 = vld [vmem:[%s5774_s5 + $0x138] sm:$0xff]  ;;  %vm3094_vm9 = vcmp.gt.f32.partialorder %v3030_v29, 0.0 }
 0x525   : > { %v2915_v53 = vpop.xlane.xlu0 %2914  ;;  %v3028_v61 = vadd.f32 %v2964_v1, %v5280_v7 }
 0x526   : > { %v3049_v34 = vadd.f32 %v2985_v9, %v2915_v53  ;;  %v3243_v36 = vsel %vm3115_vm13, %v3051_v42, %v3179_v43  ;;  %v2980_v53 = vld [vmem:[%s5774_s5 + $0x1b8] sm:$0xff]  ;;  %v3029_v42 = vadd.f32 %v2965_v63, %v5296_v14  ;;  %v2963_v14 = vld [vmem:[%s5774_s5 + $0x130] sm:$0xff]  ;;  %vm3110_vm8 = vcmp.gt.f32.partialorder %v3046_v27, 0.0  ;;  %v2837_v18 = vpop.xlane.xlu1 %2836 }
 0x527   : > { %3365 = vmatmul.mubr.f32.gmra.mxu0 %v3257_v15  ;;  %v3160_v15 = vmul.f32 0.2, %v5503_v37  ;;  %v3248_v9 = vld [vmem:[%s5775_s6 + $0x18] sm:$0xff]  ;;  %vm3092_vm14 = vcmp.gt.f32.partialorder %v3028_v61, 0.0 }
 0x528   : > { %3369 = vmatprep.mubr.f32.mxu0 %v3262_v4  ;;  %v3177_v19 = vmul.f32 0.2, %v3049_v34  ;;  %vm3113_vm1 = vcmp.gt.f32.partialorder %v3049_v34, 0.0  ;;  %v3226_v4 = vsel %vm3098_vm15, %v3034_v21, %v3162_v31  ;;  %v2962_v21 = vld [vmem:[%s5774_s5 + $0x128] sm:$0xff]  ;;  %v3157_v43 = vmul.f32 0.2, %v3029_v42 }
 0x529   : > { %v2924_v55 = vpop.xlane.xlu0 %2923  ;;  %v3026_v24 = vadd.f32 %v2962_v21, %v5464_v20  ;;  %v3025_v20 = vadd.f32 %v2961_v51, %v5497_v2  ;;  %v3251_v51 = vld [vmem:[%s5775_s6 + $0x30] sm:$0xff] }
 0x52a   : > { %v3052_v50 = vadd.f32 %v2988_v26, %v2924_v55  ;;  %v3241_v35 = vsel %vm3113_vm1, %v3049_v34, %v3177_v19  ;;  %v3273_v26 = vld [vmem:[%s5775_s6 + $0xe0] sm:$0xff]  ;;  %v3044_v55 = vadd.f32 %v2980_v53, %v5405_v32  ;;  %v3224_v32 = vsel %vm3096_vm5, %v5503_v37, %v3160_v15 }
 0x52b   : > { %3370 = vmatmul.mubr.f32.gmra.mxu0 %v3261_v8  ;;  %v2979_v8 = vld [vmem:[%s5774_s5 + $0x1b0] sm:$0xff]  ;;  %v3027_v34 = vadd.f32 %v2963_v14, %v5441_v62  ;;  %v3223_v37 = vsel %vm3095_vm7, %v5527_v40, %v3159_v48  ;;  %v3154_v45 = vmul.f32 0.2, %v3026_v24  ;;  %vm3090_vm2 = vcmp.gt.f32.partialorder %v3026_v24, 0.0 }
 0x52c   : > { %v3180_v58 = vmul.f32 0.2, %v3052_v50  ;;  %vm3116_vm12 = vcmp.gt.f32.partialorder %v3052_v50, 0.0  ;;  %3374 = vmatprep.mubr.f32.mxu0 %v3266_v28  ;;  %v3174_v28 = vmul.f32 0.2, %v3046_v27  ;;  %vm3108_vm13 = vcmp.gt.f32.partialorder %v3044_v55, 0.0 }
 0x52d   : > { %v2918_v54 = vpop.xlane.xlu0 %2917  ;;  %v3172_v12 = vmul.f32 0.2, %v3044_v55  ;;  %v3155_v23 = vmul.f32 0.2, %v3027_v34  ;;  %vm3089_vm5 = vcmp.gt.f32.partialorder %v3025_v20, 0.0 }
 0x52e   : > { %v3050_v13 = vadd.f32 %v2986_v5, %v2918_v54  ;;  %v3244_v57 = vsel %vm3116_vm12, %v3052_v50, %v3180_v58  ;;  %v3158_v50 = vmul.f32 0.2, %v3030_v29  ;;  %v3239_v5 = vsel %vm3111_vm6, %v5516_v39, %v3175_v56  ;;  %v2977_v58 = vld [vmem:[%s5774_s5 + $0x1a0] sm:$0xff] }
 0x52f   : > { %4111 = vmatprep.subr.mxu0 %v3244_v57  ;;  %3375 = vmatmul.mubr.f32.gmra.mxu0 %v3265_v22  ;;  %vm3093_vm12 = vcmp.gt.f32.partialorder %v3029_v42, 0.0  ;;  %v3238_v62 = vsel %vm3110_vm8, %v3046_v27, %v3174_v28  ;;  %v2960_v57 = vld [vmem:[%s5774_s5 + $0x118] sm:$0xff]  ;;  %v3237_v39 = vsel %vm3109_vm10, %v3045_v6, %v3173_v30  ;;  %v3236_v16 = vsel %vm3108_vm13, %v3044_v55, %v3172_v12 }
 0x530   : > { %v3178_v25 = vmul.f32 0.2, %v3050_v13  ;;  %4112 = vmatpush3.msra.mxu0 %v3228_v41  ;;  %vm3114_vm0 = vcmp.gt.f32.partialorder %v3050_v13, 0.0  ;;  %3379 = vmatprep.mubr.f32.mxu0 %v3270_v11  ;;  %v3156_v11 = vmul.f32 0.2, %v3028_v61  ;;  %v3222_v60 = vsel %vm3094_vm9, %v3030_v29, %v3158_v50  ;;  %v2973_v50 = vld [vmem:[%s5774_s5 + $0x180] sm:$0xff] }
 0x531   : > { %4113 = vmatprep.subr.mxu0 %v3243_v36  ;;  %v2897_v47 = vpop.xlane.xlu0 %2896  ;;  %v3221_v19 = vsel %vm3093_vm12, %v3029_v42, %v3157_v43  ;;  %v2834_v36 = vpop.xlane.xlu1 %2833  ;;  %v3153_v27 = vmul.f32 0.2, %v3025_v20  ;;  %v3218_v6 = vsel %vm3090_vm2, %v3026_v24, %v3154_v45  ;;  %v3252_v12 = vld [vmem:[%s5775_s6 + $0x38] sm:$0xff]  ;;  %v3259_v24 = vld [vmem:[%s5775_s6 + $0x70] sm:$0xff] }
 0x532   : > { %4114 = vmatpush3.msra.mxu0 %v3227_v44  ;;  %v3242_v0 = vsel %vm3114_vm0, %v3050_v13, %v3178_v25  ;;  %v3043_v7 = vadd.f32 %v2979_v8, %v2897_v47  ;;  %v2976_v13 = vld [vmem:[%s5774_s5 + $0x198] sm:$0xff]  ;;  %vm3091_vm0 = vcmp.gt.f32.partialorder %v3027_v34, 0.0  ;;  %v2959_v25 = vld [vmem:[%s5774_s5 + $0x110] sm:$0xff]  ;;  %v3024_v47 = vadd.f32 %v2960_v57, %v5539_v10 }
 0x533   : > { %4115 = vmatprep.subr.mxu0 %v3242_v0  ;;  %3380 = vmatmul.mubr.f32.gmra.mxu0 %v3269_v52  ;;  %v3220_v2 = vsel %vm3092_vm14, %v3028_v61, %v3156_v11  ;;  %v2975_v44 = vld [vmem:[%s5774_s5 + $0x190] sm:$0xff]  ;;  %v3023_v0 = vadd.f32 %v2959_v25, %v2837_v18  ;;  %v3219_v15 = vsel %vm3091_vm0, %v3027_v34, %v3155_v23  ;;  %v3260_v11 = vld [vmem:[%s5775_s6 + $0x78] sm:$0xff] }
 0x534   : > { %4116 = vmatpush3.msra.mxu0 %v3226_v4  ;;  %3384 = vmatprep.mubr.f32.mxu0 %v3274_v59  ;;  %v3171_v3 = vmul.f32 0.2, %v3043_v7  ;;  %vm3107_vm15 = vcmp.gt.f32.partialorder %v3043_v7, 0.0  ;;  %v2958_v59 = vld [vmem:[%s5774_s5 + $0x108] sm:$0xff]  ;;  %v3152_v1 = vmul.f32 0.2, %v3024_v47 }
 0x535   : > { %4117 = vmatprep.subr.mxu0 %v3241_v35  ;;  %v2894_v49 = vpop.xlane.xlu0 %2893  ;;  %v3022_v56 = vadd.f32 %v2958_v59, %v2834_v36  ;;  %v2974_v35 = vld [vmem:[%s5774_s5 + $0x188] sm:$0xff]  ;;  %vm3088_vm7 = vcmp.gt.f32.partialorder %v3024_v47, 0.0  ;;  %v2831_v48 = vpop.xlane.xlu1 %2830  ;;  %vm3087_vm9 = vcmp.gt.f32.partialorder %v3023_v0, 0.0  ;;  %v3268_v57 = vld [vmem:[%s5775_s6 + $0xb8] sm:$0xff] }
 0x536   : > { %4118 = vmatpush3.msra.mxu0 %v3225_v38  ;;  %v3042_v54 = vadd.f32 %v2978_v46, %v2894_v49  ;;  %v3235_v17 = vsel %vm3107_vm15, %v3043_v7, %v3171_v3  ;;  %v3151_v49 = vmul.f32 0.2, %v3023_v0  ;;  %v3216_v61 = vsel %vm3088_vm7, %v3024_v47, %v3152_v1  ;;  %v3267_v3 = vld [vmem:[%s5775_s6 + $0xb0] sm:$0xff]  ;;  %v3276_v23 = vld [vmem:[%s5775_s6 + $0xf8] sm:$0xff] }
 0x537   : > { %4119 = vmatprep.subr.mxu0 %v3240_v33  ;;  %3385 = vmatmul.mubr.f32.gmra.mxu0 %v3273_v26  ;;  %v2957_v26 = vld [vmem:[%s5774_s5 + $0x100] sm:$0xff]  ;;  %v3150_v28 = vmul.f32 0.2, %v3022_v56  ;;  %vm3086_vm10 = vcmp.gt.f32.partialorder %v3022_v56, 0.0 }
 0x538   : > { %4120 = vmatpush3.msra.mxu0 %v3224_v32  ;;  %3454 = vmatprep.mubr.f32.mxu0 %v3248_v9  ;;  %v3170_v52 = vmul.f32 0.2, %v3042_v54  ;;  %vm3106_vm1 = vcmp.gt.f32.partialorder %v3042_v54, 0.0  ;;  %v3217_v9 = vsel %vm3089_vm5, %v3025_v20, %v3153_v27  ;;  %v3021_v33 = vadd.f32 %v2957_v26, %v2831_v48  ;;  %v3275_v20 = vld [vmem:[%s5775_s6 + $0xf0] sm:$0xff] }
 0x539   : > { %4121 = vmatprep.subr.mxu0 %v3239_v5  ;;  %v2891_v22 = vpop.xlane.xlu0 %2890  ;;  %v3215_v30 = vsel %vm3087_vm9, %v3023_v0, %v3151_v49  ;;  %v3214_v43 = vsel %vm3086_vm10, %v3022_v56, %v3150_v28  ;;  %v3283_v28 = vld [vmem:[%s5776_s7 + $0x30] sm:$0xff] }
 0x53a   : > { %4122 = vmatpush3.msra.mxu0 %v3223_v37  ;;  %v3041_v31 = vadd.f32 %v2977_v58, %v2891_v22  ;;  %v3234_v4 = vsel %vm3106_vm1, %v3042_v54, %v3170_v52  ;;  %v3149_v5 = vmul.f32 0.2, %v3021_v33  ;;  %vm3085_vm13 = vcmp.gt.f32.partialorder %v3021_v33, 0.0  ;;  %v3247_v22 = vld [vmem:[%s5775_s6 + $0x10] sm:$0xff]  ;;  %v3256_v54 = vld [vmem:[%s5775_s6 + $0x58] sm:$0xff] }
 0x53b   : > { %4123 = vmatprep.subr.mxu0 %v3238_v62  ;;  %v3255_v62 = vld [vmem:[%s5775_s6 + $0x50] sm:$0xff] }
 0x53c   : > { %4124 = vmatpush3.msra.mxu0 %v3222_v60  ;;  %v3169_v63 = vmul.f32 0.2, %v3041_v31  ;;  %vm3105_vm4 = vcmp.gt.f32.partialorder %v3041_v31, 0.0  ;;  %v3213_v37 = vsel %vm3085_vm13, %v3021_v33, %v3149_v5  ;;  %v3264_v60 = vld [vmem:[%s5775_s6 + $0x98] sm:$0xff] }
 0x53d   : > { %4125 = vmatprep.subr.mxu0 %v3237_v39  ;;  %v2888_v41 = vpop.xlane.xlu0 %2887  ;;  %v3271_v39 = vld [vmem:[%s5775_s6 + $0xd0] sm:$0xff] }
 0x53e   : > { %v3040_v40 = vadd.f32 %v2976_v13, %v2888_v41  ;;  %4126 = vmatpush3.msra.mxu0 %v3221_v19  ;;  %v3233_v8 = vsel %vm3105_vm4, %v3041_v31, %v3169_v63  ;;  %v3263_v13 = vld [vmem:[%s5775_s6 + $0x90] sm:$0xff]  ;;  %v3272_v31 = vld [vmem:[%s5775_s6 + $0xd8] sm:$0xff]  ;;  %v3519_v41 = vld [vmem:[%s5777_s8] sm:$0xff] }
 0x53f   : > { %4127 = vmatprep.subr.mxu0 %v3236_v16 }
 0x540   : > { %4128 = vmatpush3.msra.mxu0 %v3220_v2  ;;  %v3168_v29 = vmul.f32 0.2, %v3040_v40  ;;  %vm3104_vm6 = vcmp.gt.f32.partialorder %v3040_v40, 0.0 }
 0x541   : > { %4129 = vmatprep.subr.mxu0 %v3235_v17  ;;  %v2885_v10 = vpop.xlane.xlu0 %2884 }
 0x542   : > { %v3039_v53 = vadd.f32 %v2975_v44, %v2885_v10  ;;  %4130 = vmatpush3.msra.mxu0 %v3219_v15  ;;  %v3232_v14 = vsel %vm3104_vm6, %v3040_v40, %v3168_v29 }
 0x543   : > { %4131 = vmatprep.subr.mxu0 %v3234_v4 }
 0x544   : > { %v3167_v42 = vmul.f32 0.2, %v3039_v53  ;;  %4132 = vmatpush3.msra.mxu0 %v3218_v6  ;;  %vm3103_vm8 = vcmp.gt.f32.partialorder %v3039_v53, 0.0 }
 0x545   : > { %4133 = vmatprep.subr.mxu0 %v3233_v8  ;;  %v2882_v38 = vpop.xlane.xlu0 %2881 }
 0x546   : > { %v3038_v55 = vadd.f32 %v2974_v35, %v2882_v38  ;;  %4134 = vmatpush3.msra.mxu0 %v3217_v9  ;;  %v3231_v32 = vsel %vm3103_vm8, %v3039_v53, %v3167_v42 }
 0x547   : > { %4135 = vmatprep.subr.mxu0 %v3232_v14 }
 0x548   : > { %v3166_v46 = vmul.f32 0.2, %v3038_v55  ;;  %4136 = vmatpush3.msra.mxu0 %v3216_v61  ;;  %vm3102_vm12 = vcmp.gt.f32.partialorder %v3038_v55, 0.0  ;;  %v3282_v61 = vld [vmem:[%s5776_s7 + $0x28] sm:$0xff] }
 0x549   : > { %4137 = vmatprep.subr.mxu0 %v3231_v32  ;;  %v2879_v21 = vpop.xlane.xlu0 %2878  ;;  %v3284_v32 = vld [vmem:[%s5776_s7 + $0x38] sm:$0xff] }
 0x54a   : > { %v3037_v18 = vadd.f32 %v2973_v50, %v2879_v21  ;;  %4138 = vmatpush3.msra.mxu0 %v3215_v30  ;;  %v3230_v7 = vsel %vm3102_vm12, %v3038_v55, %v3166_v46  ;;  %vm3721_vm12 = vcmask 7168  }
 0x54b   : > { %4139 = vmatprep.subr.mxu0 %v3230_v7 }
 0x54c   : > { %v3165_v34 = vmul.f32 0.2, %v3037_v18  ;;  %4140 = vmatpush3.msra.mxu0 %v3214_v43  ;;  %vm3101_vm14 = vcmp.gt.f32.partialorder %v3037_v18, 0.0  ;;  %v3281_v43 = vld [vmem:[%s5776_s7 + $0x20] sm:$0xff] }
 0x54e   : > { %v3229_v58 = vsel %vm3101_vm14, %v3037_v18, %v3165_v34 }
 0x54f   : > { %4141 = vmatprep.subr.mxu0 %v3229_v58 }
 0x550   : > { %4142 = vmatpush3.msra.mxu0 %v3213_v37 }
 0x551   : > { %3455 = vmatmul.mubr.f32.vlgmr.msra.gmra.mxu0 %v3247_v22  ;;  %v3280_v22 = vld [vmem:[%s5776_s7 + $0x18] sm:$0xff] }
 0x552   : > { %3459 = vmatprep.mubr.f32.mxu0 %v3252_v12 }
 0x555   : > { %3460 = vmatmul.mubr.f32.gmra.mxu0 %v3251_v51 }
 0x556   : > { %3464 = vmatprep.mubr.f32.mxu0 %v3256_v54 }
 0x559   : > { %3465 = vmatmul.mubr.f32.gmra.mxu0 %v3255_v62 }
 0x55a   : > { %3469 = vmatprep.mubr.f32.mxu0 %v3260_v11  ;;  %v3279_v11 = vld [vmem:[%s5776_s7 + $0x10] sm:$0xff] }
 0x55d   : > { %3470 = vmatmul.mubr.f32.gmra.mxu0 %v3259_v24 }
 0x55e   : > { %3474 = vmatprep.mubr.f32.mxu0 %v3264_v60 }
 0x561   : > { %3475 = vmatmul.mubr.f32.gmra.mxu0 %v3263_v13 }
 0x562   : > { %3479 = vmatprep.mubr.f32.mxu0 %v3268_v57 }
 0x565   : > { %3480 = vmatmul.mubr.f32.gmra.mxu0 %v3267_v3 }
 0x566   : > { %3484 = vmatprep.mubr.f32.mxu0 %v3272_v31 }
 0x569   : > { %3485 = vmatmul.mubr.f32.gmra.mxu0 %v3271_v39  ;;  %v3278_v39 = vld [vmem:[%s5776_s7 + $0x8] sm:$0xff] }
 0x56a   : > { %3489 = vmatprep.mubr.f32.mxu0 %v3276_v23 }
 0x56d   : > { %3490 = vmatmul.mubr.f32.gmra.mxu0 %v3275_v20 }
 0x56e   : > { %4333 = vmatprep.mubr.msk.f32.mxu0 %vm2013_vm11, %v3519_v41 }
 0x5db   : > { %v4087_v19 = vpop.f32.mrf.mxu0 }
 0x5dd   : > { %v4088_v25 = vpop.f32.mrf.mxu0 }
 0x5de   : > { %v5688_v36 = vadd.f32 %v4088_v25, %v4087_v19 }
 0x5df   : > { %v4090_v52 = vpop.f32.mrf.mxu0 }
 0x5e1   : > { %v4091_v40 = vpop.f32.mrf.mxu0 }
 0x5e2   : > { %v5690_v16 = vadd.f32 %v4091_v40, %v4090_v52 }
 0x5e3   : > { %v4093_v45 = vpop.f32.mrf.mxu0 }
 0x5e5   : > { %v4094_v47 = vpop.f32.mrf.mxu0 }
 0x5e6   : > { %v4095_v62 = vadd.f32 %v4094_v47, %v4093_v45  ;;  %v3277_v47 = vld [vmem:[%s5776_s7] sm:$0xff] }
 0x5e7   : > { %v4096_v2 = vpop.f32.mrf.mxu0 }
 0x5e8   : > { %v3362_v19 = vadd.f32 %v4095_v62, %v3279_v11 }
 0x5e9   : > { %v4097_v44 = vpop.f32.mrf.mxu0 }
 0x5ea   : > { %v4098_v5 = vadd.f32 %v4097_v44, %v4096_v2  ;;  %v3357_v2 = vadd.f32 %v5690_v16, %v3278_v39 }
 0x5eb   : > { %v4099_v59 = vpop.f32.mrf.mxu0 }
 0x5ec   : > { %v3367_v3 = vadd.f32 %v4098_v5, %v3280_v22 }
 0x5ed   : > { %v4100_v63 = vpop.f32.mrf.mxu0 }
 0x5ee   : > { %v4101_v30 = vadd.f32 %v4100_v63, %v4099_v59 }
 0x5ef   : > { %v4102_v17 = vpop.f32.mrf.mxu0 }
 0x5f0   : > { %v3372_v24 = vadd.f32 %v4101_v30, %v3281_v43 }
 0x5f1   : > { %v4103_v27 = vpop.f32.mrf.mxu0 }
 0x5f2   : > { %v4104_v14 = vadd.f32 %v4103_v27, %v4102_v17  ;;  %v3352_v27 = vadd.f32 %v5688_v36, %v3277_v47 }
 0x5f3   : > { %v4105_v0 = vpop.f32.mrf.mxu0 }
 0x5f4   : > { %v3377_v34 = vadd.f32 %v4104_v14, %v3282_v61  ;;  %v3523_v14 = vld [vmem:[%s5778_s9] sm:$0xff] }
 0x5f5   : > { %v4106_v10 = vpop.f32.mrf.mxu0 }
 0x5f6   : > { %v4107_v55 = vadd.f32 %v4106_v10, %v4105_v0 }
 0x5f7   : > { %v4108_v15 = vpop.f32.mrf.mxu0 }
 0x5f8   : > { %v3382_v18 = vadd.f32 %v4107_v55, %v3283_v28  ;;  %v3526_v55 = vld [vmem:[%s5778_s9 + $0x18] sm:$0xff] }
 0x5f9   : > { %v4109_v29 = vpop.f32.mrf.mxu0 }
 0x5fa   : > { %v4110_v50 = vadd.f32 %v4109_v29, %v4108_v15 }
 0x5fc   : > { %v3387_v37 = vadd.f32 %v4110_v50, %v3284_v32 }
 0x611   : > { %v4143_v53 = vpop.f32.mrf.mxu0 }
 0x613   : > { %v4144_v4 = vpop.f32.mrf.mxu0 }
 0x614   : > { %v4145_v44 = vadd.f32 %v4144_v4, %v4143_v53 }
 0x615   : > { %v4146_v1 = vpop.f32.mrf.mxu0 }
 0x616   : > { %v3457_v29 = vadd.f32 %v4145_v44, %v3352_v27 }
 0x617   : > { %v4147_v56 = vpop.f32.mrf.mxu0 }
 0x618   : > { %v4148_v25 = vadd.f32 %v4147_v56, %v4146_v1  ;;  %v3503_v36 = vmul.f32 0.2, %v3457_v29  ;;  %vm3495_vm7 = vcmp.gt.f32.partialorder %v3457_v29, 0.0 }
 0x619   : > { %v4149_v6 = vpop.f32.mrf.mxu0 }
 0x61a   : > { %v3462_v0 = vadd.f32 %v4148_v25, %v3357_v2 }
 0x61b   : > { %v4150_v35 = vpop.f32.mrf.mxu0 }
 0x61c   : > { %v4151_v31 = vadd.f32 %v4150_v35, %v4149_v6  ;;  %v3504_v4 = vmul.f32 0.2, %v3462_v0  ;;  %vm3496_vm6 = vcmp.gt.f32.partialorder %v3462_v0, 0.0  ;;  %v3511_v35 = vsel %vm3495_vm7, %v3457_v29, %v3503_v36 }
 0x61d   : > { %v4152_v26 = vpop.f32.mrf.mxu0 }
 0x61e   : > { %v3467_v59 = vadd.f32 %v4151_v31, %v3362_v19  ;;  %v3512_v6 = vsel %vm3496_vm6, %v3462_v0, %v3504_v4 }
 0x61f   : > { %v4153_v48 = vpop.f32.mrf.mxu0 }
 0x620   : > { %v4154_v60 = vadd.f32 %v4153_v48, %v4152_v26  ;;  %v3505_v1 = vmul.f32 0.2, %v3467_v59  ;;  %vm3497_vm5 = vcmp.gt.f32.partialorder %v3467_v59, 0.0  ;;  %v3520_v26 = vld [vmem:[%s5777_s8 + $0x8] sm:$0xff]  ;;  %v3521_v48 = vld [vmem:[%s5777_s8 + $0x10] sm:$0xff] }
 0x621   : > { %v4155_v42 = vpop.f32.mrf.mxu0 }
 0x622   : > { %v3472_v52 = vadd.f32 %v4154_v60, %v3367_v3  ;;  %v3513_v56 = vsel %vm3497_vm5, %v3467_v59, %v3505_v1 }
 0x623   : > { %v4156_v8 = vpop.f32.mrf.mxu0 }
 0x624   : > { %v4157_v12 = vadd.f32 %v4156_v8, %v4155_v42  ;;  %v3506_v15 = vmul.f32 0.2, %v3472_v52  ;;  %vm3498_vm4 = vcmp.gt.f32.partialorder %v3472_v52, 0.0  ;;  %v3522_v42 = vld [vmem:[%s5777_s8 + $0x18] sm:$0xff]  ;;  %v3636_v8 = vld [vmem:[%s5779_s10] sm:$0xff] }
 0x625   : > { %v4158_v49 = vpop.f32.mrf.mxu0 }
 0x626   : > { %v3477_v23 = vadd.f32 %v4157_v12, %v3372_v24  ;;  %v3514_v53 = vsel %vm3498_vm4, %v3472_v52, %v3506_v15  ;;  %v3639_v12 = vld [vmem:[%s5780_s11 + $0x8] sm:$0xff] }
 0x627   : > { %v4159_v38 = vpop.f32.mrf.mxu0 }
 0x628   : > { %v4160_v7 = vadd.f32 %v4159_v38, %v4158_v49  ;;  %v3507_v17 = vmul.f32 0.2, %v3477_v23  ;;  %vm3499_vm2 = vcmp.gt.f32.partialorder %v3477_v23, 0.0  ;;  %v3524_v38 = vld [vmem:[%s5778_s9 + $0x8] sm:$0xff] }
 0x629   : > { %v4161_v9 = vpop.f32.mrf.mxu0 }
 0x62a   : > { %v3482_v13 = vadd.f32 %v4160_v7, %v3377_v34  ;;  %v3515_v16 = vsel %vm3499_vm2, %v3477_v23, %v3507_v17 }
 0x62b   : > { %v4162_v33 = vpop.f32.mrf.mxu0 }
 0x62c   : > { %v4163_v46 = vadd.f32 %v4162_v33, %v4161_v9  ;;  %v3508_v45 = vmul.f32 0.2, %v3482_v13  ;;  %vm3500_vm1 = vcmp.gt.f32.partialorder %v3482_v13, 0.0  ;;  %v3525_v33 = vld [vmem:[%s5778_s9 + $0x10] sm:$0xff] }
 0x62d   : > { %v4164_v21 = vpop.f32.mrf.mxu0 }
 0x62e   : > { %v3487_v51 = vadd.f32 %v4163_v46, %v3382_v18  ;;  %v3516_v10 = vsel %vm3500_vm1, %v3482_v13, %v3508_v45 }
 0x62f   : > { %v4165_v58 = vpop.f32.mrf.mxu0 }
 0x630   : > { %v4166_v54 = vadd.f32 %v4165_v58, %v4164_v21  ;;  %v3509_v41 = vmul.f32 0.2, %v3487_v51  ;;  %vm3501_vm0 = vcmp.gt.f32.partialorder %v3487_v51, 0.0 }
 0x632   : > { %v3492_v57 = vadd.f32 %v4166_v54, %v3387_v37  ;;  %v3517_v63 = vsel %vm3501_vm0, %v3487_v51, %v3509_v41  ;;  %v3637_v37 = vld [vmem:[%s5779_s10 + $0x8] sm:$0xff]  ;;  %v3638_v54 = vld [vmem:[%s5780_s11] sm:$0xff] }
 0x634   : > { %vm3502_vm15 = vcmp.gt.f32.partialorder %v3492_v57, 0.0  ;;  %v3510_v20 = vmul.f32 0.2, %v3492_v57 }
 0x636   : > { %v3518_v40 = vsel %vm3502_vm15, %v3492_v57, %v3510_v20 }
 0x637   : > { %4317 = vmatprep.subr.mxu0 %v3518_v40 }
 0x638   : > { %4318 = vmatpush3.msra.mxu0 %v3518_v40 }
 0x639   : > { %4319 = vmatprep.subr.mxu0 %v3517_v63 }
 0x63a   : > { %4320 = vmatpush3.msra.mxu0 %v3517_v63 }
 0x63b   : > { %4321 = vmatprep.subr.mxu0 %v3516_v10 }
 0x63c   : > { %4322 = vmatpush3.msra.mxu0 %v3516_v10 }
 0x63d   : > { %4323 = vmatprep.subr.mxu0 %v3515_v16 }
 0x63e   : > { %4324 = vmatpush3.msra.mxu0 %v3515_v16 }
 0x63f   : > { %4325 = vmatprep.subr.mxu0 %v3514_v53 }
 0x640   : > { %4326 = vmatpush3.msra.mxu0 %v3514_v53 }
 0x641   : > { %4327 = vmatprep.subr.mxu0 %v3513_v56 }
 0x642   : > { %4328 = vmatpush3.msra.mxu0 %v3513_v56 }
 0x643   : > { %4329 = vmatprep.subr.mxu0 %v3512_v6 }
 0x644   : > { %4330 = vmatpush3.msra.mxu0 %v3512_v6 }
 0x645   : > { %4331 = vmatprep.subr.mxu0 %v3511_v35 }
 0x646   : > { %4332 = vmatpush3.msra.mxu0 %v3511_v35 }
 0x647   : > { %4334 = vmatmul.mubr.msk.f32.vlgmr.msra.gmra.mxu0 %vm2013_vm11, %v3520_v26 }
 0x648   : > { %4336 = vmatprep.mubr.msk.f32.mxu0 %vm2013_vm11, %v3521_v48 }
 0x64b   : > { %4337 = vmatmul.mubr.msk.f32.gmra.mxu0 %vm2013_vm11, %v3522_v42 }
 0x64c   : > { %4347 = vmatprep.mubr.msk.f32.mxu0 %vm1395_vm3, %v3636_v8 }
 0x707   : > { %v4335_v49 = vpop.f32.mrf.mxu0 }
 0x708   : > { %v3611_v61 = vadd.f32 %v4335_v49, %v3524_v38 }
 0x709   : > { %v3605_v9 = vpop.f32.mrf.mxu0 }
 0x70a   : > { %v3606_v32 = vadd.f32 %v3605_v9, %v3523_v14  ;;  %v3629_v18 = vmul.f32 0.2, %v3611_v61  ;;  %vm3625_vm9 = vcmp.gt.f32.partialorder %v3611_v61, 0.0 }
 0x70b   : > { %v4338_v28 = vpop.f32.mrf.mxu0 }
 0x70c   : > { %v3621_v50 = vadd.f32 %v4338_v28, %v3526_v55  ;;  %v3628_v43 = vmul.f32 0.2, %v3606_v32  ;;  %vm3624_vm10 = vcmp.gt.f32.partialorder %v3606_v32, 0.0  ;;  %v3633_v58 = vsel %vm3625_vm9, %v3611_v61, %v3629_v18 }
 0x70d   : > { %v3615_v46 = vpop.f32.mrf.mxu0 }
 0x70e   : > { %v3631_v21 = vmul.f32 0.2, %v3621_v50  ;;  %v3616_v30 = vadd.f32 %v3615_v46, %v3525_v33  ;;  %vm3627_vm11 = vcmp.gt.f32.partialorder %v3621_v50, 0.0  ;;  %v3632_v22 = vsel %vm3624_vm10, %v3606_v32, %v3628_v43 }
 0x710   : > { %v3630_v7 = vmul.f32 0.2, %v3616_v30  ;;  %v3635_v5 = vsel %vm3627_vm11, %v3621_v50, %v3631_v21  ;;  %vm3626_vm8 = vcmp.gt.f32.partialorder %v3616_v30, 0.0 }
 0x711   : > { %4339 = vmatprep.subr.mxu0 %v3635_v5 }
 0x712   : > { %4340 = vmatpush3.msra.mxu0 %v3635_v5  ;;  %v3634_v34 = vsel %vm3626_vm8, %v3616_v30, %v3630_v7 }
 0x713   : > { %4341 = vmatprep.subr.mxu0 %v3634_v34 }
 0x714   : > { %4342 = vmatpush3.msra.mxu0 %v3634_v34 }
 0x715   : > { %4343 = vmatprep.subr.mxu0 %v3633_v58 }
 0x716   : > { %4344 = vmatpush3.msra.mxu0 %v3633_v58 }
 0x717   : > { %4345 = vmatprep.subr.mxu0 %v3632_v22 }
 0x718   : > { %4346 = vmatpush3.msra.mxu0 %v3632_v22 }
 0x719   : > { %4348 = vmatmul.mubr.msk.f32.vlgmr.msra.gmra.mxu0 %vm1395_vm3, %v3637_v37 }
 0x7d9   : > { %v4349_v51 = vpop.f32.mrf.mxu0 }
 0x7da   : > { %v3718_v62 = vadd.f32 %v4349_v51, %v3639_v12 }
 0x7db   : > { %v3712_v11 = vpop.f32.mrf.mxu0 }
 0x7dc   : > { %3723 = vst.msk [vmem:[%s436_s25 + $0x8] sm:$0xff] %vm3721_vm12, %v3718_v62  ;;  %v3713_v24 = vadd.f32 %v3712_v11, %v3638_v54 }
 0x7de   : > { %3722 = vst.msk [vmem:[%s436_s25] sm:$0xff] %vm3721_vm12, %v3713_v24 }
 0x7df PF: > { %s22_s23 = sadd.s32 1, %s4468_s23   ;;  %s5791_s21 = smov %s4464_s22 }
 0x7e0   : > { %p19_p5 = scmp.ge.s32.totalorder %s22_s23, 4   ;;  %s5792_s22 = smov %s5794_s24 }
 0x7e2   :  { %21 = sbr.rel (!%p19_p5) target bundleno = 2 (0x2), region = 117 }

</bundles_post_ra>
